<compile_context>
chip_gen: v6e
topology: v6e:2x2x1
jax: 0.10.0
libtpu: 0.0.40
codegen_flags: <defaults>
</compile_context>

<pallas_src>
import functools

import jax
import jax.numpy as jnp
from jax import lax
from jax.experimental import pallas as pl
from jax.experimental.pallas import tpu as pltpu

H1, H2, H3 = 64, 32, 16   # hidden sizes of lstm1/2/3 (fixed by the module)


# --------------------------------------------------------------------------
# Kernel
# --------------------------------------------------------------------------
def _cell(gates, c, hid):
    """LSTM cell nonlinearities; gates packed contiguously as [i|f|g|o]."""
    i = jax.nn.sigmoid(gates[:, 0 * hid:1 * hid])
    f = jax.nn.sigmoid(gates[:, 1 * hid:2 * hid])
    g = jnp.tanh(gates[:, 2 * hid:3 * hid])
    o = jax.nn.sigmoid(gates[:, 3 * hid:4 * hid])
    c_new = f * c + i * g
    h_new = o * jnp.tanh(c_new)
    return h_new, c_new


def light_lstm_kernel(
    xg_ref,                        # (T, Bp, 4*H1) f32: hoisted layer-1 input proj (+bias)
    whh1_ref,                      # (H1, 4*H1) bf16
    wih2_ref, whh2_ref, b2_ref,    # (H1,4*H2) bf16, (H2,4*H2) bf16, (1,4*H2) f32
    wih3_ref, whh3_ref, b3_ref,    # (H2,4*H3) bf16, (H3,4*H3) bf16, (1,4*H3) f32
    wfc_ref, bfc_ref,              # (H3, Fout) f32, (1, Fout) f32
    out_ref,                       # (Bp, Fout) f32
):
    T, Bp, _ = xg_ref.shape
    cdt = whh1_ref.dtype           # MXU input dtype for the recurrent dots (bf16)

    whh1 = whh1_ref[...]
    wih2 = wih2_ref[...]
    whh2 = whh2_ref[...]
    wih3 = wih3_ref[...]
    whh3 = whh3_ref[...]
    # Hoisted bias broadcasts (JAX does not CSE broadcast_in_dim per step).
    b2 = jnp.broadcast_to(b2_ref[...], (Bp, 4 * H2))
    b3 = jnp.broadcast_to(b3_ref[...], (Bp, 4 * H3))

    def step(t, carry):
        h1, c1, h2, c2, h3, c3 = carry
        # Layer 1: only the recurrent dot remains inside the loop.
        g1 = xg_ref[t] + jnp.dot(h1.astype(cdt), whh1,
                                 preferred_element_type=jnp.float32)
        h1, c1 = _cell(g1, c1, H1)
        # dropout1: identity (eval mode)
        # Layer 2: two small independent dots (no lane-concat on the chain).
        g2 = (jnp.dot(h1.astype(cdt), wih2, preferred_element_type=jnp.float32)
              + jnp.dot(h2.astype(cdt), whh2, preferred_element_type=jnp.float32)
              + b2)
        h2, c2 = _cell(g2, c2, H2)
        # dropout2: identity (eval mode)
        # Layer 3.
        g3 = (jnp.dot(h2.astype(cdt), wih3, preferred_element_type=jnp.float32)
              + jnp.dot(h3.astype(cdt), whh3, preferred_element_type=jnp.float32)
              + b3)
        h3, c3 = _cell(g3, c3, H3)
        # dropout3: identity (eval mode)
        # TODO(synk): training-mode dropout would use pltpu.prng_seed/prng_random_bits.
        return h1, c1, h2, c2, h3, c3

    carry = (jnp.zeros((Bp, H1), jnp.float32), jnp.zeros((Bp, H1), jnp.float32),
             jnp.zeros((Bp, H2), jnp.float32), jnp.zeros((Bp, H2), jnp.float32),
             jnp.zeros((Bp, H3), jnp.float32), jnp.zeros((Bp, H3), jnp.float32))
    if T <= 16:
        for t in range(T):                    # fully unrolled: LLO sees the chain
            carry = step(t, carry)
    else:
        carry = lax.fori_loop(0, T, step, carry, unroll=4)
    h3 = carry[4]

    # Final Linear on the last timestep's layer-3 hidden state (f32, one-shot).
    out_ref[...] = (
        jnp.dot(h3, wfc_ref[...], preferred_element_type=jnp.float32)
        + bfc_ref[...]
    ).astype(out_ref.dtype)


# --------------------------------------------------------------------------
# Wrapper
# --------------------------------------------------------------------------
@functools.partial(jax.jit, static_argnames=("future_steps", "batch_tiles"))
def light_dropout_lstm(x, packed, future_steps=1, batch_tiles=1):
    """x: (B, T, F) batch-first float32.  Returns (B, future_steps).

    batch_tiles=2 shards the batch over a "parallel" grid axis (useful on v7x,
    which has two TensorCores); batch_tiles=1 (default) runs without a grid.
    """
    B, T, F = x.shape
    (wih1_p, b1_p, whh1_p,
     wih2_p, whh2_p, b2_p,
     wih3_p, whh3_p, b3_p,
     wfc_p, bfc_p) = packed

    # Pad batch so every batch tile is a multiple of 8 sublanes.
    bt_round = 8 * batch_tiles
    Bp = max(bt_round, ((B + bt_round - 1) // bt_round) * bt_round)
    bt = Bp // batch_tiles

    x_tm = jnp.transpose(x, (1, 0, 2))                       # (T, B, F) time-major
    if Bp != B:
        x_tm = jnp.pad(x_tm, ((0, 0), (0, Bp - B), (0, 0)))

    # Hoisted layer-1 input projection for all timesteps: one big XLA matmul,
    # off the recurrent chain.  (Padded batch rows only see the bias; they are
    # independent of real rows and sliced off at the end.)
    xg = jnp.dot(x_tm, wih1_p) + b1_p                        # (T, Bp, 4*H1) f32

    kernel_inputs = (xg, whh1_p, wih2_p, whh2_p, b2_p,
                     wih3_p, whh3_p, b3_p, wfc_p, bfc_p)

    # VMEM budget: operands (x2 to cover the pipelined batch-tile path) + margin.
    need = sum(a.size * a.dtype.itemsize for a in kernel_inputs)
    need += Bp * future_steps * 4
    vmem_limit = int(min(64 * 1024 * 1024,
                         max(16 * 1024 * 1024, 2 * need + 4 * 1024 * 1024)))
    # TODO(synk): for very long sequences (xg footprint beyond ~half of VMEM,
    # especially on v7x's 64 MiB), stream xg over a T-chunked "arbitrary" grid
    # axis with h/c carried in VMEM scratch instead of keeping it resident.

    out_shape = jax.ShapeDtypeStruct((Bp, future_steps), jnp.float32)

    if batch_tiles == 1:
        # Single invocation, no grid: whole-array VMEM refs, no pipelining
        # machinery and no double-buffered copy of the resident slab.
        vmem = pltpu.MemorySpace.VMEM
        out = pl.pallas_call(
            light_lstm_kernel,
            out_shape=out_shape,
            in_specs=[pl.BlockSpec(memory_space=vmem)] * len(kernel_inputs),
            out_specs=pl.BlockSpec(memory_space=vmem),
            compiler_params=pltpu.CompilerParams(vmem_limit_bytes=vmem_limit),
        )(*kernel_inputs)
    else:
        # Batch-tile grid ("parallel"): on v7x the two TensorCores each run a
        # tile; on 1-TC chips the tiles simply run back-to-back.
        def _fixed(arr):
            zeros = (0,) * arr.ndim
            return pl.BlockSpec(arr.shape, lambda i, _z=zeros: _z)

        in_specs = [pl.BlockSpec((T, bt, 4 * H1), lambda i: (0, i, 0))]
        in_specs += [_fixed(a) for a in kernel_inputs[1:]]
        out = pl.pallas_call(
            light_lstm_kernel,
            out_shape=out_shape,
            grid=(batch_tiles,),
            in_specs=in_specs,
            out_specs=pl.BlockSpec((bt, future_steps), lambda i: (i, 0)),
            compiler_params=pltpu.CompilerParams(
                dimension_semantics=("parallel",),
                vmem_limit_bytes=vmem_limit),
        )(*kernel_inputs)

    return out[:B]


# --------------------------------------------------------------------------
# Parameter init (PyTorch-shaped) and packing into the kernel layout
# --------------------------------------------------------------------------
def init_params(key, input_size, future_steps=1):
    """Deterministic init matching torch.nn.LSTM / nn.Linear parameter shapes."""
    def uni(k, shape, bound):
        return jax.random.uniform(k, shape, jnp.float32, -bound, bound)

    ks = jax.random.split(key, 16)
    params = []
    ki = 0
    for in_dim, hid in [(input_size, H1), (H1, H2), (H2, H3)]:
        bound = 1.0 / jnp.sqrt(hid)
        params.append(uni(ks[ki], (4 * hid, in_dim), bound)); ki += 1   # W_ih
        params.append(uni(ks[ki], (4 * hid, hid), bound)); ki += 1      # W_hh
        params.append(uni(ks[ki], (4 * hid,), bound)); ki += 1          # b_ih
        params.append(uni(ks[ki], (4 * hid,), bound)); ki += 1          # b_hh
    bound = 1.0 / jnp.sqrt(H3)
    params.append(uni(ks[ki], (future_steps, H3), bound)); ki += 1      # fc W
    params.append(uni(ks[ki], (future_steps,), bound)); ki += 1         # fc b
    return tuple(params)


def pack_params(params, compute_dtype=jnp.bfloat16):
    """Pack torch-shaped params into the kernel layout.

    Recurrent-path weights are stored in `compute_dtype` (bf16 by default) so
    each per-step dot is a single MXU pass; biases / projection / fc stay f32.
    Gate columns are packed contiguously at native widths, order (i, f, g, o).
    """
    (wih1, whh1, bih1, bhh1,
     wih2, whh2, bih2, bhh2,
     wih3, whh3, bih3, bhh3,
     wfc, bfc) = params

    f32 = jnp.float32
    wih1_p = wih1.T.astype(f32)                 # (F, 4*H1)   XLA-side projection
    b1_p = (bih1 + bhh1).astype(f32)            # (4*H1,)
    whh1_p = whh1.T.astype(compute_dtype)       # (H1, 4*H1)

    wih2_p = wih2.T.astype(compute_dtype)       # (H1, 4*H2)
    whh2_p = whh2.T.astype(compute_dtype)       # (H2, 4*H2)
    b2_p = (bih2 + bhh2)[None, :].astype(f32)   # (1, 4*H2)

    wih3_p = wih3.T.astype(compute_dtype)       # (H2, 4*H3)
    whh3_p = whh3.T.astype(compute_dtype)       # (H3, 4*H3)
    b3_p = (bih3 + bhh3)[None, :].astype(f32)   # (1, 4*H3)

    wfc_p = wfc.T.astype(f32)                   # (H3, Fout)
    bfc_p = bfc[None, :].astype(f32)            # (1, Fout)

    return (wih1_p, b1_p, whh1_p, wih2_p, whh2_p, b2_p,
            wih3_p, whh3_p, b3_p, wfc_p, bfc_p)


def quantize_params_like_kernel(params):
    """Round the weights the kernel stores in bf16 back through bf16 (f32 out),
    so the pure-JAX reference uses the same effective weights as the kernel."""
    (wih1, whh1, bih1, bhh1,
     wih2, whh2, bih2, bhh2,
     wih3, whh3, bih3, bhh3,
     wfc, bfc) = params
    r = lambda w: w.astype(jnp.bfloat16).astype(jnp.float32)
    return (wih1, r(whh1), bih1, bhh1,
            r(wih2), r(whh2), bih2, bhh2,
            r(wih3), r(whh3), bih3, bhh3,
            wfc, bfc)


# --------------------------------------------------------------------------
# Pure-JAX reference (lax.scan), torch-shaped params, for correctness checks
# --------------------------------------------------------------------------
def reference_forward(x, params, future_steps=1):
    (wih1, whh1, bih1, bhh1,
     wih2, whh2, bih2, bhh2,
     wih3, whh3, bih3, bhh3,
     wfc, bfc) = params
    B = x.shape[0]

    def run_layer(seq, wih, whh, bih, bhh, hid):
        def step(carry, x_t):
            h, c = carry
            gates = x_t @ wih.T + h @ whh.T + bih + bhh
            i = jax.nn.sigmoid(gates[:, 0 * hid:1 * hid])
            f = jax.nn.sigmoid(gates[:, 1 * hid:2 * hid])
            g = jnp.tanh(gates[:, 2 * hid:3 * hid])
            o = jax.nn.sigmoid(gates[:, 3 * hid:4 * hid])
            c = f * c + i * g
            h = o * jnp.tanh(c)
            return (h, c), h

        init = (jnp.zeros((B, hid), jnp.float32), jnp.zeros((B, hid), jnp.float32))
        _, hs = jax.lax.scan(step, init, jnp.transpose(seq, (1, 0, 2)))
        return jnp.transpose(hs, (1, 0, 2))

    h = run_layer(x, wih1, whh1, bih1, bhh1, H1)
    h = run_layer(h, wih2, whh2, bih2, bhh2, H2)
    h = run_layer(h, wih3, whh3, bih3, bhh3, H3)
    return h[:, -1, :] @ wfc.T + bfc


if __name__ == "__main__":
    B, T, F = 4, 8, 16
    FUTURE = 1

    key = jax.random.PRNGKey(0)
    k_x, k_x2, k_p = jax.random.split(key, 3)
    x = jax.random.normal(k_x, (B, T, F), jnp.float32)

    params = init_params(k_p, F, FUTURE)
    packed = pack_params(params)                       # bf16 recurrent weights
    qparams = quantize_params_like_kernel(params)      # reference with same weights

    # Default path: no grid, whole problem resident in VMEM.
    out = jax.block_until_ready(light_dropout_lstm(x, packed, future_steps=FUTURE))
    ref = reference_forward(x, qparams, FUTURE)
    assert out.shape == (B, FUTURE)
    assert jnp.allclose(out, ref, atol=1e-2, rtol=1e-2), (out, ref)

    # Batch-tiled path (what a v7x chip would use to split work across its 2 TCs).
    B2 = 16
    x2 = jax.random.normal(k_x2, (B2, T, F), jnp.float32)
    out2 = jax.block_until_ready(
        light_dropout_lstm(x2, packed, future_steps=FUTURE, batch_tiles=2))
    ref2 = reference_forward(x2, qparams, FUTURE)
    assert out2.shape == (B2, FUTURE)
    assert jnp.allclose(out2, ref2, atol=1e-2, rtol=1e-2), (out2, ref2)

    print("KERNEL_OK")
</pallas_src>

<mosaic_0001>
module attributes {stable_mosaic.version = 11 : i64} {
  func.func @light_lstm_kernel(%arg0: memref<8x8x256xf32, #tpu.memory_space<vmem>>, %arg1: memref<64x256xbf16, #tpu.memory_space<vmem>>, %arg2: memref<64x128xbf16, #tpu.memory_space<vmem>>, %arg3: memref<32x128xbf16, #tpu.memory_space<vmem>>, %arg4: memref<1x128xf32, #tpu.memory_space<vmem>>, %arg5: memref<32x64xbf16, #tpu.memory_space<vmem>>, %arg6: memref<16x64xbf16, #tpu.memory_space<vmem>>, %arg7: memref<1x64xf32, #tpu.memory_space<vmem>>, %arg8: memref<16x1xf32, #tpu.memory_space<vmem>>, %arg9: memref<1x1xf32, #tpu.memory_space<vmem>>, %arg10: memref<8x1xf32, #tpu.memory_space<vmem>>) attributes {dimension_semantics = [], scalar_prefetch = 0 : i64, scratch_operands = 0 : i64, tpu.core_type = #tpu.core_type<tc>} {
    %c0 = arith.constant 0 : index
    %c0_0 = arith.constant 0 : index
    %0 = vector.load %arg1[%c0, %c0_0] : memref<64x256xbf16, #tpu.memory_space<vmem>>, vector<64x256xbf16>
    %c0_1 = arith.constant 0 : index
    %c0_2 = arith.constant 0 : index
    %1 = vector.load %arg2[%c0_1, %c0_2] : memref<64x128xbf16, #tpu.memory_space<vmem>>, vector<64x128xbf16>
    %c0_3 = arith.constant 0 : index
    %c0_4 = arith.constant 0 : index
    %2 = vector.load %arg3[%c0_3, %c0_4] : memref<32x128xbf16, #tpu.memory_space<vmem>>, vector<32x128xbf16>
    %c0_5 = arith.constant 0 : index
    %c0_6 = arith.constant 0 : index
    %3 = vector.load %arg5[%c0_5, %c0_6] : memref<32x64xbf16, #tpu.memory_space<vmem>>, vector<32x64xbf16>
    %c0_7 = arith.constant 0 : index
    %c0_8 = arith.constant 0 : index
    %4 = vector.load %arg6[%c0_7, %c0_8] : memref<16x64xbf16, #tpu.memory_space<vmem>>, vector<16x64xbf16>
    %c0_9 = arith.constant 0 : index
    %c0_10 = arith.constant 0 : index
    %5 = vector.load %arg4[%c0_9, %c0_10] : memref<1x128xf32, #tpu.memory_space<vmem>>, vector<1x128xf32>
    %6 = vector.shape_cast %5 : vector<1x128xf32> to vector<1x128xf32>
    %7 = vector.broadcast %6 : vector<1x128xf32> to vector<8x128xf32>
    %c0_11 = arith.constant 0 : index
    %c0_12 = arith.constant 0 : index
    %8 = vector.load %arg7[%c0_11, %c0_12] : memref<1x64xf32, #tpu.memory_space<vmem>>, vector<1x64xf32>
    %9 = vector.shape_cast %8 : vector<1x64xf32> to vector<1x64xf32>
    %10 = vector.broadcast %9 : vector<1x64xf32> to vector<8x64xf32>
    %cst = arith.constant 0.000000e+00 : f32
    %11 = vector.broadcast %cst : f32 to vector<8x64xf32>
    %cst_13 = arith.constant 0.000000e+00 : f32
    %12 = vector.broadcast %cst_13 : f32 to vector<8x64xf32>
    %cst_14 = arith.constant 0.000000e+00 : f32
    %13 = vector.broadcast %cst_14 : f32 to vector<8x32xf32>
    %cst_15 = arith.constant 0.000000e+00 : f32
    %14 = vector.broadcast %cst_15 : f32 to vector<8x32xf32>
    %cst_16 = arith.constant 0.000000e+00 : f32
    %15 = vector.broadcast %cst_16 : f32 to vector<8x16xf32>
    %cst_17 = arith.constant 0.000000e+00 : f32
    %16 = vector.broadcast %cst_17 : f32 to vector<8x16xf32>
    %c0_18 = arith.constant 0 : index
    %c0_19 = arith.constant 0 : index
    %c0_20 = arith.constant 0 : index
    %17 = vector.load %arg0[%c0_18, %c0_19, %c0_20] : memref<8x8x256xf32, #tpu.memory_space<vmem>>, vector<1x8x256xf32>
    %18 = vector.shape_cast %17 : vector<1x8x256xf32> to vector<8x256xf32>
    %19 = arith.truncf %11 : vector<8x64xf32> to vector<8x64xbf16>
    %cst_21 = arith.constant dense<0.000000e+00> : vector<8x256xf32>
    %20 = tpu.matmul %19, %0, %cst_21 {dimension_numbers = #tpu.dot_dimension_numbers<[1], [0], [0], [1], [0, 0, 1, 1], [], []>} : vector<8x64xbf16>, vector<64x256xbf16>, vector<8x256xf32> -> vector<8x256xf32>
    %21 = arith.addf %18, %20 : vector<8x256xf32>
    %22 = vector.extract_strided_slice %21 {offsets = [0, 0], sizes = [8, 64], strides = [1, 1]} : vector<8x256xf32> to vector<8x64xf32>
    %23 = arith.negf %22 : vector<8x64xf32>
    %24 = math.exp %23 : vector<8x64xf32>
    %cst_22 = arith.constant 1.000000e+00 : f32
    %25 = vector.broadcast %cst_22 : f32 to vector<8x64xf32>
    %26 = arith.addf %25, %24 : vector<8x64xf32>
    %27 = arith.divf %25, %26 : vector<8x64xf32>
    %28 = vector.extract_strided_slice %21 {offsets = [0, 64], sizes = [8, 64], strides = [1, 1]} : vector<8x256xf32> to vector<8x64xf32>
    %29 = arith.negf %28 : vector<8x64xf32>
    %30 = math.exp %29 : vector<8x64xf32>
    %cst_23 = arith.constant 1.000000e+00 : f32
    %31 = vector.broadcast %cst_23 : f32 to vector<8x64xf32>
    %32 = arith.addf %31, %30 : vector<8x64xf32>
    %33 = arith.divf %31, %32 : vector<8x64xf32>
    %34 = vector.extract_strided_slice %21 {offsets = [0, 128], sizes = [8, 64], strides = [1, 1]} : vector<8x256xf32> to vector<8x64xf32>
    %35 = math.tanh %34 : vector<8x64xf32>
    %36 = vector.extract_strided_slice %21 {offsets = [0, 192], sizes = [8, 64], strides = [1, 1]} : vector<8x256xf32> to vector<8x64xf32>
    %37 = arith.negf %36 : vector<8x64xf32>
    %38 = math.exp %37 : vector<8x64xf32>
    %cst_24 = arith.constant 1.000000e+00 : f32
    %39 = vector.broadcast %cst_24 : f32 to vector<8x64xf32>
    %40 = arith.addf %39, %38 : vector<8x64xf32>
    %41 = arith.divf %39, %40 : vector<8x64xf32>
    %42 = arith.mulf %33, %12 : vector<8x64xf32>
    %43 = arith.mulf %27, %35 : vector<8x64xf32>
    %44 = arith.addf %42, %43 : vector<8x64xf32>
    %45 = math.tanh %44 : vector<8x64xf32>
    %46 = arith.mulf %41, %45 : vector<8x64xf32>
    %47 = arith.truncf %46 : vector<8x64xf32> to vector<8x64xbf16>
    %cst_25 = arith.constant dense<0.000000e+00> : vector<8x128xf32>
    %48 = tpu.matmul %47, %1, %cst_25 {dimension_numbers = #tpu.dot_dimension_numbers<[1], [0], [0], [1], [0, 0, 1, 1], [], []>} : vector<8x64xbf16>, vector<64x128xbf16>, vector<8x128xf32> -> vector<8x128xf32>
    %49 = arith.truncf %13 : vector<8x32xf32> to vector<8x32xbf16>
    %cst_26 = arith.constant dense<0.000000e+00> : vector<8x128xf32>
    %50 = tpu.matmul %49, %2, %cst_26 {dimension_numbers = #tpu.dot_dimension_numbers<[1], [0], [0], [1], [0, 0, 1, 1], [], []>} : vector<8x32xbf16>, vector<32x128xbf16>, vector<8x128xf32> -> vector<8x128xf32>
    %51 = arith.addf %48, %50 : vector<8x128xf32>
    %52 = arith.addf %51, %7 : vector<8x128xf32>
    %53 = vector.extract_strided_slice %52 {offsets = [0, 0], sizes = [8, 32], strides = [1, 1]} : vector<8x128xf32> to vector<8x32xf32>
    %54 = arith.negf %53 : vector<8x32xf32>
    %55 = math.exp %54 : vector<8x32xf32>
    %cst_27 = arith.constant 1.000000e+00 : f32
    %56 = vector.broadcast %cst_27 : f32 to vector<8x32xf32>
    %57 = arith.addf %56, %55 : vector<8x32xf32>
    %58 = arith.divf %56, %57 : vector<8x32xf32>
    %59 = vector.extract_strided_slice %52 {offsets = [0, 32], sizes = [8, 32], strides = [1, 1]} : vector<8x128xf32> to vector<8x32xf32>
    %60 = arith.negf %59 : vector<8x32xf32>
    %61 = math.exp %60 : vector<8x32xf32>
    %cst_28 = arith.constant 1.000000e+00 : f32
    %62 = vector.broadcast %cst_28 : f32 to vector<8x32xf32>
    %63 = arith.addf %62, %61 : vector<8x32xf32>
    %64 = arith.divf %62, %63 : vector<8x32xf32>
    %65 = vector.extract_strided_slice %52 {offsets = [0, 64], sizes = [8, 32], strides = [1, 1]} : vector<8x128xf32> to vector<8x32xf32>
    %66 = math.tanh %65 : vector<8x32xf32>
    %67 = vector.extract_strided_slice %52 {offsets = [0, 96], sizes = [8, 32], strides = [1, 1]} : vector<8x128xf32> to vector<8x32xf32>
    %68 = arith.negf %67 : vector<8x32xf32>
    %69 = math.exp %68 : vector<8x32xf32>
    %cst_29 = arith.constant 1.000000e+00 : f32
    %70 = vector.broadcast %cst_29 : f32 to vector<8x32xf32>
    %71 = arith.addf %70, %69 : vector<8x32xf32>
    %72 = arith.divf %70, %71 : vector<8x32xf32>
    %73 = arith.mulf %64, %14 : vector<8x32xf32>
    %74 = arith.mulf %58, %66 : vector<8x32xf32>
    %75 = arith.addf %73, %74 : vector<8x32xf32>
    %76 = math.tanh %75 : vector<8x32xf32>
    %77 = arith.mulf %72, %76 : vector<8x32xf32>
    %78 = arith.truncf %77 : vector<8x32xf32> to vector<8x32xbf16>
    %cst_30 = arith.constant dense<0.000000e+00> : vector<8x64xf32>
    %79 = tpu.matmul %78, %3, %cst_30 {dimension_numbers = #tpu.dot_dimension_numbers<[1], [0], [0], [1], [0, 0, 1, 1], [], []>} : vector<8x32xbf16>, vector<32x64xbf16>, vector<8x64xf32> -> vector<8x64xf32>
    %80 = arith.truncf %15 : vector<8x16xf32> to vector<8x16xbf16>
    %cst_31 = arith.constant dense<0.000000e+00> : vector<8x64xf32>
    %81 = tpu.matmul %80, %4, %cst_31 {dimension_numbers = #tpu.dot_dimension_numbers<[1], [0], [0], [1], [0, 0, 1, 1], [], []>} : vector<8x16xbf16>, vector<16x64xbf16>, vector<8x64xf32> -> vector<8x64xf32>
    %82 = arith.addf %79, %81 : vector<8x64xf32>
    %83 = arith.addf %82, %10 : vector<8x64xf32>
    %84 = vector.extract_strided_slice %83 {offsets = [0, 0], sizes = [8, 16], strides = [1, 1]} : vector<8x64xf32> to vector<8x16xf32>
    %85 = arith.negf %84 : vector<8x16xf32>
    %86 = math.exp %85 : vector<8x16xf32>
    %cst_32 = arith.constant 1.000000e+00 : f32
    %87 = vector.broadcast %cst_32 : f32 to vector<8x16xf32>
    %88 = arith.addf %87, %86 : vector<8x16xf32>
    %89 = arith.divf %87, %88 : vector<8x16xf32>
    %90 = vector.extract_strided_slice %83 {offsets = [0, 16], sizes = [8, 16], strides = [1, 1]} : vector<8x64xf32> to vector<8x16xf32>
    %91 = arith.negf %90 : vector<8x16xf32>
    %92 = math.exp %91 : vector<8x16xf32>
    %cst_33 = arith.constant 1.000000e+00 : f32
    %93 = vector.broadcast %cst_33 : f32 to vector<8x16xf32>
    %94 = arith.addf %93, %92 : vector<8x16xf32>
    %95 = arith.divf %93, %94 : vector<8x16xf32>
    %96 = vector.extract_strided_slice %83 {offsets = [0, 32], sizes = [8, 16], strides = [1, 1]} : vector<8x64xf32> to vector<8x16xf32>
    %97 = math.tanh %96 : vector<8x16xf32>
    %98 = vector.extract_strided_slice %83 {offsets = [0, 48], sizes = [8, 16], strides = [1, 1]} : vector<8x64xf32> to vector<8x16xf32>
    %99 = arith.negf %98 : vector<8x16xf32>
    %100 = math.exp %99 : vector<8x16xf32>
    %cst_34 = arith.constant 1.000000e+00 : f32
    %101 = vector.broadcast %cst_34 : f32 to vector<8x16xf32>
    %102 = arith.addf %101, %100 : vector<8x16xf32>
    %103 = arith.divf %101, %102 : vector<8x16xf32>
    %104 = arith.mulf %95, %16 : vector<8x16xf32>
    %105 = arith.mulf %89, %97 : vector<8x16xf32>
    %106 = arith.addf %104, %105 : vector<8x16xf32>
    %107 = math.tanh %106 : vector<8x16xf32>
    %108 = arith.mulf %103, %107 : vector<8x16xf32>
    %c1 = arith.constant 1 : index
    %c0_35 = arith.constant 0 : index
    %c0_36 = arith.constant 0 : index
    %109 = vector.load %arg0[%c1, %c0_35, %c0_36] : memref<8x8x256xf32, #tpu.memory_space<vmem>>, vector<1x8x256xf32>
    %110 = vector.shape_cast %109 : vector<1x8x256xf32> to vector<8x256xf32>
    %111 = arith.truncf %46 : vector<8x64xf32> to vector<8x64xbf16>
    %cst_37 = arith.constant dense<0.000000e+00> : vector<8x256xf32>
    %112 = tpu.matmul %111, %0, %cst_37 {dimension_numbers = #tpu.dot_dimension_numbers<[1], [0], [0], [1], [0, 0, 1, 1], [], []>} : vector<8x64xbf16>, vector<64x256xbf16>, vector<8x256xf32> -> vector<8x256xf32>
    %113 = arith.addf %110, %112 : vector<8x256xf32>
    %114 = vector.extract_strided_slice %113 {offsets = [0, 0], sizes = [8, 64], strides = [1, 1]} : vector<8x256xf32> to vector<8x64xf32>
    %115 = arith.negf %114 : vector<8x64xf32>
    %116 = math.exp %115 : vector<8x64xf32>
    %cst_38 = arith.constant 1.000000e+00 : f32
    %117 = vector.broadcast %cst_38 : f32 to vector<8x64xf32>
    %118 = arith.addf %117, %116 : vector<8x64xf32>
    %119 = arith.divf %117, %118 : vector<8x64xf32>
    %120 = vector.extract_strided_slice %113 {offsets = [0, 64], sizes = [8, 64], strides = [1, 1]} : vector<8x256xf32> to vector<8x64xf32>
    %121 = arith.negf %120 : vector<8x64xf32>
    %122 = math.exp %121 : vector<8x64xf32>
    %cst_39 = arith.constant 1.000000e+00 : f32
    %123 = vector.broadcast %cst_39 : f32 to vector<8x64xf32>
    %124 = arith.addf %123, %122 : vector<8x64xf32>
    %125 = arith.divf %123, %124 : vector<8x64xf32>
    %126 = vector.extract_strided_slice %113 {offsets = [0, 128], sizes = [8, 64], strides = [1, 1]} : vector<8x256xf32> to vector<8x64xf32>
    %127 = math.tanh %126 : vector<8x64xf32>
    %128 = vector.extract_strided_slice %113 {offsets = [0, 192], sizes = [8, 64], strides = [1, 1]} : vector<8x256xf32> to vector<8x64xf32>
    %129 = arith.negf %128 : vector<8x64xf32>
    %130 = math.exp %129 : vector<8x64xf32>
    %cst_40 = arith.constant 1.000000e+00 : f32
    %131 = vector.broadcast %cst_40 : f32 to vector<8x64xf32>
    %132 = arith.addf %131, %130 : vector<8x64xf32>
    %133 = arith.divf %131, %132 : vector<8x64xf32>
    %134 = arith.mulf %125, %44 : vector<8x64xf32>
    %135 = arith.mulf %119, %127 : vector<8x64xf32>
    %136 = arith.addf %134, %135 : vector<8x64xf32>
    %137 = math.tanh %136 : vector<8x64xf32>
    %138 = arith.mulf %133, %137 : vector<8x64xf32>
    %139 = arith.truncf %138 : vector<8x64xf32> to vector<8x64xbf16>
    %cst_41 = arith.constant dense<0.000000e+00> : vector<8x128xf32>
    %140 = tpu.matmul %139, %1, %cst_41 {dimension_numbers = #tpu.dot_dimension_numbers<[1], [0], [0], [1], [0, 0, 1, 1], [], []>} : vector<8x64xbf16>, vector<64x128xbf16>, vector<8x128xf32> -> vector<8x128xf32>
    %141 = arith.truncf %77 : vector<8x32xf32> to vector<8x32xbf16>
    %cst_42 = arith.constant dense<0.000000e+00> : vector<8x128xf32>
    %142 = tpu.matmul %141, %2, %cst_42 {dimension_numbers = #tpu.dot_dimension_numbers<[1], [0], [0], [1], [0, 0, 1, 1], [], []>} : vector<8x32xbf16>, vector<32x128xbf16>, vector<8x128xf32> -> vector<8x128xf32>
    %143 = arith.addf %140, %142 : vector<8x128xf32>
    %144 = arith.addf %143, %7 : vector<8x128xf32>
    %145 = vector.extract_strided_slice %144 {offsets = [0, 0], sizes = [8, 32], strides = [1, 1]} : vector<8x128xf32> to vector<8x32xf32>
    %146 = arith.negf %145 : vector<8x32xf32>
    %147 = math.exp %146 : vector<8x32xf32>
    %cst_43 = arith.constant 1.000000e+00 : f32
    %148 = vector.broadcast %cst_43 : f32 to vector<8x32xf32>
    %149 = arith.addf %148, %147 : vector<8x32xf32>
    %150 = arith.divf %148, %149 : vector<8x32xf32>
    %151 = vector.extract_strided_slice %144 {offsets = [0, 32], sizes = [8, 32], strides = [1, 1]} : vector<8x128xf32> to vector<8x32xf32>
    %152 = arith.negf %151 : vector<8x32xf32>
    %153 = math.exp %152 : vector<8x32xf32>
    %cst_44 = arith.constant 1.000000e+00 : f32
    %154 = vector.broadcast %cst_44 : f32 to vector<8x32xf32>
    %155 = arith.addf %154, %153 : vector<8x32xf32>
    %156 = arith.divf %154, %155 : vector<8x32xf32>
    %157 = vector.extract_strided_slice %144 {offsets = [0, 64], sizes = [8, 32], strides = [1, 1]} : vector<8x128xf32> to vector<8x32xf32>
    %158 = math.tanh %157 : vector<8x32xf32>
    %159 = vector.extract_strided_slice %144 {offsets = [0, 96], sizes = [8, 32], strides = [1, 1]} : vector<8x128xf32> to vector<8x32xf32>
    %160 = arith.negf %159 : vector<8x32xf32>
    %161 = math.exp %160 : vector<8x32xf32>
    %cst_45 = arith.constant 1.000000e+00 : f32
    %162 = vector.broadcast %cst_45 : f32 to vector<8x32xf32>
    %163 = arith.addf %162, %161 : vector<8x32xf32>
    %164 = arith.divf %162, %163 : vector<8x32xf32>
    %165 = arith.mulf %156, %75 : vector<8x32xf32>
    %166 = arith.mulf %150, %158 : vector<8x32xf32>
    %167 = arith.addf %165, %166 : vector<8x32xf32>
    %168 = math.tanh %167 : vector<8x32xf32>
    %169 = arith.mulf %164, %168 : vector<8x32xf32>
    %170 = arith.truncf %169 : vector<8x32xf32> to vector<8x32xbf16>
    %cst_46 = arith.constant dense<0.000000e+00> : vector<8x64xf32>
    %171 = tpu.matmul %170, %3, %cst_46 {dimension_numbers = #tpu.dot_dimension_numbers<[1], [0], [0], [1], [0, 0, 1, 1], [], []>} : vector<8x32xbf16>, vector<32x64xbf16>, vector<8x64xf32> -> vector<8x64xf32>
    %172 = arith.truncf %108 : vector<8x16xf32> to vector<8x16xbf16>
    %cst_47 = arith.constant dense<0.000000e+00> : vector<8x64xf32>
    %173 = tpu.matmul %172, %4, %cst_47 {dimension_numbers = #tpu.dot_dimension_numbers<[1], [0], [0], [1], [0, 0, 1, 1], [], []>} : vector<8x16xbf16>, vector<16x64xbf16>, vector<8x64xf32> -> vector<8x64xf32>
    %174 = arith.addf %171, %173 : vector<8x64xf32>
    %175 = arith.addf %174, %10 : vector<8x64xf32>
    %176 = vector.extract_strided_slice %175 {offsets = [0, 0], sizes = [8, 16], strides = [1, 1]} : vector<8x64xf32> to vector<8x16xf32>
    %177 = arith.negf %176 : vector<8x16xf32>
    %178 = math.exp %177 : vector<8x16xf32>
    %cst_48 = arith.constant 1.000000e+00 : f32
    %179 = vector.broadcast %cst_48 : f32 to vector<8x16xf32>
    %180 = arith.addf %179, %178 : vector<8x16xf32>
    %181 = arith.divf %179, %180 : vector<8x16xf32>
    %182 = vector.extract_strided_slice %175 {offsets = [0, 16], sizes = [8, 16], strides = [1, 1]} : vector<8x64xf32> to vector<8x16xf32>
    %183 = arith.negf %182 : vector<8x16xf32>
    %184 = math.exp %183 : vector<8x16xf32>
    %cst_49 = arith.constant 1.000000e+00 : f32
    %185 = vector.broadcast %cst_49 : f32 to vector<8x16xf32>
    %186 = arith.addf %185, %184 : vector<8x16xf32>
    %187 = arith.divf %185, %186 : vector<8x16xf32>
    %188 = vector.extract_strided_slice %175 {offsets = [0, 32], sizes = [8, 16], strides = [1, 1]} : vector<8x64xf32> to vector<8x16xf32>
    %189 = math.tanh %188 : vector<8x16xf32>
    %190 = vector.extract_strided_slice %175 {offsets = [0, 48], sizes = [8, 16], strides = [1, 1]} : vector<8x64xf32> to vector<8x16xf32>
    %191 = arith.negf %190 : vector<8x16xf32>
    %192 = math.exp %191 : vector<8x16xf32>
    %cst_50 = arith.constant 1.000000e+00 : f32
    %193 = vector.broadcast %cst_50 : f32 to vector<8x16xf32>
    %194 = arith.addf %193, %192 : vector<8x16xf32>
    %195 = arith.divf %193, %194 : vector<8x16xf32>
    %196 = arith.mulf %187, %106 : vector<8x16xf32>
    %197 = arith.mulf %181, %189 : vector<8x16xf32>
    %198 = arith.addf %196, %197 : vector<8x16xf32>
    %199 = math.tanh %198 : vector<8x16xf32>
    %200 = arith.mulf %195, %199 : vector<8x16xf32>
    %c2 = arith.constant 2 : index
    %c0_51 = arith.constant 0 : index
    %c0_52 = arith.constant 0 : index
    %201 = vector.load %arg0[%c2, %c0_51, %c0_52] : memref<8x8x256xf32, #tpu.memory_space<vmem>>, vector<1x8x256xf32>
    %202 = vector.shape_cast %201 : vector<1x8x256xf32> to vector<8x256xf32>
    %203 = arith.truncf %138 : vector<8x64xf32> to vector<8x64xbf16>
    %cst_53 = arith.constant dense<0.000000e+00> : vector<8x256xf32>
    %204 = tpu.matmul %203, %0, %cst_53 {dimension_numbers = #tpu.dot_dimension_numbers<[1], [0], [0], [1], [0, 0, 1, 1], [], []>} : vector<8x64xbf16>, vector<64x256xbf16>, vector<8x256xf32> -> vector<8x256xf32>
    %205 = arith.addf %202, %204 : vector<8x256xf32>
    %206 = vector.extract_strided_slice %205 {offsets = [0, 0], sizes = [8, 64], strides = [1, 1]} : vector<8x256xf32> to vector<8x64xf32>
    %207 = arith.negf %206 : vector<8x64xf32>
    %208 = math.exp %207 : vector<8x64xf32>
    %cst_54 = arith.constant 1.000000e+00 : f32
    %209 = vector.broadcast %cst_54 : f32 to vector<8x64xf32>
    %210 = arith.addf %209, %208 : vector<8x64xf32>
    %211 = arith.divf %209, %210 : vector<8x64xf32>
    %212 = vector.extract_strided_slice %205 {offsets = [0, 64], sizes = [8, 64], strides = [1, 1]} : vector<8x256xf32> to vector<8x64xf32>
    %213 = arith.negf %212 : vector<8x64xf32>
    %214 = math.exp %213 : vector<8x64xf32>
    %cst_55 = arith.constant 1.000000e+00 : f32
    %215 = vector.broadcast %cst_55 : f32 to vector<8x64xf32>
    %216 = arith.addf %215, %214 : vector<8x64xf32>
    %217 = arith.divf %215, %216 : vector<8x64xf32>
    %218 = vector.extract_strided_slice %205 {offsets = [0, 128], sizes = [8, 64], strides = [1, 1]} : vector<8x256xf32> to vector<8x64xf32>
    %219 = math.tanh %218 : vector<8x64xf32>
    %220 = vector.extract_strided_slice %205 {offsets = [0, 192], sizes = [8, 64], strides = [1, 1]} : vector<8x256xf32> to vector<8x64xf32>
    %221 = arith.negf %220 : vector<8x64xf32>
    %222 = math.exp %221 : vector<8x64xf32>
    %cst_56 = arith.constant 1.000000e+00 : f32
    %223 = vector.broadcast %cst_56 : f32 to vector<8x64xf32>
    %224 = arith.addf %223, %222 : vector<8x64xf32>
    %225 = arith.divf %223, %224 : vector<8x64xf32>
    %226 = arith.mulf %217, %136 : vector<8x64xf32>
    %227 = arith.mulf %211, %219 : vector<8x64xf32>
    %228 = arith.addf %226, %227 : vector<8x64xf32>
    %229 = math.tanh %228 : vector<8x64xf32>
    %230 = arith.mulf %225, %229 : vector<8x64xf32>
    %231 = arith.truncf %230 : vector<8x64xf32> to vector<8x64xbf16>
    %cst_57 = arith.constant dense<0.000000e+00> : vector<8x128xf32>
    %232 = tpu.matmul %231, %1, %cst_57 {dimension_numbers = #tpu.dot_dimension_numbers<[1], [0], [0], [1], [0, 0, 1, 1], [], []>} : vector<8x64xbf16>, vector<64x128xbf16>, vector<8x128xf32> -> vector<8x128xf32>
    %233 = arith.truncf %169 : vector<8x32xf32> to vector<8x32xbf16>
    %cst_58 = arith.constant dense<0.000000e+00> : vector<8x128xf32>
    %234 = tpu.matmul %233, %2, %cst_58 {dimension_numbers = #tpu.dot_dimension_numbers<[1], [0], [0], [1], [0, 0, 1, 1], [], []>} : vector<8x32xbf16>, vector<32x128xbf16>, vector<8x128xf32> -> vector<8x128xf32>
    %235 = arith.addf %232, %234 : vector<8x128xf32>
    %236 = arith.addf %235, %7 : vector<8x128xf32>
    %237 = vector.extract_strided_slice %236 {offsets = [0, 0], sizes = [8, 32], strides = [1, 1]} : vector<8x128xf32> to vector<8x32xf32>
    %238 = arith.negf %237 : vector<8x32xf32>
    %239 = math.exp %238 : vector<8x32xf32>
    %cst_59 = arith.constant 1.000000e+00 : f32
    %240 = vector.broadcast %cst_59 : f32 to vector<8x32xf32>
    %241 = arith.addf %240, %239 : vector<8x32xf32>
    %242 = arith.divf %240, %241 : vector<8x32xf32>
    %243 = vector.extract_strided_slice %236 {offsets = [0, 32], sizes = [8, 32], strides = [1, 1]} : vector<8x128xf32> to vector<8x32xf32>
    %244 = arith.negf %243 : vector<8x32xf32>
    %245 = math.exp %244 : vector<8x32xf32>
    %cst_60 = arith.constant 1.000000e+00 : f32
    %246 = vector.broadcast %cst_60 : f32 to vector<8x32xf32>
    %247 = arith.addf %246, %245 : vector<8x32xf32>
    %248 = arith.divf %246, %247 : vector<8x32xf32>
    %249 = vector.extract_strided_slice %236 {offsets = [0, 64], sizes = [8, 32], strides = [1, 1]} : vector<8x128xf32> to vector<8x32xf32>
    %250 = math.tanh %249 : vector<8x32xf32>
    %251 = vector.extract_strided_slice %236 {offsets = [0, 96], sizes = [8, 32], strides = [1, 1]} : vector<8x128xf32> to vector<8x32xf32>
    %252 = arith.negf %251 : vector<8x32xf32>
    %253 = math.exp %252 : vector<8x32xf32>
    %cst_61 = arith.constant 1.000000e+00 : f32
    %254 = vector.broadcast %cst_61 : f32 to vector<8x32xf32>
    %255 = arith.addf %254, %253 : vector<8x32xf32>
    %256 = arith.divf %254, %255 : vector<8x32xf32>
    %257 = arith.mulf %248, %167 : vector<8x32xf32>
    %258 = arith.mulf %242, %250 : vector<8x32xf32>
    %259 = arith.addf %257, %258 : vector<8x32xf32>
    %260 = math.tanh %259 : vector<8x32xf32>
    %261 = arith.mulf %256, %260 : vector<8x32xf32>
    %262 = arith.truncf %261 : vector<8x32xf32> to vector<8x32xbf16>
    %cst_62 = arith.constant dense<0.000000e+00> : vector<8x64xf32>
    %263 = tpu.matmul %262, %3, %cst_62 {dimension_numbers = #tpu.dot_dimension_numbers<[1], [0], [0], [1], [0, 0, 1, 1], [], []>} : vector<8x32xbf16>, vector<32x64xbf16>, vector<8x64xf32> -> vector<8x64xf32>
    %264 = arith.truncf %200 : vector<8x16xf32> to vector<8x16xbf16>
    %cst_63 = arith.constant dense<0.000000e+00> : vector<8x64xf32>
    %265 = tpu.matmul %264, %4, %cst_63 {dimension_numbers = #tpu.dot_dimension_numbers<[1], [0], [0], [1], [0, 0, 1, 1], [], []>} : vector<8x16xbf16>, vector<16x64xbf16>, vector<8x64xf32> -> vector<8x64xf32>
    %266 = arith.addf %263, %265 : vector<8x64xf32>
    %267 = arith.addf %266, %10 : vector<8x64xf32>
    %268 = vector.extract_strided_slice %267 {offsets = [0, 0], sizes = [8, 16], strides = [1, 1]} : vector<8x64xf32> to vector<8x16xf32>
    %269 = arith.negf %268 : vector<8x16xf32>
    %270 = math.exp %269 : vector<8x16xf32>
    %cst_64 = arith.constant 1.000000e+00 : f32
    %271 = vector.broadcast %cst_64 : f32 to vector<8x16xf32>
    %272 = arith.addf %271, %270 : vector<8x16xf32>
    %273 = arith.divf %271, %272 : vector<8x16xf32>
    %274 = vector.extract_strided_slice %267 {offsets = [0, 16], sizes = [8, 16], strides = [1, 1]} : vector<8x64xf32> to vector<8x16xf32>
    %275 = arith.negf %274 : vector<8x16xf32>
    %276 = math.exp %275 : vector<8x16xf32>
    %cst_65 = arith.constant 1.000000e+00 : f32
    %277 = vector.broadcast %cst_65 : f32 to vector<8x16xf32>
    %278 = arith.addf %277, %276 : vector<8x16xf32>
    %279 = arith.divf %277, %278 : vector<8x16xf32>
    %280 = vector.extract_strided_slice %267 {offsets = [0, 32], sizes = [8, 16], strides = [1, 1]} : vector<8x64xf32> to vector<8x16xf32>
    %281 = math.tanh %280 : vector<8x16xf32>
    %282 = vector.extract_strided_slice %267 {offsets = [0, 48], sizes = [8, 16], strides = [1, 1]} : vector<8x64xf32> to vector<8x16xf32>
    %283 = arith.negf %282 : vector<8x16xf32>
    %284 = math.exp %283 : vector<8x16xf32>
    %cst_66 = arith.constant 1.000000e+00 : f32
    %285 = vector.broadcast %cst_66 : f32 to vector<8x16xf32>
    %286 = arith.addf %285, %284 : vector<8x16xf32>
    %287 = arith.divf %285, %286 : vector<8x16xf32>
    %288 = arith.mulf %279, %198 : vector<8x16xf32>
    %289 = arith.mulf %273, %281 : vector<8x16xf32>
    %290 = arith.addf %288, %289 : vector<8x16xf32>
    %291 = math.tanh %290 : vector<8x16xf32>
    %292 = arith.mulf %287, %291 : vector<8x16xf32>
    %c3 = arith.constant 3 : index
    %c0_67 = arith.constant 0 : index
    %c0_68 = arith.constant 0 : index
    %293 = vector.load %arg0[%c3, %c0_67, %c0_68] : memref<8x8x256xf32, #tpu.memory_space<vmem>>, vector<1x8x256xf32>
    %294 = vector.shape_cast %293 : vector<1x8x256xf32> to vector<8x256xf32>
    %295 = arith.truncf %230 : vector<8x64xf32> to vector<8x64xbf16>
    %cst_69 = arith.constant dense<0.000000e+00> : vector<8x256xf32>
    %296 = tpu.matmul %295, %0, %cst_69 {dimension_numbers = #tpu.dot_dimension_numbers<[1], [0], [0], [1], [0, 0, 1, 1], [], []>} : vector<8x64xbf16>, vector<64x256xbf16>, vector<8x256xf32> -> vector<8x256xf32>
    %297 = arith.addf %294, %296 : vector<8x256xf32>
    %298 = vector.extract_strided_slice %297 {offsets = [0, 0], sizes = [8, 64], strides = [1, 1]} : vector<8x256xf32> to vector<8x64xf32>
    %299 = arith.negf %298 : vector<8x64xf32>
    %300 = math.exp %299 : vector<8x64xf32>
    %cst_70 = arith.constant 1.000000e+00 : f32
    %301 = vector.broadcast %cst_70 : f32 to vector<8x64xf32>
    %302 = arith.addf %301, %300 : vector<8x64xf32>
    %303 = arith.divf %301, %302 : vector<8x64xf32>
    %304 = vector.extract_strided_slice %297 {offsets = [0, 64], sizes = [8, 64], strides = [1, 1]} : vector<8x256xf32> to vector<8x64xf32>
    %305 = arith.negf %304 : vector<8x64xf32>
    %306 = math.exp %305 : vector<8x64xf32>
    %cst_71 = arith.constant 1.000000e+00 : f32
    %307 = vector.broadcast %cst_71 : f32 to vector<8x64xf32>
    %308 = arith.addf %307, %306 : vector<8x64xf32>
    %309 = arith.divf %307, %308 : vector<8x64xf32>
    %310 = vector.extract_strided_slice %297 {offsets = [0, 128], sizes = [8, 64], strides = [1, 1]} : vector<8x256xf32> to vector<8x64xf32>
    %311 = math.tanh %310 : vector<8x64xf32>
    %312 = vector.extract_strided_slice %297 {offsets = [0, 192], sizes = [8, 64], strides = [1, 1]} : vector<8x256xf32> to vector<8x64xf32>
    %313 = arith.negf %312 : vector<8x64xf32>
    %314 = math.exp %313 : vector<8x64xf32>
    %cst_72 = arith.constant 1.000000e+00 : f32
    %315 = vector.broadcast %cst_72 : f32 to vector<8x64xf32>
    %316 = arith.addf %315, %314 : vector<8x64xf32>
    %317 = arith.divf %315, %316 : vector<8x64xf32>
    %318 = arith.mulf %309, %228 : vector<8x64xf32>
    %319 = arith.mulf %303, %311 : vector<8x64xf32>
    %320 = arith.addf %318, %319 : vector<8x64xf32>
    %321 = math.tanh %320 : vector<8x64xf32>
    %322 = arith.mulf %317, %321 : vector<8x64xf32>
    %323 = arith.truncf %322 : vector<8x64xf32> to vector<8x64xbf16>
    %cst_73 = arith.constant dense<0.000000e+00> : vector<8x128xf32>
    %324 = tpu.matmul %323, %1, %cst_73 {dimension_numbers = #tpu.dot_dimension_numbers<[1], [0], [0], [1], [0, 0, 1, 1], [], []>} : vector<8x64xbf16>, vector<64x128xbf16>, vector<8x128xf32> -> vector<8x128xf32>
    %325 = arith.truncf %261 : vector<8x32xf32> to vector<8x32xbf16>
    %cst_74 = arith.constant dense<0.000000e+00> : vector<8x128xf32>
    %326 = tpu.matmul %325, %2, %cst_74 {dimension_numbers = #tpu.dot_dimension_numbers<[1], [0], [0], [1], [0, 0, 1, 1], [], []>} : vector<8x32xbf16>, vector<32x128xbf16>, vector<8x128xf32> -> vector<8x128xf32>
    %327 = arith.addf %324, %326 : vector<8x128xf32>
    %328 = arith.addf %327, %7 : vector<8x128xf32>
    %329 = vector.extract_strided_slice %328 {offsets = [0, 0], sizes = [8, 32], strides = [1, 1]} : vector<8x128xf32> to vector<8x32xf32>
    %330 = arith.negf %329 : vector<8x32xf32>
    %331 = math.exp %330 : vector<8x32xf32>
    %cst_75 = arith.constant 1.000000e+00 : f32
    %332 = vector.broadcast %cst_75 : f32 to vector<8x32xf32>
    %333 = arith.addf %332, %331 : vector<8x32xf32>
    %334 = arith.divf %332, %333 : vector<8x32xf32>
    %335 = vector.extract_strided_slice %328 {offsets = [0, 32], sizes = [8, 32], strides = [1, 1]} : vector<8x128xf32> to vector<8x32xf32>
    %336 = arith.negf %335 : vector<8x32xf32>
    %337 = math.exp %336 : vector<8x32xf32>
    %cst_76 = arith.constant 1.000000e+00 : f32
    %338 = vector.broadcast %cst_76 : f32 to vector<8x32xf32>
    %339 = arith.addf %338, %337 : vector<8x32xf32>
    %340 = arith.divf %338, %339 : vector<8x32xf32>
    %341 = vector.extract_strided_slice %328 {offsets = [0, 64], sizes = [8, 32], strides = [1, 1]} : vector<8x128xf32> to vector<8x32xf32>
    %342 = math.tanh %341 : vector<8x32xf32>
    %343 = vector.extract_strided_slice %328 {offsets = [0, 96], sizes = [8, 32], strides = [1, 1]} : vector<8x128xf32> to vector<8x32xf32>
    %344 = arith.negf %343 : vector<8x32xf32>
    %345 = math.exp %344 : vector<8x32xf32>
    %cst_77 = arith.constant 1.000000e+00 : f32
    %346 = vector.broadcast %cst_77 : f32 to vector<8x32xf32>
    %347 = arith.addf %346, %345 : vector<8x32xf32>
    %348 = arith.divf %346, %347 : vector<8x32xf32>
    %349 = arith.mulf %340, %259 : vector<8x32xf32>
    %350 = arith.mulf %334, %342 : vector<8x32xf32>
    %351 = arith.addf %349, %350 : vector<8x32xf32>
    %352 = math.tanh %351 : vector<8x32xf32>
    %353 = arith.mulf %348, %352 : vector<8x32xf32>
    %354 = arith.truncf %353 : vector<8x32xf32> to vector<8x32xbf16>
    %cst_78 = arith.constant dense<0.000000e+00> : vector<8x64xf32>
    %355 = tpu.matmul %354, %3, %cst_78 {dimension_numbers = #tpu.dot_dimension_numbers<[1], [0], [0], [1], [0, 0, 1, 1], [], []>} : vector<8x32xbf16>, vector<32x64xbf16>, vector<8x64xf32> -> vector<8x64xf32>
    %356 = arith.truncf %292 : vector<8x16xf32> to vector<8x16xbf16>
    %cst_79 = arith.constant dense<0.000000e+00> : vector<8x64xf32>
    %357 = tpu.matmul %356, %4, %cst_79 {dimension_numbers = #tpu.dot_dimension_numbers<[1], [0], [0], [1], [0, 0, 1, 1], [], []>} : vector<8x16xbf16>, vector<16x64xbf16>, vector<8x64xf32> -> vector<8x64xf32>
    %358 = arith.addf %355, %357 : vector<8x64xf32>
    %359 = arith.addf %358, %10 : vector<8x64xf32>
    %360 = vector.extract_strided_slice %359 {offsets = [0, 0], sizes = [8, 16], strides = [1, 1]} : vector<8x64xf32> to vector<8x16xf32>
    %361 = arith.negf %360 : vector<8x16xf32>
    %362 = math.exp %361 : vector<8x16xf32>
    %cst_80 = arith.constant 1.000000e+00 : f32
    %363 = vector.broadcast %cst_80 : f32 to vector<8x16xf32>
    %364 = arith.addf %363, %362 : vector<8x16xf32>
    %365 = arith.divf %363, %364 : vector<8x16xf32>
    %366 = vector.extract_strided_slice %359 {offsets = [0, 16], sizes = [8, 16], strides = [1, 1]} : vector<8x64xf32> to vector<8x16xf32>
    %367 = arith.negf %366 : vector<8x16xf32>
    %368 = math.exp %367 : vector<8x16xf32>
    %cst_81 = arith.constant 1.000000e+00 : f32
    %369 = vector.broadcast %cst_81 : f32 to vector<8x16xf32>
    %370 = arith.addf %369, %368 : vector<8x16xf32>
    %371 = arith.divf %369, %370 : vector<8x16xf32>
    %372 = vector.extract_strided_slice %359 {offsets = [0, 32], sizes = [8, 16], strides = [1, 1]} : vector<8x64xf32> to vector<8x16xf32>
    %373 = math.tanh %372 : vector<8x16xf32>
    %374 = vector.extract_strided_slice %359 {offsets = [0, 48], sizes = [8, 16], strides = [1, 1]} : vector<8x64xf32> to vector<8x16xf32>
    %375 = arith.negf %374 : vector<8x16xf32>
    %376 = math.exp %375 : vector<8x16xf32>
    %cst_82 = arith.constant 1.000000e+00 : f32
    %377 = vector.broadcast %cst_82 : f32 to vector<8x16xf32>
    %378 = arith.addf %377, %376 : vector<8x16xf32>
    %379 = arith.divf %377, %378 : vector<8x16xf32>
    %380 = arith.mulf %371, %290 : vector<8x16xf32>
    %381 = arith.mulf %365, %373 : vector<8x16xf32>
    %382 = arith.addf %380, %381 : vector<8x16xf32>
    %383 = math.tanh %382 : vector<8x16xf32>
    %384 = arith.mulf %379, %383 : vector<8x16xf32>
    %c4 = arith.constant 4 : index
    %c0_83 = arith.constant 0 : index
    %c0_84 = arith.constant 0 : index
    %385 = vector.load %arg0[%c4, %c0_83, %c0_84] : memref<8x8x256xf32, #tpu.memory_space<vmem>>, vector<1x8x256xf32>
    %386 = vector.shape_cast %385 : vector<1x8x256xf32> to vector<8x256xf32>
    %387 = arith.truncf %322 : vector<8x64xf32> to vector<8x64xbf16>
    %cst_85 = arith.constant dense<0.000000e+00> : vector<8x256xf32>
    %388 = tpu.matmul %387, %0, %cst_85 {dimension_numbers = #tpu.dot_dimension_numbers<[1], [0], [0], [1], [0, 0, 1, 1], [], []>} : vector<8x64xbf16>, vector<64x256xbf16>, vector<8x256xf32> -> vector<8x256xf32>
    %389 = arith.addf %386, %388 : vector<8x256xf32>
    %390 = vector.extract_strided_slice %389 {offsets = [0, 0], sizes = [8, 64], strides = [1, 1]} : vector<8x256xf32> to vector<8x64xf32>
    %391 = arith.negf %390 : vector<8x64xf32>
    %392 = math.exp %391 : vector<8x64xf32>
    %cst_86 = arith.constant 1.000000e+00 : f32
    %393 = vector.broadcast %cst_86 : f32 to vector<8x64xf32>
    %394 = arith.addf %393, %392 : vector<8x64xf32>
    %395 = arith.divf %393, %394 : vector<8x64xf32>
    %396 = vector.extract_strided_slice %389 {offsets = [0, 64], sizes = [8, 64], strides = [1, 1]} : vector<8x256xf32> to vector<8x64xf32>
    %397 = arith.negf %396 : vector<8x64xf32>
    %398 = math.exp %397 : vector<8x64xf32>
    %cst_87 = arith.constant 1.000000e+00 : f32
    %399 = vector.broadcast %cst_87 : f32 to vector<8x64xf32>
    %400 = arith.addf %399, %398 : vector<8x64xf32>
    %401 = arith.divf %399, %400 : vector<8x64xf32>
    %402 = vector.extract_strided_slice %389 {offsets = [0, 128], sizes = [8, 64], strides = [1, 1]} : vector<8x256xf32> to vector<8x64xf32>
    %403 = math.tanh %402 : vector<8x64xf32>
    %404 = vector.extract_strided_slice %389 {offsets = [0, 192], sizes = [8, 64], strides = [1, 1]} : vector<8x256xf32> to vector<8x64xf32>
    %405 = arith.negf %404 : vector<8x64xf32>
    %406 = math.exp %405 : vector<8x64xf32>
    %cst_88 = arith.constant 1.000000e+00 : f32
    %407 = vector.broadcast %cst_88 : f32 to vector<8x64xf32>
    %408 = arith.addf %407, %406 : vector<8x64xf32>
    %409 = arith.divf %407, %408 : vector<8x64xf32>
    %410 = arith.mulf %401, %320 : vector<8x64xf32>
    %411 = arith.mulf %395, %403 : vector<8x64xf32>
    %412 = arith.addf %410, %411 : vector<8x64xf32>
    %413 = math.tanh %412 : vector<8x64xf32>
    %414 = arith.mulf %409, %413 : vector<8x64xf32>
    %415 = arith.truncf %414 : vector<8x64xf32> to vector<8x64xbf16>
    %cst_89 = arith.constant dense<0.000000e+00> : vector<8x128xf32>
    %416 = tpu.matmul %415, %1, %cst_89 {dimension_numbers = #tpu.dot_dimension_numbers<[1], [0], [0], [1], [0, 0, 1, 1], [], []>} : vector<8x64xbf16>, vector<64x128xbf16>, vector<8x128xf32> -> vector<8x128xf32>
    %417 = arith.truncf %353 : vector<8x32xf32> to vector<8x32xbf16>
    %cst_90 = arith.constant dense<0.000000e+00> : vector<8x128xf32>
    %418 = tpu.matmul %417, %2, %cst_90 {dimension_numbers = #tpu.dot_dimension_numbers<[1], [0], [0], [1], [0, 0, 1, 1], [], []>} : vector<8x32xbf16>, vector<32x128xbf16>, vector<8x128xf32> -> vector<8x128xf32>
    %419 = arith.addf %416, %418 : vector<8x128xf32>
    %420 = arith.addf %419, %7 : vector<8x128xf32>
    %421 = vector.extract_strided_slice %420 {offsets = [0, 0], sizes = [8, 32], strides = [1, 1]} : vector<8x128xf32> to vector<8x32xf32>
    %422 = arith.negf %421 : vector<8x32xf32>
    %423 = math.exp %422 : vector<8x32xf32>
    %cst_91 = arith.constant 1.000000e+00 : f32
    %424 = vector.broadcast %cst_91 : f32 to vector<8x32xf32>
    %425 = arith.addf %424, %423 : vector<8x32xf32>
    %426 = arith.divf %424, %425 : vector<8x32xf32>
    %427 = vector.extract_strided_slice %420 {offsets = [0, 32], sizes = [8, 32], strides = [1, 1]} : vector<8x128xf32> to vector<8x32xf32>
    %428 = arith.negf %427 : vector<8x32xf32>
    %429 = math.exp %428 : vector<8x32xf32>
    %cst_92 = arith.constant 1.000000e+00 : f32
    %430 = vector.broadcast %cst_92 : f32 to vector<8x32xf32>
    %431 = arith.addf %430, %429 : vector<8x32xf32>
    %432 = arith.divf %430, %431 : vector<8x32xf32>
    %433 = vector.extract_strided_slice %420 {offsets = [0, 64], sizes = [8, 32], strides = [1, 1]} : vector<8x128xf32> to vector<8x32xf32>
    %434 = math.tanh %433 : vector<8x32xf32>
    %435 = vector.extract_strided_slice %420 {offsets = [0, 96], sizes = [8, 32], strides = [1, 1]} : vector<8x128xf32> to vector<8x32xf32>
    %436 = arith.negf %435 : vector<8x32xf32>
    %437 = math.exp %436 : vector<8x32xf32>
    %cst_93 = arith.constant 1.000000e+00 : f32
    %438 = vector.broadcast %cst_93 : f32 to vector<8x32xf32>
    %439 = arith.addf %438, %437 : vector<8x32xf32>
    %440 = arith.divf %438, %439 : vector<8x32xf32>
    %441 = arith.mulf %432, %351 : vector<8x32xf32>
    %442 = arith.mulf %426, %434 : vector<8x32xf32>
    %443 = arith.addf %441, %442 : vector<8x32xf32>
    %444 = math.tanh %443 : vector<8x32xf32>
    %445 = arith.mulf %440, %444 : vector<8x32xf32>
    %446 = arith.truncf %445 : vector<8x32xf32> to vector<8x32xbf16>
    %cst_94 = arith.constant dense<0.000000e+00> : vector<8x64xf32>
    %447 = tpu.matmul %446, %3, %cst_94 {dimension_numbers = #tpu.dot_dimension_numbers<[1], [0], [0], [1], [0, 0, 1, 1], [], []>} : vector<8x32xbf16>, vector<32x64xbf16>, vector<8x64xf32> -> vector<8x64xf32>
    %448 = arith.truncf %384 : vector<8x16xf32> to vector<8x16xbf16>
    %cst_95 = arith.constant dense<0.000000e+00> : vector<8x64xf32>
    %449 = tpu.matmul %448, %4, %cst_95 {dimension_numbers = #tpu.dot_dimension_numbers<[1], [0], [0], [1], [0, 0, 1, 1], [], []>} : vector<8x16xbf16>, vector<16x64xbf16>, vector<8x64xf32> -> vector<8x64xf32>
    %450 = arith.addf %447, %449 : vector<8x64xf32>
    %451 = arith.addf %450, %10 : vector<8x64xf32>
    %452 = vector.extract_strided_slice %451 {offsets = [0, 0], sizes = [8, 16], strides = [1, 1]} : vector<8x64xf32> to vector<8x16xf32>
    %453 = arith.negf %452 : vector<8x16xf32>
    %454 = math.exp %453 : vector<8x16xf32>
    %cst_96 = arith.constant 1.000000e+00 : f32
    %455 = vector.broadcast %cst_96 : f32 to vector<8x16xf32>
    %456 = arith.addf %455, %454 : vector<8x16xf32>
    %457 = arith.divf %455, %456 : vector<8x16xf32>
    %458 = vector.extract_strided_slice %451 {offsets = [0, 16], sizes = [8, 16], strides = [1, 1]} : vector<8x64xf32> to vector<8x16xf32>
    %459 = arith.negf %458 : vector<8x16xf32>
    %460 = math.exp %459 : vector<8x16xf32>
    %cst_97 = arith.constant 1.000000e+00 : f32
    %461 = vector.broadcast %cst_97 : f32 to vector<8x16xf32>
    %462 = arith.addf %461, %460 : vector<8x16xf32>
    %463 = arith.divf %461, %462 : vector<8x16xf32>
    %464 = vector.extract_strided_slice %451 {offsets = [0, 32], sizes = [8, 16], strides = [1, 1]} : vector<8x64xf32> to vector<8x16xf32>
    %465 = math.tanh %464 : vector<8x16xf32>
    %466 = vector.extract_strided_slice %451 {offsets = [0, 48], sizes = [8, 16], strides = [1, 1]} : vector<8x64xf32> to vector<8x16xf32>
    %467 = arith.negf %466 : vector<8x16xf32>
    %468 = math.exp %467 : vector<8x16xf32>
    %cst_98 = arith.constant 1.000000e+00 : f32
    %469 = vector.broadcast %cst_98 : f32 to vector<8x16xf32>
    %470 = arith.addf %469, %468 : vector<8x16xf32>
    %471 = arith.divf %469, %470 : vector<8x16xf32>
    %472 = arith.mulf %463, %382 : vector<8x16xf32>
    %473 = arith.mulf %457, %465 : vector<8x16xf32>
    %474 = arith.addf %472, %473 : vector<8x16xf32>
    %475 = math.tanh %474 : vector<8x16xf32>
    %476 = arith.mulf %471, %475 : vector<8x16xf32>
    %c5 = arith.constant 5 : index
    %c0_99 = arith.constant 0 : index
    %c0_100 = arith.constant 0 : index
    %477 = vector.load %arg0[%c5, %c0_99, %c0_100] : memref<8x8x256xf32, #tpu.memory_space<vmem>>, vector<1x8x256xf32>
    %478 = vector.shape_cast %477 : vector<1x8x256xf32> to vector<8x256xf32>
    %479 = arith.truncf %414 : vector<8x64xf32> to vector<8x64xbf16>
    %cst_101 = arith.constant dense<0.000000e+00> : vector<8x256xf32>
    %480 = tpu.matmul %479, %0, %cst_101 {dimension_numbers = #tpu.dot_dimension_numbers<[1], [0], [0], [1], [0, 0, 1, 1], [], []>} : vector<8x64xbf16>, vector<64x256xbf16>, vector<8x256xf32> -> vector<8x256xf32>
    %481 = arith.addf %478, %480 : vector<8x256xf32>
    %482 = vector.extract_strided_slice %481 {offsets = [0, 0], sizes = [8, 64], strides = [1, 1]} : vector<8x256xf32> to vector<8x64xf32>
    %483 = arith.negf %482 : vector<8x64xf32>
    %484 = math.exp %483 : vector<8x64xf32>
    %cst_102 = arith.constant 1.000000e+00 : f32
    %485 = vector.broadcast %cst_102 : f32 to vector<8x64xf32>
    %486 = arith.addf %485, %484 : vector<8x64xf32>
    %487 = arith.divf %485, %486 : vector<8x64xf32>
    %488 = vector.extract_strided_slice %481 {offsets = [0, 64], sizes = [8, 64], strides = [1, 1]} : vector<8x256xf32> to vector<8x64xf32>
    %489 = arith.negf %488 : vector<8x64xf32>
    %490 = math.exp %489 : vector<8x64xf32>
    %cst_103 = arith.constant 1.000000e+00 : f32
    %491 = vector.broadcast %cst_103 : f32 to vector<8x64xf32>
    %492 = arith.addf %491, %490 : vector<8x64xf32>
    %493 = arith.divf %491, %492 : vector<8x64xf32>
    %494 = vector.extract_strided_slice %481 {offsets = [0, 128], sizes = [8, 64], strides = [1, 1]} : vector<8x256xf32> to vector<8x64xf32>
    %495 = math.tanh %494 : vector<8x64xf32>
    %496 = vector.extract_strided_slice %481 {offsets = [0, 192], sizes = [8, 64], strides = [1, 1]} : vector<8x256xf32> to vector<8x64xf32>
    %497 = arith.negf %496 : vector<8x64xf32>
    %498 = math.exp %497 : vector<8x64xf32>
    %cst_104 = arith.constant 1.000000e+00 : f32
    %499 = vector.broadcast %cst_104 : f32 to vector<8x64xf32>
    %500 = arith.addf %499, %498 : vector<8x64xf32>
    %501 = arith.divf %499, %500 : vector<8x64xf32>
    %502 = arith.mulf %493, %412 : vector<8x64xf32>
    %503 = arith.mulf %487, %495 : vector<8x64xf32>
    %504 = arith.addf %502, %503 : vector<8x64xf32>
    %505 = math.tanh %504 : vector<8x64xf32>
    %506 = arith.mulf %501, %505 : vector<8x64xf32>
    %507 = arith.truncf %506 : vector<8x64xf32> to vector<8x64xbf16>
    %cst_105 = arith.constant dense<0.000000e+00> : vector<8x128xf32>
    %508 = tpu.matmul %507, %1, %cst_105 {dimension_numbers = #tpu.dot_dimension_numbers<[1], [0], [0], [1], [0, 0, 1, 1], [], []>} : vector<8x64xbf16>, vector<64x128xbf16>, vector<8x128xf32> -> vector<8x128xf32>
    %509 = arith.truncf %445 : vector<8x32xf32> to vector<8x32xbf16>
    %cst_106 = arith.constant dense<0.000000e+00> : vector<8x128xf32>
    %510 = tpu.matmul %509, %2, %cst_106 {dimension_numbers = #tpu.dot_dimension_numbers<[1], [0], [0], [1], [0, 0, 1, 1], [], []>} : vector<8x32xbf16>, vector<32x128xbf16>, vector<8x128xf32> -> vector<8x128xf32>
    %511 = arith.addf %508, %510 : vector<8x128xf32>
    %512 = arith.addf %511, %7 : vector<8x128xf32>
    %513 = vector.extract_strided_slice %512 {offsets = [0, 0], sizes = [8, 32], strides = [1, 1]} : vector<8x128xf32> to vector<8x32xf32>
    %514 = arith.negf %513 : vector<8x32xf32>
    %515 = math.exp %514 : vector<8x32xf32>
    %cst_107 = arith.constant 1.000000e+00 : f32
    %516 = vector.broadcast %cst_107 : f32 to vector<8x32xf32>
    %517 = arith.addf %516, %515 : vector<8x32xf32>
    %518 = arith.divf %516, %517 : vector<8x32xf32>
    %519 = vector.extract_strided_slice %512 {offsets = [0, 32], sizes = [8, 32], strides = [1, 1]} : vector<8x128xf32> to vector<8x32xf32>
    %520 = arith.negf %519 : vector<8x32xf32>
    %521 = math.exp %520 : vector<8x32xf32>
    %cst_108 = arith.constant 1.000000e+00 : f32
    %522 = vector.broadcast %cst_108 : f32 to vector<8x32xf32>
    %523 = arith.addf %522, %521 : vector<8x32xf32>
    %524 = arith.divf %522, %523 : vector<8x32xf32>
    %525 = vector.extract_strided_slice %512 {offsets = [0, 64], sizes = [8, 32], strides = [1, 1]} : vector<8x128xf32> to vector<8x32xf32>
    %526 = math.tanh %525 : vector<8x32xf32>
    %527 = vector.extract_strided_slice %512 {offsets = [0, 96], sizes = [8, 32], strides = [1, 1]} : vector<8x128xf32> to vector<8x32xf32>
    %528 = arith.negf %527 : vector<8x32xf32>
    %529 = math.exp %528 : vector<8x32xf32>
    %cst_109 = arith.constant 1.000000e+00 : f32
    %530 = vector.broadcast %cst_109 : f32 to vector<8x32xf32>
    %531 = arith.addf %530, %529 : vector<8x32xf32>
    %532 = arith.divf %530, %531 : vector<8x32xf32>
    %533 = arith.mulf %524, %443 : vector<8x32xf32>
    %534 = arith.mulf %518, %526 : vector<8x32xf32>
    %535 = arith.addf %533, %534 : vector<8x32xf32>
    %536 = math.tanh %535 : vector<8x32xf32>
    %537 = arith.mulf %532, %536 : vector<8x32xf32>
    %538 = arith.truncf %537 : vector<8x32xf32> to vector<8x32xbf16>
    %cst_110 = arith.constant dense<0.000000e+00> : vector<8x64xf32>
    %539 = tpu.matmul %538, %3, %cst_110 {dimension_numbers = #tpu.dot_dimension_numbers<[1], [0], [0], [1], [0, 0, 1, 1], [], []>} : vector<8x32xbf16>, vector<32x64xbf16>, vector<8x64xf32> -> vector<8x64xf32>
    %540 = arith.truncf %476 : vector<8x16xf32> to vector<8x16xbf16>
    %cst_111 = arith.constant dense<0.000000e+00> : vector<8x64xf32>
    %541 = tpu.matmul %540, %4, %cst_111 {dimension_numbers = #tpu.dot_dimension_numbers<[1], [0], [0], [1], [0, 0, 1, 1], [], []>} : vector<8x16xbf16>, vector<16x64xbf16>, vector<8x64xf32> -> vector<8x64xf32>
    %542 = arith.addf %539, %541 : vector<8x64xf32>
    %543 = arith.addf %542, %10 : vector<8x64xf32>
    %544 = vector.extract_strided_slice %543 {offsets = [0, 0], sizes = [8, 16], strides = [1, 1]} : vector<8x64xf32> to vector<8x16xf32>
    %545 = arith.negf %544 : vector<8x16xf32>
    %546 = math.exp %545 : vector<8x16xf32>
    %cst_112 = arith.constant 1.000000e+00 : f32
    %547 = vector.broadcast %cst_112 : f32 to vector<8x16xf32>
    %548 = arith.addf %547, %546 : vector<8x16xf32>
    %549 = arith.divf %547, %548 : vector<8x16xf32>
    %550 = vector.extract_strided_slice %543 {offsets = [0, 16], sizes = [8, 16], strides = [1, 1]} : vector<8x64xf32> to vector<8x16xf32>
    %551 = arith.negf %550 : vector<8x16xf32>
    %552 = math.exp %551 : vector<8x16xf32>
    %cst_113 = arith.constant 1.000000e+00 : f32
    %553 = vector.broadcast %cst_113 : f32 to vector<8x16xf32>
    %554 = arith.addf %553, %552 : vector<8x16xf32>
    %555 = arith.divf %553, %554 : vector<8x16xf32>
    %556 = vector.extract_strided_slice %543 {offsets = [0, 32], sizes = [8, 16], strides = [1, 1]} : vector<8x64xf32> to vector<8x16xf32>
    %557 = math.tanh %556 : vector<8x16xf32>
    %558 = vector.extract_strided_slice %543 {offsets = [0, 48], sizes = [8, 16], strides = [1, 1]} : vector<8x64xf32> to vector<8x16xf32>
    %559 = arith.negf %558 : vector<8x16xf32>
    %560 = math.exp %559 : vector<8x16xf32>
    %cst_114 = arith.constant 1.000000e+00 : f32
    %561 = vector.broadcast %cst_114 : f32 to vector<8x16xf32>
    %562 = arith.addf %561, %560 : vector<8x16xf32>
    %563 = arith.divf %561, %562 : vector<8x16xf32>
    %564 = arith.mulf %555, %474 : vector<8x16xf32>
    %565 = arith.mulf %549, %557 : vector<8x16xf32>
    %566 = arith.addf %564, %565 : vector<8x16xf32>
    %567 = math.tanh %566 : vector<8x16xf32>
    %568 = arith.mulf %563, %567 : vector<8x16xf32>
    %c6 = arith.constant 6 : index
    %c0_115 = arith.constant 0 : index
    %c0_116 = arith.constant 0 : index
    %569 = vector.load %arg0[%c6, %c0_115, %c0_116] : memref<8x8x256xf32, #tpu.memory_space<vmem>>, vector<1x8x256xf32>
    %570 = vector.shape_cast %569 : vector<1x8x256xf32> to vector<8x256xf32>
    %571 = arith.truncf %506 : vector<8x64xf32> to vector<8x64xbf16>
    %cst_117 = arith.constant dense<0.000000e+00> : vector<8x256xf32>
    %572 = tpu.matmul %571, %0, %cst_117 {dimension_numbers = #tpu.dot_dimension_numbers<[1], [0], [0], [1], [0, 0, 1, 1], [], []>} : vector<8x64xbf16>, vector<64x256xbf16>, vector<8x256xf32> -> vector<8x256xf32>
    %573 = arith.addf %570, %572 : vector<8x256xf32>
    %574 = vector.extract_strided_slice %573 {offsets = [0, 0], sizes = [8, 64], strides = [1, 1]} : vector<8x256xf32> to vector<8x64xf32>
    %575 = arith.negf %574 : vector<8x64xf32>
    %576 = math.exp %575 : vector<8x64xf32>
    %cst_118 = arith.constant 1.000000e+00 : f32
    %577 = vector.broadcast %cst_118 : f32 to vector<8x64xf32>
    %578 = arith.addf %577, %576 : vector<8x64xf32>
    %579 = arith.divf %577, %578 : vector<8x64xf32>
    %580 = vector.extract_strided_slice %573 {offsets = [0, 64], sizes = [8, 64], strides = [1, 1]} : vector<8x256xf32> to vector<8x64xf32>
    %581 = arith.negf %580 : vector<8x64xf32>
    %582 = math.exp %581 : vector<8x64xf32>
    %cst_119 = arith.constant 1.000000e+00 : f32
    %583 = vector.broadcast %cst_119 : f32 to vector<8x64xf32>
    %584 = arith.addf %583, %582 : vector<8x64xf32>
    %585 = arith.divf %583, %584 : vector<8x64xf32>
    %586 = vector.extract_strided_slice %573 {offsets = [0, 128], sizes = [8, 64], strides = [1, 1]} : vector<8x256xf32> to vector<8x64xf32>
    %587 = math.tanh %586 : vector<8x64xf32>
    %588 = vector.extract_strided_slice %573 {offsets = [0, 192], sizes = [8, 64], strides = [1, 1]} : vector<8x256xf32> to vector<8x64xf32>
    %589 = arith.negf %588 : vector<8x64xf32>
    %590 = math.exp %589 : vector<8x64xf32>
    %cst_120 = arith.constant 1.000000e+00 : f32
    %591 = vector.broadcast %cst_120 : f32 to vector<8x64xf32>
    %592 = arith.addf %591, %590 : vector<8x64xf32>
    %593 = arith.divf %591, %592 : vector<8x64xf32>
    %594 = arith.mulf %585, %504 : vector<8x64xf32>
    %595 = arith.mulf %579, %587 : vector<8x64xf32>
    %596 = arith.addf %594, %595 : vector<8x64xf32>
    %597 = math.tanh %596 : vector<8x64xf32>
    %598 = arith.mulf %593, %597 : vector<8x64xf32>
    %599 = arith.truncf %598 : vector<8x64xf32> to vector<8x64xbf16>
    %cst_121 = arith.constant dense<0.000000e+00> : vector<8x128xf32>
    %600 = tpu.matmul %599, %1, %cst_121 {dimension_numbers = #tpu.dot_dimension_numbers<[1], [0], [0], [1], [0, 0, 1, 1], [], []>} : vector<8x64xbf16>, vector<64x128xbf16>, vector<8x128xf32> -> vector<8x128xf32>
    %601 = arith.truncf %537 : vector<8x32xf32> to vector<8x32xbf16>
    %cst_122 = arith.constant dense<0.000000e+00> : vector<8x128xf32>
    %602 = tpu.matmul %601, %2, %cst_122 {dimension_numbers = #tpu.dot_dimension_numbers<[1], [0], [0], [1], [0, 0, 1, 1], [], []>} : vector<8x32xbf16>, vector<32x128xbf16>, vector<8x128xf32> -> vector<8x128xf32>
    %603 = arith.addf %600, %602 : vector<8x128xf32>
    %604 = arith.addf %603, %7 : vector<8x128xf32>
    %605 = vector.extract_strided_slice %604 {offsets = [0, 0], sizes = [8, 32], strides = [1, 1]} : vector<8x128xf32> to vector<8x32xf32>
    %606 = arith.negf %605 : vector<8x32xf32>
    %607 = math.exp %606 : vector<8x32xf32>
    %cst_123 = arith.constant 1.000000e+00 : f32
    %608 = vector.broadcast %cst_123 : f32 to vector<8x32xf32>
    %609 = arith.addf %608, %607 : vector<8x32xf32>
    %610 = arith.divf %608, %609 : vector<8x32xf32>
    %611 = vector.extract_strided_slice %604 {offsets = [0, 32], sizes = [8, 32], strides = [1, 1]} : vector<8x128xf32> to vector<8x32xf32>
    %612 = arith.negf %611 : vector<8x32xf32>
    %613 = math.exp %612 : vector<8x32xf32>
    %cst_124 = arith.constant 1.000000e+00 : f32
    %614 = vector.broadcast %cst_124 : f32 to vector<8x32xf32>
    %615 = arith.addf %614, %613 : vector<8x32xf32>
    %616 = arith.divf %614, %615 : vector<8x32xf32>
    %617 = vector.extract_strided_slice %604 {offsets = [0, 64], sizes = [8, 32], strides = [1, 1]} : vector<8x128xf32> to vector<8x32xf32>
    %618 = math.tanh %617 : vector<8x32xf32>
    %619 = vector.extract_strided_slice %604 {offsets = [0, 96], sizes = [8, 32], strides = [1, 1]} : vector<8x128xf32> to vector<8x32xf32>
    %620 = arith.negf %619 : vector<8x32xf32>
    %621 = math.exp %620 : vector<8x32xf32>
    %cst_125 = arith.constant 1.000000e+00 : f32
    %622 = vector.broadcast %cst_125 : f32 to vector<8x32xf32>
    %623 = arith.addf %622, %621 : vector<8x32xf32>
    %624 = arith.divf %622, %623 : vector<8x32xf32>
    %625 = arith.mulf %616, %535 : vector<8x32xf32>
    %626 = arith.mulf %610, %618 : vector<8x32xf32>
    %627 = arith.addf %625, %626 : vector<8x32xf32>
    %628 = math.tanh %627 : vector<8x32xf32>
    %629 = arith.mulf %624, %628 : vector<8x32xf32>
    %630 = arith.truncf %629 : vector<8x32xf32> to vector<8x32xbf16>
    %cst_126 = arith.constant dense<0.000000e+00> : vector<8x64xf32>
    %631 = tpu.matmul %630, %3, %cst_126 {dimension_numbers = #tpu.dot_dimension_numbers<[1], [0], [0], [1], [0, 0, 1, 1], [], []>} : vector<8x32xbf16>, vector<32x64xbf16>, vector<8x64xf32> -> vector<8x64xf32>
    %632 = arith.truncf %568 : vector<8x16xf32> to vector<8x16xbf16>
    %cst_127 = arith.constant dense<0.000000e+00> : vector<8x64xf32>
    %633 = tpu.matmul %632, %4, %cst_127 {dimension_numbers = #tpu.dot_dimension_numbers<[1], [0], [0], [1], [0, 0, 1, 1], [], []>} : vector<8x16xbf16>, vector<16x64xbf16>, vector<8x64xf32> -> vector<8x64xf32>
    %634 = arith.addf %631, %633 : vector<8x64xf32>
    %635 = arith.addf %634, %10 : vector<8x64xf32>
    %636 = vector.extract_strided_slice %635 {offsets = [0, 0], sizes = [8, 16], strides = [1, 1]} : vector<8x64xf32> to vector<8x16xf32>
    %637 = arith.negf %636 : vector<8x16xf32>
    %638 = math.exp %637 : vector<8x16xf32>
    %cst_128 = arith.constant 1.000000e+00 : f32
    %639 = vector.broadcast %cst_128 : f32 to vector<8x16xf32>
    %640 = arith.addf %639, %638 : vector<8x16xf32>
    %641 = arith.divf %639, %640 : vector<8x16xf32>
    %642 = vector.extract_strided_slice %635 {offsets = [0, 16], sizes = [8, 16], strides = [1, 1]} : vector<8x64xf32> to vector<8x16xf32>
    %643 = arith.negf %642 : vector<8x16xf32>
    %644 = math.exp %643 : vector<8x16xf32>
    %cst_129 = arith.constant 1.000000e+00 : f32
    %645 = vector.broadcast %cst_129 : f32 to vector<8x16xf32>
    %646 = arith.addf %645, %644 : vector<8x16xf32>
    %647 = arith.divf %645, %646 : vector<8x16xf32>
    %648 = vector.extract_strided_slice %635 {offsets = [0, 32], sizes = [8, 16], strides = [1, 1]} : vector<8x64xf32> to vector<8x16xf32>
    %649 = math.tanh %648 : vector<8x16xf32>
    %650 = vector.extract_strided_slice %635 {offsets = [0, 48], sizes = [8, 16], strides = [1, 1]} : vector<8x64xf32> to vector<8x16xf32>
    %651 = arith.negf %650 : vector<8x16xf32>
    %652 = math.exp %651 : vector<8x16xf32>
    %cst_130 = arith.constant 1.000000e+00 : f32
    %653 = vector.broadcast %cst_130 : f32 to vector<8x16xf32>
    %654 = arith.addf %653, %652 : vector<8x16xf32>
    %655 = arith.divf %653, %654 : vector<8x16xf32>
    %656 = arith.mulf %647, %566 : vector<8x16xf32>
    %657 = arith.mulf %641, %649 : vector<8x16xf32>
    %658 = arith.addf %656, %657 : vector<8x16xf32>
    %659 = math.tanh %658 : vector<8x16xf32>
    %660 = arith.mulf %655, %659 : vector<8x16xf32>
    %c7 = arith.constant 7 : index
    %c0_131 = arith.constant 0 : index
    %c0_132 = arith.constant 0 : index
    %661 = vector.load %arg0[%c7, %c0_131, %c0_132] : memref<8x8x256xf32, #tpu.memory_space<vmem>>, vector<1x8x256xf32>
    %662 = vector.shape_cast %661 : vector<1x8x256xf32> to vector<8x256xf32>
    %663 = arith.truncf %598 : vector<8x64xf32> to vector<8x64xbf16>
    %cst_133 = arith.constant dense<0.000000e+00> : vector<8x256xf32>
    %664 = tpu.matmul %663, %0, %cst_133 {dimension_numbers = #tpu.dot_dimension_numbers<[1], [0], [0], [1], [0, 0, 1, 1], [], []>} : vector<8x64xbf16>, vector<64x256xbf16>, vector<8x256xf32> -> vector<8x256xf32>
    %665 = arith.addf %662, %664 : vector<8x256xf32>
    %666 = vector.extract_strided_slice %665 {offsets = [0, 0], sizes = [8, 64], strides = [1, 1]} : vector<8x256xf32> to vector<8x64xf32>
    %667 = arith.negf %666 : vector<8x64xf32>
    %668 = math.exp %667 : vector<8x64xf32>
    %cst_134 = arith.constant 1.000000e+00 : f32
    %669 = vector.broadcast %cst_134 : f32 to vector<8x64xf32>
    %670 = arith.addf %669, %668 : vector<8x64xf32>
    %671 = arith.divf %669, %670 : vector<8x64xf32>
    %672 = vector.extract_strided_slice %665 {offsets = [0, 64], sizes = [8, 64], strides = [1, 1]} : vector<8x256xf32> to vector<8x64xf32>
    %673 = arith.negf %672 : vector<8x64xf32>
    %674 = math.exp %673 : vector<8x64xf32>
    %cst_135 = arith.constant 1.000000e+00 : f32
    %675 = vector.broadcast %cst_135 : f32 to vector<8x64xf32>
    %676 = arith.addf %675, %674 : vector<8x64xf32>
    %677 = arith.divf %675, %676 : vector<8x64xf32>
    %678 = vector.extract_strided_slice %665 {offsets = [0, 128], sizes = [8, 64], strides = [1, 1]} : vector<8x256xf32> to vector<8x64xf32>
    %679 = math.tanh %678 : vector<8x64xf32>
    %680 = vector.extract_strided_slice %665 {offsets = [0, 192], sizes = [8, 64], strides = [1, 1]} : vector<8x256xf32> to vector<8x64xf32>
    %681 = arith.negf %680 : vector<8x64xf32>
    %682 = math.exp %681 : vector<8x64xf32>
    %cst_136 = arith.constant 1.000000e+00 : f32
    %683 = vector.broadcast %cst_136 : f32 to vector<8x64xf32>
    %684 = arith.addf %683, %682 : vector<8x64xf32>
    %685 = arith.divf %683, %684 : vector<8x64xf32>
    %686 = arith.mulf %677, %596 : vector<8x64xf32>
    %687 = arith.mulf %671, %679 : vector<8x64xf32>
    %688 = arith.addf %686, %687 : vector<8x64xf32>
    %689 = math.tanh %688 : vector<8x64xf32>
    %690 = arith.mulf %685, %689 : vector<8x64xf32>
    %691 = arith.truncf %690 : vector<8x64xf32> to vector<8x64xbf16>
    %cst_137 = arith.constant dense<0.000000e+00> : vector<8x128xf32>
    %692 = tpu.matmul %691, %1, %cst_137 {dimension_numbers = #tpu.dot_dimension_numbers<[1], [0], [0], [1], [0, 0, 1, 1], [], []>} : vector<8x64xbf16>, vector<64x128xbf16>, vector<8x128xf32> -> vector<8x128xf32>
    %693 = arith.truncf %629 : vector<8x32xf32> to vector<8x32xbf16>
    %cst_138 = arith.constant dense<0.000000e+00> : vector<8x128xf32>
    %694 = tpu.matmul %693, %2, %cst_138 {dimension_numbers = #tpu.dot_dimension_numbers<[1], [0], [0], [1], [0, 0, 1, 1], [], []>} : vector<8x32xbf16>, vector<32x128xbf16>, vector<8x128xf32> -> vector<8x128xf32>
    %695 = arith.addf %692, %694 : vector<8x128xf32>
    %696 = arith.addf %695, %7 : vector<8x128xf32>
    %697 = vector.extract_strided_slice %696 {offsets = [0, 0], sizes = [8, 32], strides = [1, 1]} : vector<8x128xf32> to vector<8x32xf32>
    %698 = arith.negf %697 : vector<8x32xf32>
    %699 = math.exp %698 : vector<8x32xf32>
    %cst_139 = arith.constant 1.000000e+00 : f32
    %700 = vector.broadcast %cst_139 : f32 to vector<8x32xf32>
    %701 = arith.addf %700, %699 : vector<8x32xf32>
    %702 = arith.divf %700, %701 : vector<8x32xf32>
    %703 = vector.extract_strided_slice %696 {offsets = [0, 32], sizes = [8, 32], strides = [1, 1]} : vector<8x128xf32> to vector<8x32xf32>
    %704 = arith.negf %703 : vector<8x32xf32>
    %705 = math.exp %704 : vector<8x32xf32>
    %cst_140 = arith.constant 1.000000e+00 : f32
    %706 = vector.broadcast %cst_140 : f32 to vector<8x32xf32>
    %707 = arith.addf %706, %705 : vector<8x32xf32>
    %708 = arith.divf %706, %707 : vector<8x32xf32>
    %709 = vector.extract_strided_slice %696 {offsets = [0, 64], sizes = [8, 32], strides = [1, 1]} : vector<8x128xf32> to vector<8x32xf32>
    %710 = math.tanh %709 : vector<8x32xf32>
    %711 = vector.extract_strided_slice %696 {offsets = [0, 96], sizes = [8, 32], strides = [1, 1]} : vector<8x128xf32> to vector<8x32xf32>
    %712 = arith.negf %711 : vector<8x32xf32>
    %713 = math.exp %712 : vector<8x32xf32>
    %cst_141 = arith.constant 1.000000e+00 : f32
    %714 = vector.broadcast %cst_141 : f32 to vector<8x32xf32>
    %715 = arith.addf %714, %713 : vector<8x32xf32>
    %716 = arith.divf %714, %715 : vector<8x32xf32>
    %717 = arith.mulf %708, %627 : vector<8x32xf32>
    %718 = arith.mulf %702, %710 : vector<8x32xf32>
    %719 = arith.addf %717, %718 : vector<8x32xf32>
    %720 = math.tanh %719 : vector<8x32xf32>
    %721 = arith.mulf %716, %720 : vector<8x32xf32>
    %722 = arith.truncf %721 : vector<8x32xf32> to vector<8x32xbf16>
    %cst_142 = arith.constant dense<0.000000e+00> : vector<8x64xf32>
    %723 = tpu.matmul %722, %3, %cst_142 {dimension_numbers = #tpu.dot_dimension_numbers<[1], [0], [0], [1], [0, 0, 1, 1], [], []>} : vector<8x32xbf16>, vector<32x64xbf16>, vector<8x64xf32> -> vector<8x64xf32>
    %724 = arith.truncf %660 : vector<8x16xf32> to vector<8x16xbf16>
    %cst_143 = arith.constant dense<0.000000e+00> : vector<8x64xf32>
    %725 = tpu.matmul %724, %4, %cst_143 {dimension_numbers = #tpu.dot_dimension_numbers<[1], [0], [0], [1], [0, 0, 1, 1], [], []>} : vector<8x16xbf16>, vector<16x64xbf16>, vector<8x64xf32> -> vector<8x64xf32>
    %726 = arith.addf %723, %725 : vector<8x64xf32>
    %727 = arith.addf %726, %10 : vector<8x64xf32>
    %728 = vector.extract_strided_slice %727 {offsets = [0, 0], sizes = [8, 16], strides = [1, 1]} : vector<8x64xf32> to vector<8x16xf32>
    %729 = arith.negf %728 : vector<8x16xf32>
    %730 = math.exp %729 : vector<8x16xf32>
    %cst_144 = arith.constant 1.000000e+00 : f32
    %731 = vector.broadcast %cst_144 : f32 to vector<8x16xf32>
    %732 = arith.addf %731, %730 : vector<8x16xf32>
    %733 = arith.divf %731, %732 : vector<8x16xf32>
    %734 = vector.extract_strided_slice %727 {offsets = [0, 16], sizes = [8, 16], strides = [1, 1]} : vector<8x64xf32> to vector<8x16xf32>
    %735 = arith.negf %734 : vector<8x16xf32>
    %736 = math.exp %735 : vector<8x16xf32>
    %cst_145 = arith.constant 1.000000e+00 : f32
    %737 = vector.broadcast %cst_145 : f32 to vector<8x16xf32>
    %738 = arith.addf %737, %736 : vector<8x16xf32>
    %739 = arith.divf %737, %738 : vector<8x16xf32>
    %740 = vector.extract_strided_slice %727 {offsets = [0, 32], sizes = [8, 16], strides = [1, 1]} : vector<8x64xf32> to vector<8x16xf32>
    %741 = math.tanh %740 : vector<8x16xf32>
    %742 = vector.extract_strided_slice %727 {offsets = [0, 48], sizes = [8, 16], strides = [1, 1]} : vector<8x64xf32> to vector<8x16xf32>
    %743 = arith.negf %742 : vector<8x16xf32>
    %744 = math.exp %743 : vector<8x16xf32>
    %cst_146 = arith.constant 1.000000e+00 : f32
    %745 = vector.broadcast %cst_146 : f32 to vector<8x16xf32>
    %746 = arith.addf %745, %744 : vector<8x16xf32>
    %747 = arith.divf %745, %746 : vector<8x16xf32>
    %748 = arith.mulf %739, %658 : vector<8x16xf32>
    %749 = arith.mulf %733, %741 : vector<8x16xf32>
    %750 = arith.addf %748, %749 : vector<8x16xf32>
    %751 = math.tanh %750 : vector<8x16xf32>
    %752 = arith.mulf %747, %751 : vector<8x16xf32>
    %c0_147 = arith.constant 0 : index
    %c0_148 = arith.constant 0 : index
    %753 = vector.load %arg8[%c0_147, %c0_148] : memref<16x1xf32, #tpu.memory_space<vmem>>, vector<16x1xf32>
    %cst_149 = arith.constant dense<0.000000e+00> : vector<8x1xf32>
    %754 = tpu.matmul %752, %753, %cst_149 {dimension_numbers = #tpu.dot_dimension_numbers<[1], [0], [0], [1], [0, 0, 1, 1], [], []>} : vector<8x16xf32>, vector<16x1xf32>, vector<8x1xf32> -> vector<8x1xf32>
    %c0_150 = arith.constant 0 : index
    %c0_151 = arith.constant 0 : index
    %755 = vector.load %arg9[%c0_150, %c0_151] : memref<1x1xf32, #tpu.memory_space<vmem>>, vector<1x1xf32>
    %756 = vector.broadcast %755 : vector<1x1xf32> to vector<8x1xf32>
    %757 = arith.addf %754, %756 : vector<8x1xf32>
    %c0_152 = arith.constant 0 : index
    %c0_153 = arith.constant 0 : index
    %758 = vector.load %arg10[%c0_152, %c0_153] : memref<8x1xf32, #tpu.memory_space<vmem>>, vector<8x1xf32>
    tpu.vector_store %arg10[%c0_152, %c0_153], %757 {strides = array<i32>} : memref<8x1xf32, #tpu.memory_space<vmem>>, vector<8x1xf32>,
    return
  }
}

</mosaic_0001>

<bundles_post_ra>
// kernel: light_dropout_lstm.1
= control target key start
LH: loop header
LB: loop body
LE: loop exit
PB: predicated region body
PF: predicated region fallthrough
CT: control target
= control target key end

     0   :  { %v3418_v1 = vmov 0   ;;  %s3419_s13 = smov 64   ;;  %v3420_v23 = vmov 0.0   ;;  %vm3421_vm0 = vmmov 0   ;;  %vm120_vm1 = vcmask 523264   ;;  %s3422_s12 = smov 32   ;;  %s4232_s1 = inlined_call_operand.vmem [shape: bf16[64,256], index: 1, kind: input, shape index: {}]   ;;  %s4233_s0 = inlined_call_operand.vmem [shape: f32[8,8,256], index: 0, kind: input, shape index: {}]   ;;  %s4234_s3 = inlined_call_operand.vmem [shape: bf16[32,128], index: 3, kind: input, shape index: {}]   ;;  %s4235_s2 = inlined_call_operand.vmem [shape: bf16[64,128], index: 2, kind: input, shape index: {}]   ;;  %s4236_s4 = inlined_call_operand.vmem [shape: f32[1,128], index: 4, kind: input, shape index: {}]   ;;  %s4237_s6 = inlined_call_operand.vmem [shape: bf16[16,64], index: 6, kind: input, shape index: {}]   ;;  %s4238_s5 = inlined_call_operand.vmem [shape: bf16[32,64], index: 5, kind: input, shape index: {}]   ;;  %s4239_s7 = inlined_call_operand.vmem [shape: f32[1,64], index: 7, kind: input, shape index: {}]   ;;  %s4240_s8 = inlined_call_operand.vmem [shape: f32[16,1], index: 8, kind: input, shape index: {}]   ;;  %s4241_s9 = inlined_call_operand.<no memory space> [shape: f32[1,1], index: 9, kind: input, shape index: {}]   ;;  %s4242_s10 = inlined_call_operand.vmem [shape: f32[8,1], index: 10, kind: output, shape index: {}]  }
   0x1   :  { %v3484_v0 = vld [vmem:[%s4232_s1 + $0x34] ss:$8 sps:$4 sm:$0xff]   ;;  %156 = vmatprep.mubr.bf16.mxu0 %v3418_v1  ;;  %v3490_v2 = vld [vmem:[%s4232_s1 + $0x30] ss:$8 sps:$4 sm:$0xff]   ;;  %v3496_v3 = vld [vmem:[%s4232_s1 + $0x24] ss:$8 sps:$4 sm:$0xff]   ;;  %2867 = vmatprep.subr.bf16.mxu1 %v3420_v23 }
   0x2   :  { %132 = vmatprep.subr.bf16.mxu0 %v3484_v0  ;;  %v3502_v4 = vld [vmem:[%s4232_s1 + $0x20] ss:$8 sps:$4 sm:$0xff]   ;;  %v3508_v5 = vld [vmem:[%s4232_s1 + $0x14] ss:$8 sps:$4 sm:$0xff]   ;;  %v3514_v6 = vld [vmem:[%s4232_s1 + $0x10] ss:$8 sps:$4 sm:$0xff]   ;;  %2871 = vmatprep.mubr.msk.bf16.mxu1 %vm3421_vm0, %v3420_v23 }
   0x3   :  { %133 = vmatpush1.bf16.msra.mxu0 %v3490_v2  ;;  %v3520_v7 = vld [vmem:[%s4232_s1 + $0x4] ss:$8 sps:$4 sm:$0xff]   ;;  %v3526_v8 = vld [vmem:[%s4232_s1] ss:$8 sps:$4 sm:$0xff]   ;;  %v3560_v26 = vld [vmem:[%s4235_s2 + $0x18] sm:$0xff]   ;;  %vm202_vm2 = vcmask 261120  }
   0x4   :  { %134 = vmatprep.subr.bf16.mxu0 %v3496_v3  ;;  %v78_v9 = vld [vmem:[%s4233_s0] sm:$0xff]  ;;  %v79_v16 = vld [vmem:[%s4233_s0 + $0x8] sm:$0xff]  ;;  %v3568_v27 = vld [vmem:[%s4235_s2 + $0x10] sm:$0xff]   ;;  %s3423_s22 = smov 96   ;;  %s3424_s27 = smov 16   ;;  %vm347_vm3 = vcmask 130048  }
   0x5   :  { %v3542_v24 = vld [vmem:[%s4234_s3 + $0x8] sm:$0xff]   ;;  %v3553_v25 = vld [vmem:[%s4234_s3] sm:$0xff]   ;;  %v2681_v52 = vld [vmem:[%s4233_s0 + $0x10] sm:$0xff]  ;;  %s3425_s28 = smov 80   ;;  %vm2650_vm4 = vcmask 7168  }
   0x6   :  { %2868 = vmatpush3.bf16.msra.mxu1 %v3542_v24  ;;  %v3577_v28 = vld [vmem:[%s4235_s2 + $0x8] sm:$0xff]   ;;  %v3584_v29 = vld [vmem:[%s4235_s2] sm:$0xff]   ;;  %v2682_v60 = vld [vmem:[%s4233_s0 + $0x18] sm:$0xff] }
   0x7   :  { %135 = vmatpush1.bf16.msra.mxu0 %v3502_v4  ;;  %2869 = vmatprep.subr.bf16.mxu1 %v3420_v23  ;;  %v3609_v45 = vld [vmem:[%s4236_s4] ss:$0 sm:$0xff] }
   0x8   :  { %136 = vmatprep.subr.bf16.mxu0 %v3508_v5 }
   0xa   :  { %2870 = vmatpush3.bf16.msra.mxu1 %v3553_v25 }
   0xb   :  { %137 = vmatpush1.bf16.msra.mxu0 %v3514_v6  ;;  %2875 = vmatprep.subr.bf16.mxu1 %v3420_v23 }
   0xc   :  { %138 = vmatprep.subr.bf16.mxu0 %v3520_v7 }
   0xd   :  { %2872 = vmatmul.mubr.bf16.vlgmr.msra.gmra.mxu1 %v3418_v1 }
   0xe   :  { %2876 = vmatpush3.bf16.msra.mxu1 %v3560_v26  ;;  %2883 = vmatprep.mubr.msk.bf16.mxu1 %vm3421_vm0, %v3420_v23 }
   0xf   :  { %139 = vmatpush1.bf16.msra.mxu0 %v3526_v8  ;;  %2877 = vmatprep.subr.bf16.mxu1 %v3420_v23 }
  0x10   :  { %2887 = vmatprep.subr.bf16.mxu0 %v3420_v23 }
  0x12   :  { %157 = vmatmul.mubr.bf16.vlgmr.msra.gmra.mxu0 %v3418_v1  ;;  %2878 = vmatpush3.bf16.msra.mxu1 %v3568_v27 }
  0x13   :  { %2889 = vmatprep.mubr.msk.bf16.mxu0 %vm3421_vm0, %v3420_v23  ;;  %2879 = vmatprep.subr.bf16.mxu1 %v3420_v23 }
  0x16   :  { %2880 = vmatpush3.bf16.msra.mxu1 %v3577_v28 }
  0x17   :  { %2881 = vmatprep.subr.bf16.mxu1 %v3420_v23 }
  0x1a   :  { %2882 = vmatpush3.bf16.msra.mxu1 %v3584_v29 }
  0x1b   :  { %484 = vmatprep.subr.bf16.mxu1 %v3484_v0 }
  0xcd   :  { %v239_v40 = vpop.f32.mrf.mxu1 }
  0xcf   :  { %v2873_v41 = vpop.f32.mrf.mxu1 }
  0xd1   :  { %v242_v42 = vpop.f32.mrf.mxu1 }
  0xd2   :  { %v158_v10 = vpop.f32.mrf.mxu0 }
  0xd3   :  { %v165_v11 = vadd.f32 %v158_v10, %v78_v9  ;;  %v2874_v43 = vpop.f32.mrf.mxu1 }
  0xd4   :  { %v160_v12 = vpop.f32.mrf.mxu0 }
  0xd5   :  { %v2666_v13 = vmul.f32 -1.442695, %v165_v11  ;;  %v166_v17 = vadd.f32 %v160_v12, %v79_v16 }
  0xd6   :  { %v162_v14 = vpop.f32.mrf.mxu0 }
  0xd7   :  { %3175 = vpow2.f32 %v2666_v13  ;;  %v2667_v30 = vmul.f32 -1.442695, %v166_v17 }
  0xd8   :  { %v163_v15 = vpop.f32.mrf.mxu0  ;;  %3177 = vtanh.f32 %v166_v17 }
  0xe4   :  { %v3176_v18 = vpop.eup %3175 }
  0xe5   :  { %v170_v19 = vadd.f32 1.0, %v3176_v18  ;;  %v3178_v20 = vpop.eup %3177 }
  0xe7   :  { %3179 = vrcp.f32 %v170_v19 }
  0xe8   :  { %3181 = vpow2.f32 %v2667_v30 }
  0xf4   :  { %v3180_v21 = vpop.eup %3179 }
  0xf5   :  { %v181_v22 = vmul.f32 %v3180_v21, %v3178_v20  ;;  %v3182_v31 = vpop.eup %3181  ;;  %v180_v33 = vmul.f32 0.0, %v3180_v21 }
  0xf6   :  { %v177_v32 = vadd.f32 1.0, %v3182_v31 }
  0xf7   :  { %183 = vrot.lane.b32.xlu0 %v181_v22, %s3419_s13 }
  0xf8   :  { %3183 = vrcp.f32 %v177_v32 }
 0x105   :  { %v3184_v36 = vpop.eup %3183 }
 0x169   :  { %v184_v34 = vpop.permute.xlu0 %183 }
 0x16a   :  { %v3589_v35 = vadd.f32 %v184_v34, %v180_v33  ;;  %v3631_v34 = vld [vmem:[%s4237_s6] sm:$0xff]  }
 0x16b   :  { %2888 = vmatpush3.bf16.msra.mxu0 %v3631_v34 }
 0x16c   :  { %3185 = vtanh.f32 %v3589_v35  ;;  %2893 = vmatprep.subr.bf16.mxu0 %v3420_v23 }
 0x16e   :  { %2890 = vmatmul.mubr.bf16.vlgmr.msra.gmra.mxu0 %v3418_v1 }
 0x16f   :  { %2897 = vmatprep.mubr.msk.bf16.mxu0 %vm3421_vm0, %v3420_v23 }
 0x179   :  { %v3186_v37 = vpop.eup %3185 }
 0x17a   :  { %v188_v38 = vmul.f32 %v3186_v37, %v3184_v36  ;;  %v3637_v36 = vld [vmem:[%s4238_s5 + $0x8] sm:$0xff]   ;;  %v3648_v37 = vld [vmem:[%s4238_s5] sm:$0xff]  }
 0x17b   :  { %2894 = vmatpush3.bf16.msra.mxu0 %v3637_v36 }
 0x17c   :  { %v189_v39 = vpack.c.bf16 %v188_v38, %v188_v38  ;;  %2895 = vmatprep.subr.bf16.mxu0 %v3420_v23 }
 0x17e   :  { %246 = vrot.lane.b32.xlu0 %v189_v39, %s3419_s13 }
 0x17f   :  { %2896 = vmatpush3.bf16.msra.mxu0 %v3648_v37 }
 0x180   :  { %2901 = vmatprep.subr.bf16.mxu0 %v3420_v23 }
 0x1f0   :  { %v247_v44 = vpop.permute.xlu0 %246 }
 0x1f1   :  { %2884 = vmatmul.mubr.msk.bf16.vlgmr.msra.gmra.mxu1 %vm120_vm1, %v247_v44 }
 0x1f2   :  { %485 = vmatpush1.bf16.msra.mxu1 %v3490_v2  ;;  %508 = vmatprep.mubr.bf16.mxu1 %v3418_v1 }
 0x1f3   :  { %486 = vmatprep.subr.bf16.mxu1 %v3496_v3 }
 0x1f6   :  { %487 = vmatpush1.bf16.msra.mxu1 %v3502_v4 }
 0x1f7   :  { %488 = vmatprep.subr.bf16.mxu1 %v3508_v5 }
 0x1fa   :  { %489 = vmatpush1.bf16.msra.mxu1 %v3514_v6 }
 0x1fb   :  { %490 = vmatprep.subr.bf16.mxu1 %v3520_v7 }
 0x1fe   :  { %491 = vmatpush1.bf16.msra.mxu1 %v3526_v8 }
 0x1ff   :  { %2921 = vmatprep.subr.bf16.mxu1 %v3420_v23 }
 0x201   :  { %2683 = vmatmul.mubr.msk.bf16.vlgmr.msra.gmra.mxu1 %vm120_vm1, %v247_v44 }
 0x202   :  { %2923 = vmatprep.mubr.msk.bf16.mxu1 %vm3421_vm0, %v3420_v23  ;;  %2922 = vmatpush3.bf16.msra.mxu1 %v3631_v34 }
 0x203   :  { %2927 = vmatprep.subr.bf16.mxu1 %v3420_v23 }
 0x2b1   :  { %v309_v46 = vpop.f32.mrf.mxu1 }
 0x2b2   :  { %v310_v47 = vadd.f32 %v309_v46, %v239_v40  ;;  %v384_v46 = vpop.f32.mrf.mxu0 }
 0x2b3   :  { %v2885_v48 = vpop.f32.mrf.mxu1 }
 0x2b4   :  { %v315_v49 = vadd.f32 %v3609_v45, %v310_v47  ;;  %v2891_v47 = vpop.f32.mrf.mxu0 }
 0x2b5   :  { %v312_v50 = vpop.f32.mrf.mxu1 }
 0x2b6   :  { %3187 = vtanh.f32 %v315_v49  ;;  %v2675_v12 = vmul.f32 -1.442695, %v315_v49  ;;  %v387_v48 = vpop.f32.mrf.mxu0 }
 0x2b7   :  { %v2886_v51 = vpop.f32.mrf.mxu1 }
 0x2b8   :  { %v2892_v49 = vpop.f32.mrf.mxu0 }
 0x2c1   :  { %v510_v53 = vpop.f32.mrf.mxu1 }
 0x2c2   :  { %v517_v54 = vadd.f32 %v2681_v52, %v510_v53  ;;  %v3693_v52 = vld [vmem:[%s4239_s7] ss:$0 sm:$0xff] }
 0x2c3   :  { %v3188_v55 = vpop.eup %3187  ;;  %v512_v56 = vpop.f32.mrf.mxu1 }
 0x2c4   :  { %v2684_v57 = vmul.f32 -1.442695, %v517_v54  ;;  %325 = vrot.lane.b32.xlu1 %v3188_v55, %s3419_s13  ;;  %v518_v61 = vadd.f32 %v2682_v60, %v512_v56 }
 0x2c5   :  { %v514_v58 = vpop.f32.mrf.mxu1 }
 0x2c6   :  { %3189 = vpow2.f32 %v2684_v57  ;;  %v2685_v18 = vmul.f32 -1.442695, %v518_v61 }
 0x2c7   :  { %v515_v59 = vpop.f32.mrf.mxu1  ;;  %3191 = vtanh.f32 %v518_v61 }
 0x2d3   :  { %v3190_v62 = vpop.eup %3189 }
 0x2d4   :  { %v522_v63 = vadd.f32 1.0, %v3190_v62  ;;  %v3192_v9 = vpop.eup %3191 }
 0x2d6   :  { %3193 = vrcp.f32 %v522_v63 }
 0x2d7   :  { %3195 = vpow2.f32 %v2675_v12 }
 0x2e3   :  { %v3194_v10 = vpop.eup %3193 }
 0x2e4   :  { %v533_v11 = vmul.f32 %v3194_v10, %v3192_v9  ;;  %v3196_v13 = vpop.eup %3195  ;;  %v532_v31 = vmul.f32 %v3194_v10, %v3589_v35 }
 0x2e5   :  { %v319_v14 = vadd.f32 1.0, %v3196_v13 }
 0x2e7   :  { %3197 = vrcp.f32 %v319_v14 }
 0x2e8   :  { %3199 = vpow2.f32 %v2685_v18 }
 0x2f4   :  { %v3198_v15 = vpop.eup %3197 }
 0x2f5   :  { %v3200_v19 = vpop.eup %3199  ;;  %v323_v20 = vmul.f32 0.0, %v3198_v15 }
 0x2f6   :  { %v529_v30 = vadd.f32 1.0, %v3200_v19 }
 0x336   :  { %v326_v16 = vpop.permute.xlu1 %325 }
 0x337   :  { %v328_v17 = vmul.f32 %v3198_v15, %v326_v16 }
 0x339   :  { %330 = vrot.lane.b32.xlu1 %v328_v17, %s3422_s12 }
 0x33d   :  { %535 = vrot.lane.b32.xlu1 %v533_v11, %s3419_s13 }
 0x3ab   :  { %v331_v21 = vpop.permute.xlu1 %330 }
 0x3ac   :  { %v3621_v22 = vadd.f32 %v331_v21, %v323_v20 }
 0x3ae   :  { %3201 = vtanh.f32 %v3621_v22 }
 0x3af   :  { %v536_v32 = vpop.permute.xlu1 %535  ;;  %3203 = vrcp.f32 %v529_v30 }
 0x3b0   :  { %v3625_v33 = vadd.f32 %v536_v32, %v532_v31  ;;  %v2693_v31 = vld [vmem:[%s4233_s0 + $0x28] sm:$0xff] }
 0x3b2   :  { %3205 = vtanh.f32 %v3625_v33 }
 0x3bb   :  { %v3202_v35 = vpop.eup %3201 }
 0x3bc   :  { %336 = vrot.lane.b32.xlu0 %v3202_v35, %s3419_s13  ;;  %v3204_v38 = vpop.eup %3203 }
 0x3bf   :  { %v3206_v39 = vpop.eup %3205 }
 0x3c0   :  { %v540_v40 = vmul.f32 %v3206_v39, %v3204_v38 }
 0x3c2   :  { %v541_v41 = vpack.c.bf16 %v540_v40, %v540_v40 }
 0x3c4   :  { %583 = vrot.lane.b32.xlu1 %v541_v41, %s3419_s13 }
 0x42e   :  { %v337_v42 = vpop.permute.xlu0 %336 }
 0x42f   :  { %v339_v43 = vmul.f32 %v3198_v15, %v337_v42  ;;  %v2692_v15 = vld [vmem:[%s4233_s0 + $0x20] sm:$0xff] }
 0x431   :  { %v340_v44 = vpack.c.bf16 %v339_v43, %v339_v43 }
 0x433   :  { %391 = vrot.lane.b32.xlu0 %v340_v44, %s3422_s12 }
 0x436   :  { %v584_v51 = vpop.permute.xlu1 %583 }
 0x4a5   :  { %v392_v50 = vpop.permute.xlu0 %391 }
 0x4a6   :  { %2898 = vmatmul.mubr.msk.bf16.vlgmr.msra.gmra.mxu0 %vm202_vm2, %v392_v50 }
 0x4a7   :  { %2902 = vmatpush3.bf16.msra.mxu0 %v3542_v24  ;;  %2905 = vmatprep.mubr.msk.bf16.mxu0 %vm3421_vm0, %v3420_v23 }
 0x4a8   :  { %2903 = vmatprep.subr.bf16.mxu0 %v3420_v23 }
 0x4ab   :  { %2904 = vmatpush3.bf16.msra.mxu0 %v3553_v25 }
 0x4ac   :  { %2909 = vmatprep.subr.bf16.mxu0 %v3420_v23 }
 0x4ae   :  { %2906 = vmatmul.mubr.msk.bf16.vlgmr.msra.gmra.mxu0 %vm202_vm2, %v392_v50 }
 0x4af   :  { %2910 = vmatpush3.bf16.msra.mxu0 %v3560_v26  ;;  %2917 = vmatprep.mubr.msk.bf16.mxu0 %vm3421_vm0, %v3420_v23 }
 0x4b0   :  { %2911 = vmatprep.subr.bf16.mxu0 %v3420_v23 }
 0x4b3   :  { %2912 = vmatpush3.bf16.msra.mxu0 %v3568_v27 }
 0x4b4   :  { %2913 = vmatprep.subr.bf16.mxu0 %v3420_v23 }
 0x4b7   :  { %2914 = vmatpush3.bf16.msra.mxu0 %v3577_v28 }
 0x4b8   :  { %2915 = vmatprep.subr.bf16.mxu0 %v3420_v23 }
 0x4bb   :  { %2916 = vmatpush3.bf16.msra.mxu0 %v3584_v29 }
 0x4bc   :  { %783 = vmatprep.subr.bf16.mxu0 %v3484_v0 }
 0x4be   :  { %2918 = vmatmul.mubr.msk.bf16.vlgmr.msra.gmra.mxu0 %vm120_vm1, %v584_v51 }
 0x4bf   :  { %784 = vmatpush1.bf16.msra.mxu0 %v3490_v2  ;;  %807 = vmatprep.mubr.bf16.mxu0 %v3418_v1 }
 0x4c0   :  { %785 = vmatprep.subr.bf16.mxu0 %v3496_v3 }
 0x4c3   :  { %786 = vmatpush1.bf16.msra.mxu0 %v3502_v4 }
 0x4c4   :  { %787 = vmatprep.subr.bf16.mxu0 %v3508_v5 }
 0x4c7   :  { %788 = vmatpush1.bf16.msra.mxu0 %v3514_v6 }
 0x4c8   :  { %789 = vmatprep.subr.bf16.mxu0 %v3520_v7 }
 0x4cb   :  { %790 = vmatpush1.bf16.msra.mxu0 %v3526_v8 }
 0x4cc   :  { %2955 = vmatprep.subr.bf16.mxu0 %v3420_v23 }
 0x4ce   :  { %2694 = vmatmul.mubr.msk.bf16.vlgmr.msra.gmra.mxu0 %vm120_vm1, %v584_v51 }
 0x4cf   :  { %2956 = vmatpush3.bf16.msra.mxu0 %v3631_v34  ;;  %2957 = vmatprep.mubr.msk.bf16.mxu0 %vm3421_vm0, %v3420_v23 }
 0x4d0   :  { %2961 = vmatprep.subr.bf16.mxu0 %v3420_v23 }
 0x566   :  { %v442_v53 = vpop.f32.mrf.mxu0 }
 0x567   :  { %v443_v54 = vadd.f32 %v442_v53, %v384_v46 }
 0x568   :  { %v2899_v55 = vpop.f32.mrf.mxu0 }
 0x569   :  { %v448_v56 = vadd.f32 %v3693_v52, %v443_v54 }
 0x56a   :  { %v445_v57 = vpop.f32.mrf.mxu0 }
 0x56b   :  { %3207 = vtanh.f32 %v448_v56  ;;  %v2680_v42 = vmul.f32 -1.442695, %v448_v56 }
 0x56c   :  { %v2900_v58 = vpop.f32.mrf.mxu0 }
 0x56e   :  { %v576_v59 = vpop.f32.mrf.mxu0 }
 0x570   :  { %v2907_v60 = vpop.f32.mrf.mxu0 }
 0x572   :  { %v579_v61 = vpop.f32.mrf.mxu0 }
 0x574   :  { %v2908_v62 = vpop.f32.mrf.mxu0 }
 0x578   :  { %v3208_v63 = vpop.eup %3207 }
 0x579   :  { %458 = vrot.lane.b32.xlu0 %v3208_v63, %s3423_s22 }
 0x57e   :  { %v622_v9 = vpop.f32.mrf.mxu0 }
 0x57f   :  { %v623_v10 = vadd.f32 %v622_v9, %v576_v59 }
 0x580   :  { %v2919_v11 = vpop.f32.mrf.mxu0 }
 0x581   :  { %v628_v12 = vadd.f32 %v3609_v45, %v623_v10 }
 0x582   :  { %v625_v13 = vpop.f32.mrf.mxu0 }
 0x583   :  { %3209 = vtanh.f32 %v628_v12  ;;  %v2688_v46 = vmul.f32 -1.442695, %v628_v12 }
 0x584   :  { %v2920_v14 = vpop.f32.mrf.mxu0 }
 0x58e   :  { %v809_v16 = vpop.f32.mrf.mxu0 }
 0x58f   :  { %v816_v17 = vadd.f32 %v2692_v15, %v809_v16 }
 0x590   :  { %v3210_v18 = vpop.eup %3209  ;;  %v811_v19 = vpop.f32.mrf.mxu0 }
 0x591   :  { %v2695_v20 = vmul.f32 -1.442695, %v816_v17  ;;  %638 = vrot.lane.b32.xlu1 %v3210_v18, %s3419_s13  ;;  %v817_v32 = vadd.f32 %v2693_v31, %v811_v19 }
 0x592   :  { %v813_v21 = vpop.f32.mrf.mxu0 }
 0x593   :  { %3211 = vpow2.f32 %v2695_v20  ;;  %v2696_v9 = vmul.f32 -1.442695, %v817_v32 }
 0x594   :  { %v814_v30 = vpop.f32.mrf.mxu0  ;;  %3213 = vtanh.f32 %v817_v32 }
 0x5a0   :  { %v3212_v35 = vpop.eup %3211 }
 0x5a1   :  { %v821_v38 = vadd.f32 1.0, %v3212_v35  ;;  %v3214_v39 = vpop.eup %3213 }
 0x5a3   :  { %3215 = vrcp.f32 %v821_v38 }
 0x5a4   :  { %3217 = vpow2.f32 %v2680_v42 }
 0x5b0   :  { %v3216_v40 = vpop.eup %3215 }
 0x5b1   :  { %v832_v41 = vmul.f32 %v3216_v40, %v3214_v39  ;;  %v3218_v43 = vpop.eup %3217  ;;  %v831_v15 = vmul.f32 %v3216_v40, %v3625_v33 }
 0x5b2   :  { %v452_v44 = vadd.f32 1.0, %v3218_v43 }
 0x5b4   :  { %3219 = vrcp.f32 %v452_v44 }
 0x5b5   :  { %3221 = vpow2.f32 %v2688_v46 }
 0x5c1   :  { %v3220_v47 = vpop.eup %3219 }
 0x5c2   :  { %v3222_v50 = vpop.eup %3221  ;;  %v456_v56 = vmul.f32 0.0, %v3220_v47 }
 0x5c3   :  { %v632_v51 = vadd.f32 1.0, %v3222_v50 }
 0x5c5   :  { %3223 = vrcp.f32 %v632_v51 }
 0x5d2   :  { %v3224_v53 = vpop.eup %3223 }
 0x5d3   :  { %v636_v60 = vmul.f32 %v3224_v53, %v3621_v22 }
 0x5eb   :  { %v459_v48 = vpop.permute.xlu0 %458 }
 0x5ec   :  { %v461_v49 = vmul.f32 %v3220_v47, %v459_v48 }
 0x5ee   :  { %463 = vrot.lane.b32.xlu0 %v461_v49, %s3424_s27 }
 0x603   :  { %v639_v54 = vpop.permute.xlu1 %638 }
 0x604   :  { %v641_v55 = vmul.f32 %v3224_v53, %v639_v54 }
 0x606   :  { %643 = vrot.lane.b32.xlu1 %v641_v55, %s3422_s12 }
 0x660   :  { %v464_v57 = vpop.permute.xlu0 %463 }
 0x661   :  { %v3707_v58 = vadd.f32 %v464_v57, %v456_v56 }
 0x663   :  { %3225 = vtanh.f32 %v3707_v58 }
 0x670   :  { %v3226_v59 = vpop.eup %3225 }
 0x671   :  { %469 = vrot.lane.b32.xlu0 %v3226_v59, %s3422_s12 }
 0x675   :  { %834 = vrot.lane.b32.xlu0 %v832_v41, %s3419_s13 }
 0x678   :  { %v644_v61 = vpop.permute.xlu1 %643 }
 0x679   :  { %v3713_v62 = vadd.f32 %v644_v61, %v636_v60 }
 0x67b   :  { %3227 = vtanh.f32 %v3713_v62 }
 0x67c   :  { %3229 = vpow2.f32 %v2696_v9 }
 0x688   :  { %v3228_v63 = vpop.eup %3227 }
 0x689   :  { %649 = vrot.lane.b32.xlu1 %v3228_v63, %s3419_s13  ;;  %v3230_v10 = vpop.eup %3229  ;;  %v2703_v63 = vld [vmem:[%s4233_s0 + $0x30] sm:$0xff] }
 0x68a   :  { %v828_v13 = vadd.f32 1.0, %v3230_v10 }
 0x68c   :  { %3231 = vrcp.f32 %v828_v13 }
 0x699   :  { %v3232_v22 = vpop.eup %3231 }
 0x6e3   :  { %v470_v11 = vpop.permute.xlu0 %469 }
 0x6e4   :  { %v472_v12 = vmul.f32 %v3220_v47, %v470_v11 }
 0x6e6   :  { %v654_v14 = vpack.c.bf16 %v472_v12, %v472_v12 }
 0x6e7   :  { %v835_v16 = vpop.permute.xlu0 %834 }
 0x6e8   :  { %v3718_v17 = vadd.f32 %v835_v16, %v831_v15  ;;  %656 = vrot.lane.b32.xlu1 %v654_v14, %s3425_s28  ;;  %v2704_v16 = vld [vmem:[%s4233_s0 + $0x38] sm:$0xff] }
 0x6ea   :  { %3233 = vtanh.f32 %v3718_v17 }
 0x6f7   :  { %v3234_v18 = vpop.eup %3233 }
 0x6f8   :  { %v839_v19 = vmul.f32 %v3234_v18, %v3232_v22 }
 0x6fa   :  { %v840_v20 = vpack.c.bf16 %v839_v19, %v839_v19 }
 0x6fb   :  { %v650_v21 = vpop.permute.xlu1 %649 }
 0x6fc   :  { %v652_v30 = vmul.f32 %v3224_v53, %v650_v21  ;;  %882 = vrot.lane.b32.xlu1 %v840_v20, %s3419_s13 }
 0x6fe   :  { %v653_v31 = vpack.c.bf16 %v652_v30, %v652_v30 }
 0x700   :  { %702 = vrot.lane.b32.xlu0 %v653_v31, %s3422_s12 }
 0x75a   :  { %v657_v33 = vpop.permute.xlu1 %656 }
 0x75b   :  { %2924 = vmatmul.mubr.msk.bf16.vlgmr.msra.gmra.mxu1 %vm347_vm3, %v657_v33 }
 0x75c   :  { %2928 = vmatpush3.bf16.msra.mxu1 %v3637_v36  ;;  %2931 = vmatprep.mubr.msk.bf16.mxu1 %vm3421_vm0, %v3420_v23 }
 0x75d   :  { %2929 = vmatprep.subr.bf16.mxu1 %v3420_v23 }
 0x760   :  { %2930 = vmatpush3.bf16.msra.mxu1 %v3648_v37 }
 0x761   :  { %2935 = vmatprep.subr.bf16.mxu1 %v3420_v23 }
 0x76e   :  { %v883_v35 = vpop.permute.xlu1 %882 }
 0x772   :  { %v703_v32 = vpop.permute.xlu0 %702 }
 0x773   :  { %2932 = vmatmul.mubr.msk.bf16.vlgmr.msra.gmra.mxu1 %vm202_vm2, %v703_v32 }
 0x774   :  { %2936 = vmatpush3.bf16.msra.mxu1 %v3542_v24  ;;  %2939 = vmatprep.mubr.msk.bf16.mxu1 %vm3421_vm0, %v3420_v23 }
 0x775   :  { %2937 = vmatprep.subr.bf16.mxu1 %v3420_v23 }
 0x778   :  { %2938 = vmatpush3.bf16.msra.mxu1 %v3553_v25 }
 0x779   :  { %2943 = vmatprep.subr.bf16.mxu1 %v3420_v23 }
 0x77b   :  { %2940 = vmatmul.mubr.msk.bf16.vlgmr.msra.gmra.mxu1 %vm202_vm2, %v703_v32 }
 0x77c   :  { %2944 = vmatpush3.bf16.msra.mxu1 %v3560_v26  ;;  %2951 = vmatprep.mubr.msk.bf16.mxu1 %vm3421_vm0, %v3420_v23 }
 0x77d   :  { %2945 = vmatprep.subr.bf16.mxu1 %v3420_v23 }
 0x780   :  { %2946 = vmatpush3.bf16.msra.mxu1 %v3568_v27 }
 0x781   :  { %2947 = vmatprep.subr.bf16.mxu1 %v3420_v23 }
 0x784   :  { %2948 = vmatpush3.bf16.msra.mxu1 %v3577_v28 }
 0x785   :  { %2949 = vmatprep.subr.bf16.mxu1 %v3420_v23 }
 0x788   :  { %2950 = vmatpush3.bf16.msra.mxu1 %v3584_v29 }
 0x789   :  { %1082 = vmatprep.subr.bf16.mxu1 %v3484_v0 }
 0x78b   :  { %2952 = vmatmul.mubr.msk.bf16.vlgmr.msra.gmra.mxu1 %vm120_vm1, %v883_v35 }
 0x78c   :  { %1083 = vmatpush1.bf16.msra.mxu1 %v3490_v2  ;;  %1106 = vmatprep.mubr.bf16.mxu1 %v3418_v1 }
 0x78d   :  { %1084 = vmatprep.subr.bf16.mxu1 %v3496_v3 }
 0x790   :  { %1085 = vmatpush1.bf16.msra.mxu1 %v3502_v4 }
 0x791   :  { %1086 = vmatprep.subr.bf16.mxu1 %v3508_v5 }
 0x794   :  { %1087 = vmatpush1.bf16.msra.mxu1 %v3514_v6 }
 0x795   :  { %1088 = vmatprep.subr.bf16.mxu1 %v3520_v7 }
 0x798   :  { %1089 = vmatpush1.bf16.msra.mxu1 %v3526_v8 }
 0x799   :  { %2989 = vmatprep.subr.bf16.mxu1 %v3420_v23 }
 0x79b   :  { %2705 = vmatmul.mubr.msk.bf16.vlgmr.msra.gmra.mxu1 %vm120_vm1, %v883_v35 }
 0x79c   :  { %2990 = vmatpush3.bf16.msra.mxu1 %v3631_v34  ;;  %2991 = vmatprep.mubr.msk.bf16.mxu1 %vm3421_vm0, %v3420_v23 }
 0x79d   :  { %2995 = vmatprep.subr.bf16.mxu1 %v3420_v23 }
 0x81b   :  { %v695_v38 = vpop.f32.mrf.mxu1 }
 0x81d   :  { %v2925_v39 = vpop.f32.mrf.mxu1 }
 0x81f   :  { %v698_v40 = vpop.f32.mrf.mxu1 }
 0x821   :  { %v2926_v41 = vpop.f32.mrf.mxu1 }
 0x833   :  { %v741_v42 = vpop.f32.mrf.mxu1 }
 0x834   :  { %v742_v43 = vadd.f32 %v741_v42, %v695_v38 }
 0x835   :  { %v2933_v44 = vpop.f32.mrf.mxu1 }
 0x836   :  { %v747_v46 = vadd.f32 %v3693_v52, %v742_v43 }
 0x837   :  { %v744_v47 = vpop.f32.mrf.mxu1 }
 0x838   :  { %3235 = vtanh.f32 %v747_v46  ;;  %v2691_v31 = vmul.f32 -1.442695, %v747_v46 }
 0x839   :  { %v2934_v48 = vpop.f32.mrf.mxu1 }
 0x83b   :  { %v875_v49 = vpop.f32.mrf.mxu1 }
 0x83d   :  { %v2941_v50 = vpop.f32.mrf.mxu1 }
 0x83f   :  { %v878_v51 = vpop.f32.mrf.mxu1 }
 0x841   :  { %v2942_v53 = vpop.f32.mrf.mxu1 }
 0x845   :  { %v3236_v54 = vpop.eup %3235 }
 0x846   :  { %757 = vrot.lane.b32.xlu0 %v3236_v54, %s3423_s22 }
 0x84b   :  { %v921_v55 = vpop.f32.mrf.mxu1 }
 0x84c   :  { %v922_v56 = vadd.f32 %v921_v55, %v875_v49 }
 0x84d   :  { %v2953_v57 = vpop.f32.mrf.mxu1 }
 0x84e   :  { %v927_v59 = vadd.f32 %v3609_v45, %v922_v56 }
 0x84f   :  { %v924_v60 = vpop.f32.mrf.mxu1 }
 0x850   :  { %3237 = vtanh.f32 %v927_v59  ;;  %v2699_v35 = vmul.f32 -1.442695, %v927_v59 }
 0x851   :  { %v2954_v61 = vpop.f32.mrf.mxu1 }
 0x85b   :  { %v1108_v9 = vpop.f32.mrf.mxu1 }
 0x85c   :  { %v1115_v10 = vadd.f32 %v2703_v63, %v1108_v9 }
 0x85d   :  { %v3238_v11 = vpop.eup %3237  ;;  %v1110_v12 = vpop.f32.mrf.mxu1 }
 0x85e   :  { %v2706_v13 = vmul.f32 -1.442695, %v1115_v10  ;;  %937 = vrot.lane.b32.xlu1 %v3238_v11, %s3419_s13  ;;  %v1116_v22 = vadd.f32 %v2704_v16, %v1110_v12 }
 0x85f   :  { %v1112_v14 = vpop.f32.mrf.mxu1 }
 0x860   :  { %3239 = vpow2.f32 %v2706_v13 }
 0x861   :  { %v1113_v15 = vpop.f32.mrf.mxu1  ;;  %3241 = vtanh.f32 %v1116_v22 }
 0x86d   :  { %v3240_v18 = vpop.eup %3239 }
 0x86e   :  { %v1120_v19 = vadd.f32 1.0, %v3240_v18  ;;  %v3242_v20 = vpop.eup %3241 }
 0x870   :  { %3243 = vrcp.f32 %v1120_v19 }
 0x871   :  { %3245 = vpow2.f32 %v2691_v31 }
 0x87d   :  { %v3244_v21 = vpop.eup %3243 }
 0x87e   :  { %v1131_v30 = vmul.f32 %v3244_v21, %v3242_v20  ;;  %v3246_v33 = vpop.eup %3245  ;;  %v1130_v63 = vmul.f32 %v3244_v21, %v3718_v17 }
 0x87f   :  { %v751_v32 = vadd.f32 1.0, %v3246_v33 }
 0x881   :  { %3247 = vrcp.f32 %v751_v32 }
 0x882   :  { %3249 = vpow2.f32 %v2699_v35  ;;  %v2714_v35 = vld [vmem:[%s4233_s0 + $0x40] sm:$0xff] }
 0x88e   :  { %v3248_v38 = vpop.eup %3247 }
 0x88f   :  { %v3250_v41 = vpop.eup %3249  ;;  %v755_v46 = vmul.f32 %v3248_v38, %v3707_v58  ;;  %v2707_v58 = vmul.f32 -1.442695, %v1116_v22 }
 0x890   :  { %v931_v42 = vadd.f32 1.0, %v3250_v41 }
 0x892   :  { %3251 = vrcp.f32 %v931_v42 }
 0x89f   :  { %v3252_v43 = vpop.eup %3251 }
 0x8a0   :  { %v935_v51 = vmul.f32 %v3252_v43, %v3713_v62 }
 0x8b8   :  { %v758_v39 = vpop.permute.xlu0 %757 }
 0x8b9   :  { %v760_v40 = vmul.f32 %v3248_v38, %v758_v39 }
 0x8bb   :  { %762 = vrot.lane.b32.xlu0 %v760_v40, %s3424_s27 }
 0x8d0   :  { %v938_v44 = vpop.permute.xlu1 %937 }
 0x8d1   :  { %v940_v47 = vmul.f32 %v3252_v43, %v938_v44 }
 0x8d3   :  { %942 = vrot.lane.b32.xlu1 %v940_v47, %s3422_s12 }
 0x92d   :  { %v763_v48 = vpop.permute.xlu0 %762 }
 0x92e   :  { %v3777_v49 = vadd.f32 %v763_v48, %v755_v46 }
 0x930   :  { %3253 = vtanh.f32 %v3777_v49 }
 0x93d   :  { %v3254_v50 = vpop.eup %3253 }
 0x93e   :  { %768 = vrot.lane.b32.xlu0 %v3254_v50, %s3422_s12 }
 0x942   :  { %1133 = vrot.lane.b32.xlu0 %v1131_v30, %s3419_s13 }
 0x945   :  { %v943_v53 = vpop.permute.xlu1 %942 }
 0x946   :  { %v3783_v54 = vadd.f32 %v943_v53, %v935_v51 }
 0x948   :  { %3255 = vtanh.f32 %v3783_v54 }
 0x949   :  { %3257 = vpow2.f32 %v2707_v58 }
 0x955   :  { %v3256_v55 = vpop.eup %3255 }
 0x956   :  { %948 = vrot.lane.b32.xlu1 %v3256_v55, %s3419_s13  ;;  %v3258_v56 = vpop.eup %3257 }
 0x957   :  { %v1127_v60 = vadd.f32 1.0, %v3258_v56 }
 0x959   :  { %3259 = vrcp.f32 %v1127_v60 }
 0x966   :  { %v3260_v62 = vpop.eup %3259 }
 0x9b0   :  { %v769_v57 = vpop.permute.xlu0 %768 }
 0x9b1   :  { %v771_v59 = vmul.f32 %v3248_v38, %v769_v57 }
 0x9b3   :  { %v953_v61 = vpack.c.bf16 %v771_v59, %v771_v59 }
 0x9b4   :  { %v1134_v9 = vpop.permute.xlu0 %1133 }
 0x9b5   :  { %v3788_v10 = vadd.f32 %v1134_v9, %v1130_v63  ;;  %955 = vrot.lane.b32.xlu1 %v953_v61, %s3425_s28 }
 0x9b7   :  { %3261 = vtanh.f32 %v3788_v10 }
 0x9c4   :  { %v3262_v11 = vpop.eup %3261 }
 0x9c5   :  { %v1138_v12 = vmul.f32 %v3262_v11, %v3260_v62 }
 0x9c7   :  { %v1139_v13 = vpack.c.bf16 %v1138_v12, %v1138_v12 }
 0x9c8   :  { %v949_v14 = vpop.permute.xlu1 %948 }
 0x9c9   :  { %v951_v15 = vmul.f32 %v3252_v43, %v949_v14  ;;  %1181 = vrot.lane.b32.xlu1 %v1139_v13, %s3419_s13 }
 0x9cb   :  { %v952_v16 = vpack.c.bf16 %v951_v15, %v951_v15 }
 0x9cd   :  { %1001 = vrot.lane.b32.xlu0 %v952_v16, %s3422_s12 }
 0xa27   :  { %v956_v17 = vpop.permute.xlu1 %955 }
 0xa28   :  { %2958 = vmatmul.mubr.msk.bf16.vlgmr.msra.gmra.mxu0 %vm347_vm3, %v956_v17 }
 0xa29   :  { %2962 = vmatpush3.bf16.msra.mxu0 %v3637_v36  ;;  %2965 = vmatprep.mubr.msk.bf16.mxu0 %vm3421_vm0, %v3420_v23 }
 0xa2a   :  { %2963 = vmatprep.subr.bf16.mxu0 %v3420_v23 }
 0xa2d   :  { %2964 = vmatpush3.bf16.msra.mxu0 %v3648_v37 }
 0xa2e   :  { %2969 = vmatprep.subr.bf16.mxu0 %v3420_v23 }
 0xa3f   :  { %v1002_v22 = vpop.permute.xlu0 %1001 }
 0xa40   :  { %2966 = vmatmul.mubr.msk.bf16.vlgmr.msra.gmra.mxu0 %vm202_vm2, %v1002_v22 }
 0xa41   :  { %2970 = vmatpush3.bf16.msra.mxu0 %v3542_v24  ;;  %2973 = vmatprep.mubr.msk.bf16.mxu0 %vm3421_vm0, %v3420_v23  ;;  %v1182_v24 = vpop.permute.xlu1 %1181 }
 0xa42   :  { %2971 = vmatprep.subr.bf16.mxu0 %v3420_v23 }
 0xa45   :  { %2972 = vmatpush3.bf16.msra.mxu0 %v3553_v25 }
 0xa46   :  { %2977 = vmatprep.subr.bf16.mxu0 %v3420_v23 }
 0xa48   :  { %2974 = vmatmul.mubr.msk.bf16.vlgmr.msra.gmra.mxu0 %vm202_vm2, %v1002_v22 }
 0xa49   :  { %2978 = vmatpush3.bf16.msra.mxu0 %v3560_v26  ;;  %2985 = vmatprep.mubr.msk.bf16.mxu0 %vm3421_vm0, %v3420_v23 }
 0xa4a   :  { %2979 = vmatprep.subr.bf16.mxu0 %v3420_v23 }
 0xa4d   :  { %2980 = vmatpush3.bf16.msra.mxu0 %v3568_v27 }
 0xa4e   :  { %2981 = vmatprep.subr.bf16.mxu0 %v3420_v23 }
 0xa51   :  { %2982 = vmatpush3.bf16.msra.mxu0 %v3577_v28 }
 0xa52   :  { %2983 = vmatprep.subr.bf16.mxu0 %v3420_v23 }
 0xa55   :  { %2984 = vmatpush3.bf16.msra.mxu0 %v3584_v29 }
 0xa56   :  { %1381 = vmatprep.subr.bf16.mxu0 %v3484_v0 }
 0xa58   :  { %2986 = vmatmul.mubr.msk.bf16.vlgmr.msra.gmra.mxu0 %vm120_vm1, %v1182_v24 }
 0xa59   :  { %1382 = vmatpush1.bf16.msra.mxu0 %v3490_v2  ;;  %1405 = vmatprep.mubr.bf16.mxu0 %v3418_v1 }
 0xa5a   :  { %1383 = vmatprep.subr.bf16.mxu0 %v3496_v3 }
 0xa5d   :  { %1384 = vmatpush1.bf16.msra.mxu0 %v3502_v4 }
 0xa5e   :  { %1385 = vmatprep.subr.bf16.mxu0 %v3508_v5 }
 0xa61   :  { %1386 = vmatpush1.bf16.msra.mxu0 %v3514_v6 }
 0xa62   :  { %1387 = vmatprep.subr.bf16.mxu0 %v3520_v7 }
 0xa65   :  { %1388 = vmatpush1.bf16.msra.mxu0 %v3526_v8 }
 0xa66   :  { %3023 = vmatprep.subr.bf16.mxu0 %v3420_v23 }
 0xa68   :  { %2716 = vmatmul.mubr.msk.bf16.vlgmr.msra.gmra.mxu0 %vm120_vm1, %v1182_v24 }
 0xa69   :  { %3024 = vmatpush3.bf16.msra.mxu0 %v3631_v34  ;;  %3025 = vmatprep.mubr.msk.bf16.mxu0 %vm3421_vm0, %v3420_v23 }
 0xa6a   :  { %3029 = vmatprep.subr.bf16.mxu0 %v3420_v23 }
 0xae8   :  { %v994_v0 = vpop.f32.mrf.mxu0 }
 0xaea   :  { %v2959_v2 = vpop.f32.mrf.mxu0 }
 0xaec   :  { %v997_v3 = vpop.f32.mrf.mxu0 }
 0xaee   :  { %v2960_v4 = vpop.f32.mrf.mxu0 }
 0xb00   :  { %v1040_v5 = vpop.f32.mrf.mxu0 }
 0xb01   :  { %v1041_v6 = vadd.f32 %v1040_v5, %v994_v0 }
 0xb02   :  { %v2967_v7 = vpop.f32.mrf.mxu0 }
 0xb03   :  { %v1046_v8 = vadd.f32 %v3693_v52, %v1041_v6 }
 0xb04   :  { %v1043_v25 = vpop.f32.mrf.mxu0 }
 0xb05   :  { %3263 = vtanh.f32 %v1046_v8  ;;  %v2702_v55 = vmul.f32 -1.442695, %v1046_v8 }
 0xb06   :  { %v2968_v26 = vpop.f32.mrf.mxu0 }
 0xb08   :  { %v1174_v27 = vpop.f32.mrf.mxu0 }
 0xb0a   :  { %v2975_v28 = vpop.f32.mrf.mxu0 }
 0xb0c   :  { %v1177_v29 = vpop.f32.mrf.mxu0 }
 0xb0e   :  { %v2976_v18 = vpop.f32.mrf.mxu0 }
 0xb12   :  { %v3264_v19 = vpop.eup %3263 }
 0xb13   :  { %1056 = vrot.lane.b32.xlu0 %v3264_v19, %s3423_s22 }
 0xb18   :  { %v1220_v20 = vpop.f32.mrf.mxu0 }
 0xb19   :  { %v1221_v21 = vadd.f32 %v1220_v20, %v1174_v27 }
 0xb1a   :  { %v2987_v30 = vpop.f32.mrf.mxu0 }
 0xb1b   :  { %v1226_v31 = vadd.f32 %v3609_v45, %v1221_v21  ;;  %v2715_v45 = vld [vmem:[%s4233_s0 + $0x48] sm:$0xff]  ;;  %v3901_v30 = vld [vmem:[%s4235_s2 + $0x10] sm:$0xff]  }
 0xb1c   :  { %v1223_v33 = vpop.f32.mrf.mxu0  ;;  %v3875_v21 = vld [vmem:[%s4234_s3 + $0x8] sm:$0xff]  }
 0xb1d   :  { %3265 = vtanh.f32 %v1226_v31  ;;  %v2710_v57 = vmul.f32 -1.442695, %v1226_v31  ;;  %v3908_v31 = vld [vmem:[%s4235_s2 + $0x8] sm:$0xff]   ;;  %v3915_v33 = vld [vmem:[%s4235_s2] sm:$0xff]  }
 0xb1e   :  { %v2988_v32 = vpop.f32.mrf.mxu0 }
 0xb1f   :  { %v3921_v32 = vld [vmem:[%s4232_s1 + $0x34] ss:$8 sps:$4 sm:$0xff]  }
 0xb28   :  { %v1407_v38 = vpop.f32.mrf.mxu0 }
 0xb29   :  { %v1414_v39 = vadd.f32 %v2714_v35, %v1407_v38  ;;  %v3928_v38 = vld [vmem:[%s4232_s1 + $0x30] ss:$8 sps:$4 sm:$0xff]  }
 0xb2a   :  { %v3266_v40 = vpop.eup %3265  ;;  %v1409_v41 = vpop.f32.mrf.mxu0 }
 0xb2b   :  { %v2717_v42 = vmul.f32 -1.442695, %v1414_v39  ;;  %1236 = vrot.lane.b32.xlu1 %v3266_v40, %s3419_s13  ;;  %v1415_v47 = vadd.f32 %v2715_v45, %v1409_v41  ;;  %v3935_v39 = vld [vmem:[%s4232_s1 + $0x24] ss:$8 sps:$4 sm:$0xff]   ;;  %v3941_v40 = vld [vmem:[%s4232_s1 + $0x20] ss:$8 sps:$4 sm:$0xff]  }
 0xb2c   :  { %v1411_v43 = vpop.f32.mrf.mxu0  ;;  %v3947_v41 = vld [vmem:[%s4232_s1 + $0x14] ss:$8 sps:$4 sm:$0xff]  }
 0xb2d   :  { %3267 = vpow2.f32 %v2717_v42  ;;  %v3953_v42 = vld [vmem:[%s4232_s1 + $0x10] ss:$8 sps:$4 sm:$0xff]   ;;  %v3959_v43 = vld [vmem:[%s4232_s1 + $0x4] ss:$8 sps:$4 sm:$0xff]  }
 0xb2e   :  { %v1412_v44 = vpop.f32.mrf.mxu0  ;;  %3269 = vtanh.f32 %v1415_v47 }
 0xb2f   :  { %v3965_v44 = vld [vmem:[%s4232_s1] ss:$8 sps:$4 sm:$0xff]  }
 0xb3a   :  { %v3268_v46 = vpop.eup %3267 }
 0xb3b   :  { %v1419_v48 = vadd.f32 1.0, %v3268_v46  ;;  %v3270_v50 = vpop.eup %3269 }
 0xb3d   :  { %3271 = vrcp.f32 %v1419_v48 }
 0xb3e   :  { %3273 = vpow2.f32 %v2702_v55 }
 0xb4a   :  { %v3272_v51 = vpop.eup %3271 }
 0xb4b   :  { %v1430_v53 = vmul.f32 %v3272_v51, %v3270_v50  ;;  %v3274_v58 = vpop.eup %3273  ;;  %v1429_v7 = vmul.f32 %v3272_v51, %v3788_v10 }
 0xb4c   :  { %v1050_v56 = vadd.f32 1.0, %v3274_v58 }
 0xb4e   :  { %3275 = vrcp.f32 %v1050_v56 }
 0xb4f   :  { %3277 = vpow2.f32 %v2710_v57 }
 0xb5b   :  { %v3276_v59 = vpop.eup %3275 }
 0xb5c   :  { %v3278_v63 = vpop.eup %3277  ;;  %v1054_v13 = vmul.f32 %v3276_v59, %v3777_v49  ;;  %v2718_v49 = vmul.f32 -1.442695, %v1415_v47 }
 0xb5d   :  { %v1230_v9 = vadd.f32 1.0, %v3278_v63 }
 0xb5f   :  { %3279 = vrcp.f32 %v1230_v9 }
 0xb6c   :  { %v3280_v62 = vpop.eup %3279 }
 0xb6d   :  { %v1234_v17 = vmul.f32 %v3280_v62, %v3783_v54 }
 0xb85   :  { %v1057_v60 = vpop.permute.xlu0 %1056 }
 0xb86   :  { %v1059_v61 = vmul.f32 %v3276_v59, %v1057_v60 }
 0xb88   :  { %1061 = vrot.lane.b32.xlu0 %v1059_v61, %s3424_s27 }
 0xb9d   :  { %v1237_v11 = vpop.permute.xlu1 %1236 }
 0xb9e   :  { %v1239_v12 = vmul.f32 %v3280_v62, %v1237_v11  ;;  %v3979_v11 = vld [vmem:[%s4236_s4] ss:$0 sm:$0xff] }
 0xba0   :  { %1241 = vrot.lane.b32.xlu1 %v1239_v12, %s3422_s12 }
 0xbfa   :  { %v1062_v14 = vpop.permute.xlu0 %1061 }
 0xbfb   :  { %v3847_v15 = vadd.f32 %v1062_v14, %v1054_v13  ;;  %v2725_v14 = vld [vmem:[%s4233_s0 + $0x50] sm:$0xff] }
 0xbfd   :  { %3281 = vtanh.f32 %v3847_v15 }
 0xc0a   :  { %v3282_v16 = vpop.eup %3281 }
 0xc0b   :  { %1067 = vrot.lane.b32.xlu0 %v3282_v16, %s3422_s12 }
 0xc0f   :  { %1432 = vrot.lane.b32.xlu0 %v1430_v53, %s3419_s13 }
 0xc12   :  { %v1242_v22 = vpop.permute.xlu1 %1241 }
 0xc13   :  { %v3853_v24 = vadd.f32 %v1242_v22, %v1234_v17 }
 0xc15   :  { %3283 = vtanh.f32 %v3853_v24 }
 0xc16   :  { %3285 = vpow2.f32 %v2718_v49 }
 0xc22   :  { %v3284_v0 = vpop.eup %3283 }
 0xc23   :  { %1247 = vrot.lane.b32.xlu1 %v3284_v0, %s3419_s13  ;;  %v3286_v2 = vpop.eup %3285 }
 0xc24   :  { %v1426_v5 = vadd.f32 1.0, %v3286_v2 }
 0xc26   :  { %3287 = vrcp.f32 %v1426_v5 }
 0xc33   :  { %v3288_v54 = vpop.eup %3287 }
 0xc7d   :  { %v1068_v3 = vpop.permute.xlu0 %1067 }
 0xc7e   :  { %v1070_v4 = vmul.f32 %v3276_v59, %v1068_v3 }
 0xc80   :  { %v1252_v6 = vpack.c.bf16 %v1070_v4, %v1070_v4  ;;  %v2726_v4 = vld [vmem:[%s4233_s0 + $0x58] sm:$0xff] }
 0xc81   :  { %v1433_v8 = vpop.permute.xlu0 %1432 }
 0xc82   :  { %v3858_v25 = vadd.f32 %v1433_v8, %v1429_v7  ;;  %1254 = vrot.lane.b32.xlu1 %v1252_v6, %s3425_s28 }
 0xc84   :  { %3289 = vtanh.f32 %v3858_v25 }
 0xc91   :  { %v3290_v26 = vpop.eup %3289 }
 0xc92   :  { %v1437_v27 = vmul.f32 %v3290_v26, %v3288_v54 }
 0xc94   :  { %v1438_v28 = vpack.c.bf16 %v1437_v27, %v1437_v27 }
 0xc95   :  { %v1248_v29 = vpop.permute.xlu1 %1247 }
 0xc96   :  { %v1250_v18 = vmul.f32 %v3280_v62, %v1248_v29  ;;  %1480 = vrot.lane.b32.xlu1 %v1438_v28, %s3419_s13 }
 0xc98   :  { %v1251_v19 = vpack.c.bf16 %v1250_v18, %v1250_v18 }
 0xc9a   :  { %1300 = vrot.lane.b32.xlu0 %v1251_v19, %s3422_s12 }
 0xcf4   :  { %v1255_v10 = vpop.permute.xlu1 %1254 }
 0xcf5   :  { %2992 = vmatmul.mubr.msk.bf16.vlgmr.msra.gmra.mxu1 %vm347_vm3, %v1255_v10 }
 0xcf6   :  { %2996 = vmatpush3.bf16.msra.mxu1 %v3637_v36  ;;  %2999 = vmatprep.mubr.msk.bf16.mxu1 %vm3421_vm0, %v3420_v23  ;;  %v3884_v36 = vld [vmem:[%s4234_s3] sm:$0xff]  }
 0xcf7   :  { %2997 = vmatprep.subr.bf16.mxu1 %v3420_v23 }
 0xcfa   :  { %2998 = vmatpush3.bf16.msra.mxu1 %v3648_v37  ;;  %v3892_v37 = vld [vmem:[%s4235_s2 + $0x18] sm:$0xff]  }
 0xcfb   :  { %3003 = vmatprep.subr.bf16.mxu1 %v3420_v23 }
 0xd08   :  { %v1481_v35 = vpop.permute.xlu1 %1480 }
 0xd0c   :  { %v1301_v20 = vpop.permute.xlu0 %1300 }
 0xd0d   :  { %3000 = vmatmul.mubr.msk.bf16.vlgmr.msra.gmra.mxu1 %vm202_vm2, %v1301_v20 }
 0xd0e   :  { %3004 = vmatpush3.bf16.msra.mxu1 %v3875_v21  ;;  %3007 = vmatprep.mubr.msk.bf16.mxu1 %vm3421_vm0, %v3420_v23 }
 0xd0f   :  { %3005 = vmatprep.subr.bf16.mxu1 %v3420_v23 }
 0xd12   :  { %3006 = vmatpush3.bf16.msra.mxu1 %v3884_v36 }
 0xd13   :  { %3011 = vmatprep.subr.bf16.mxu1 %v3420_v23 }
 0xd15   :  { %3008 = vmatmul.mubr.msk.bf16.vlgmr.msra.gmra.mxu1 %vm202_vm2, %v1301_v20 }
 0xd16   :  { %3012 = vmatpush3.bf16.msra.mxu1 %v3892_v37  ;;  %3019 = vmatprep.mubr.msk.bf16.mxu1 %vm3421_vm0, %v3420_v23 }
 0xd17   :  { %3013 = vmatprep.subr.bf16.mxu1 %v3420_v23 }
 0xd1a   :  { %3014 = vmatpush3.bf16.msra.mxu1 %v3901_v30 }
 0xd1b   :  { %3015 = vmatprep.subr.bf16.mxu1 %v3420_v23 }
 0xd1e   :  { %3016 = vmatpush3.bf16.msra.mxu1 %v3908_v31 }
 0xd1f   :  { %3017 = vmatprep.subr.bf16.mxu1 %v3420_v23 }
 0xd22   :  { %3018 = vmatpush3.bf16.msra.mxu1 %v3915_v33 }
 0xd23   :  { %1680 = vmatprep.subr.bf16.mxu1 %v3921_v32 }
 0xd25   :  { %3020 = vmatmul.mubr.msk.bf16.vlgmr.msra.gmra.mxu1 %vm120_vm1, %v1481_v35 }
 0xd26   :  { %1681 = vmatpush1.bf16.msra.mxu1 %v3928_v38  ;;  %1704 = vmatprep.mubr.bf16.mxu1 %v3418_v1 }
 0xd27   :  { %1682 = vmatprep.subr.bf16.mxu1 %v3935_v39 }
 0xd2a   :  { %1683 = vmatpush1.bf16.msra.mxu1 %v3941_v40 }
 0xd2b   :  { %1684 = vmatprep.subr.bf16.mxu1 %v3947_v41 }
 0xd2e   :  { %1685 = vmatpush1.bf16.msra.mxu1 %v3953_v42 }
 0xd2f   :  { %1686 = vmatprep.subr.bf16.mxu1 %v3959_v43 }
 0xd32   :  { %1687 = vmatpush1.bf16.msra.mxu1 %v3965_v44 }
 0xd33   :  { %3057 = vmatprep.subr.bf16.mxu1 %v3420_v23 }
 0xd35   :  { %2727 = vmatmul.mubr.msk.bf16.vlgmr.msra.gmra.mxu1 %vm120_vm1, %v1481_v35 }
 0xd36   :  { %3058 = vmatpush3.bf16.msra.mxu1 %v3631_v34  ;;  %3059 = vmatprep.mubr.msk.bf16.mxu1 %vm3421_vm0, %v3420_v23 }
 0xd37   :  { %3063 = vmatprep.subr.bf16.mxu1 %v3420_v23 }
 0xdb5   :  { %v1293_v45 = vpop.f32.mrf.mxu1 }
 0xdb7   :  { %v2993_v47 = vpop.f32.mrf.mxu1 }
 0xdb9   :  { %v1296_v46 = vpop.f32.mrf.mxu1 }
 0xdbb   :  { %v2994_v48 = vpop.f32.mrf.mxu1 }
 0xdcd   :  { %v1339_v50 = vpop.f32.mrf.mxu1 }
 0xdce   :  { %v1340_v51 = vadd.f32 %v1339_v50, %v1293_v45 }
 0xdcf   :  { %v3001_v53 = vpop.f32.mrf.mxu1 }
 0xdd0   :  { %v1345_v55 = vadd.f32 %v3693_v52, %v1340_v51 }
 0xdd1   :  { %v1342_v58 = vpop.f32.mrf.mxu1 }
 0xdd2   :  { %3291 = vtanh.f32 %v1345_v55  ;;  %v2713_v27 = vmul.f32 -1.442695, %v1345_v55 }
 0xdd3   :  { %v3002_v56 = vpop.f32.mrf.mxu1 }
 0xdd5   :  { %v1473_v57 = vpop.f32.mrf.mxu1 }
 0xdd7   :  { %v3009_v59 = vpop.f32.mrf.mxu1 }
 0xdd9   :  { %v1476_v34 = vpop.f32.mrf.mxu1 }
 0xddb   :  { %v3010_v60 = vpop.f32.mrf.mxu1 }
 0xddf   :  { %v3292_v61 = vpop.eup %3291 }
 0xde0   :  { %1355 = vrot.lane.b32.xlu0 %v3292_v61, %s3423_s22 }
 0xde5   :  { %v1519_v63 = vpop.f32.mrf.mxu1 }
 0xde6   :  { %v1520_v9 = vadd.f32 %v1519_v63, %v1473_v57 }
 0xde7   :  { %v3021_v62 = vpop.f32.mrf.mxu1 }
 0xde8   :  { %v1525_v52 = vadd.f32 %v3979_v11, %v1520_v9 }
 0xde9   :  { %v1522_v12 = vpop.f32.mrf.mxu1 }
 0xdea   :  { %3293 = vtanh.f32 %v1525_v52  ;;  %v2721_v18 = vmul.f32 -1.442695, %v1525_v52 }
 0xdeb   :  { %v3022_v13 = vpop.f32.mrf.mxu1 }
 0xdf5   :  { %v1706_v16 = vpop.f32.mrf.mxu1 }
 0xdf6   :  { %v1713_v17 = vadd.f32 %v2725_v14, %v1706_v16 }
 0xdf7   :  { %v3294_v22 = vpop.eup %3293  ;;  %v1708_v0 = vpop.f32.mrf.mxu1 }
 0xdf8   :  { %v2728_v49 = vmul.f32 -1.442695, %v1713_v17  ;;  %1535 = vrot.lane.b32.xlu1 %v3294_v22, %s3419_s13  ;;  %v1714_v5 = vadd.f32 %v2726_v4, %v1708_v0 }
 0xdf9   :  { %v1710_v2 = vpop.f32.mrf.mxu1 }
 0xdfa   :  { %3295 = vpow2.f32 %v2728_v49  ;;  %v4013_v49 = vld [vmem:[%s4238_s5 + $0x8] sm:$0xff]   ;;  %v4022_v2 = vld [vmem:[%s4238_s5] sm:$0xff]  }
 0xdfb   :  { %v1711_v3 = vpop.f32.mrf.mxu1  ;;  %3297 = vtanh.f32 %v1714_v5 }
 0xe07   :  { %v3296_v6 = vpop.eup %3295 }
 0xe08   :  { %v1718_v7 = vadd.f32 1.0, %v3296_v6  ;;  %v3298_v8 = vpop.eup %3297 }
 0xe0a   :  { %3299 = vrcp.f32 %v1718_v7 }
 0xe0b   :  { %3301 = vpow2.f32 %v2713_v27 }
 0xe17   :  { %v3300_v54 = vpop.eup %3299 }
 0xe18   :  { %v1729_v26 = vmul.f32 %v3300_v54, %v3298_v8  ;;  %v3302_v28 = vpop.eup %3301  ;;  %v1728_v62 = vmul.f32 %v3300_v54, %v3858_v25 }
 0xe19   :  { %v1349_v29 = vadd.f32 1.0, %v3302_v28 }
 0xe1b   :  { %3303 = vrcp.f32 %v1349_v29  ;;  %v4067_v29 = vld [vmem:[%s4239_s7] ss:$0 sm:$0xff] }
 0xe1c   :  { %3305 = vpow2.f32 %v2721_v18 }
 0xe28   :  { %v3304_v19 = vpop.eup %3303 }
 0xe29   :  { %v3306_v35 = vpop.eup %3305  ;;  %v1353_v50 = vmul.f32 %v3304_v19, %v3847_v15  ;;  %v2729_v15 = vmul.f32 -1.442695, %v1714_v5  ;;  %v4058_v5 = vld [vmem:[%s4237_s6] sm:$0xff]  }
 0xe2a   :  { %v1529_v45 = vadd.f32 1.0, %v3306_v35 }
 0xe2c   :  { %3307 = vrcp.f32 %v1529_v45 }
 0xe39   :  { %v3308_v47 = vpop.eup %3307 }
 0xe3a   :  { %v1533_v58 = vmul.f32 %v3308_v47, %v3853_v24 }
 0xe52   :  { %v1356_v10 = vpop.permute.xlu0 %1355 }
 0xe53   :  { %v1358_v20 = vmul.f32 %v3304_v19, %v1356_v10 }
 0xe55   :  { %1360 = vrot.lane.b32.xlu0 %v1358_v20, %s3424_s27 }
 0xe6a   :  { %v1536_v46 = vpop.permute.xlu1 %1535 }
 0xe6b   :  { %v1538_v48 = vmul.f32 %v3308_v47, %v1536_v46 }
 0xe6d   :  { %1540 = vrot.lane.b32.xlu1 %v1538_v48, %s3422_s12 }
 0xec7   :  { %v1361_v51 = vpop.permute.xlu0 %1360 }
 0xec8   :  { %v3992_v53 = vadd.f32 %v1361_v51, %v1353_v50 }
 0xeca   :  { %3309 = vtanh.f32 %v3992_v53 }
 0xed7   :  { %v3310_v55 = vpop.eup %3309 }
 0xed8   :  { %1366 = vrot.lane.b32.xlu0 %v3310_v55, %s3422_s12 }
 0xedc   :  { %1731 = vrot.lane.b32.xlu0 %v1729_v26, %s3419_s13 }
 0xedf   :  { %v1541_v56 = vpop.permute.xlu1 %1540 }
 0xee0   :  { %v3998_v57 = vadd.f32 %v1541_v56, %v1533_v58 }
 0xee2   :  { %3311 = vtanh.f32 %v3998_v57 }
 0xee3   :  { %3313 = vpow2.f32 %v2729_v15 }
 0xeef   :  { %v3312_v59 = vpop.eup %3311 }
 0xef0   :  { %1546 = vrot.lane.b32.xlu1 %v3312_v59, %s3419_s13  ;;  %v3314_v34 = vpop.eup %3313  ;;  %v2736_v59 = vld [vmem:[%s4233_s0 + $0x60] sm:$0xff] }
 0xef1   :  { %v1725_v63 = vadd.f32 1.0, %v3314_v34 }
 0xef3   :  { %3315 = vrcp.f32 %v1725_v63 }
 0xf00   :  { %v3316_v24 = vpop.eup %3315 }
 0xf4a   :  { %v1367_v60 = vpop.permute.xlu0 %1366 }
 0xf4b   :  { %v1369_v61 = vmul.f32 %v3304_v19, %v1367_v60 }
 0xf4d   :  { %v1551_v9 = vpack.c.bf16 %v1369_v61, %v1369_v61 }
 0xf4e   :  { %v1732_v52 = vpop.permute.xlu0 %1731 }
 0xf4f   :  { %v4003_v12 = vadd.f32 %v1732_v52, %v1728_v62  ;;  %1553 = vrot.lane.b32.xlu1 %v1551_v9, %s3425_s28  ;;  %v2737_v52 = vld [vmem:[%s4233_s0 + $0x68] sm:$0xff] }
 0xf51   :  { %3317 = vtanh.f32 %v4003_v12 }
 0xf5e   :  { %v3318_v13 = vpop.eup %3317 }
 0xf5f   :  { %v1736_v14 = vmul.f32 %v3318_v13, %v3316_v24 }
 0xf61   :  { %v1737_v16 = vpack.c.bf16 %v1736_v14, %v1736_v14 }
 0xf62   :  { %v1547_v17 = vpop.permute.xlu1 %1546 }
 0xf63   :  { %v1549_v22 = vmul.f32 %v3308_v47, %v1547_v17  ;;  %1779 = vrot.lane.b32.xlu1 %v1737_v16, %s3419_s13 }
 0xf65   :  { %v1550_v0 = vpack.c.bf16 %v1549_v22, %v1549_v22 }
 0xf67   :  { %1599 = vrot.lane.b32.xlu0 %v1550_v0, %s3422_s12 }
 0xfc1   :  { %v1554_v25 = vpop.permute.xlu1 %1553 }
 0xfc2   :  { %3026 = vmatmul.mubr.msk.bf16.vlgmr.msra.gmra.mxu0 %vm347_vm3, %v1554_v25 }
 0xfc3   :  { %3030 = vmatpush3.bf16.msra.mxu0 %v4013_v49  ;;  %3033 = vmatprep.mubr.msk.bf16.mxu0 %vm3421_vm0, %v3420_v23 }
 0xfc4   :  { %3031 = vmatprep.subr.bf16.mxu0 %v3420_v23 }
 0xfc7   :  { %3032 = vmatpush3.bf16.msra.mxu0 %v4022_v2 }
 0xfc8   :  { %3037 = vmatprep.subr.bf16.mxu0 %v3420_v23 }
 0xfd5   :  { %v1780_v4 = vpop.permute.xlu1 %1779 }
 0xfd9   :  { %v1600_v3 = vpop.permute.xlu0 %1599 }
 0xfda   :  { %3034 = vmatmul.mubr.msk.bf16.vlgmr.msra.gmra.mxu0 %vm202_vm2, %v1600_v3 }
 0xfdb   :  { %3038 = vmatpush3.bf16.msra.mxu0 %v3875_v21  ;;  %3041 = vmatprep.mubr.msk.bf16.mxu0 %vm3421_vm0, %v3420_v23 }
 0xfdc   :  { %3039 = vmatprep.subr.bf16.mxu0 %v3420_v23 }
 0xfdf   :  { %3040 = vmatpush3.bf16.msra.mxu0 %v3884_v36 }
 0xfe0   :  { %3045 = vmatprep.subr.bf16.mxu0 %v3420_v23 }
 0xfe2   :  { %3042 = vmatmul.mubr.msk.bf16.vlgmr.msra.gmra.mxu0 %vm202_vm2, %v1600_v3 }
 0xfe3   :  { %3046 = vmatpush3.bf16.msra.mxu0 %v3892_v37  ;;  %3053 = vmatprep.mubr.msk.bf16.mxu0 %vm3421_vm0, %v3420_v23 }
 0xfe4   :  { %3047 = vmatprep.subr.bf16.mxu0 %v3420_v23 }
 0xfe7   :  { %3048 = vmatpush3.bf16.msra.mxu0 %v3901_v30 }
 0xfe8   :  { %3049 = vmatprep.subr.bf16.mxu0 %v3420_v23 }
 0xfeb   :  { %3050 = vmatpush3.bf16.msra.mxu0 %v3908_v31 }
 0xfec   :  { %3051 = vmatprep.subr.bf16.mxu0 %v3420_v23 }
 0xfef   :  { %3052 = vmatpush3.bf16.msra.mxu0 %v3915_v33 }
 0xff0   :  { %1979 = vmatprep.subr.bf16.mxu0 %v3921_v32 }
 0xff2   :  { %3054 = vmatmul.mubr.msk.bf16.vlgmr.msra.gmra.mxu0 %vm120_vm1, %v1780_v4 }
 0xff3   :  { %1980 = vmatpush1.bf16.msra.mxu0 %v3928_v38  ;;  %2003 = vmatprep.mubr.bf16.mxu0 %v3418_v1 }
 0xff4   :  { %1981 = vmatprep.subr.bf16.mxu0 %v3935_v39 }
 0xff7   :  { %1982 = vmatpush1.bf16.msra.mxu0 %v3941_v40 }
 0xff8   :  { %1983 = vmatprep.subr.bf16.mxu0 %v3947_v41 }
 0xffb   :  { %1984 = vmatpush1.bf16.msra.mxu0 %v3953_v42 }
 0xffc   :  { %1985 = vmatprep.subr.bf16.mxu0 %v3959_v43 }
 0xfff   :  { %1986 = vmatpush1.bf16.msra.mxu0 %v3965_v44 }
0x1000   :  { %3091 = vmatprep.subr.bf16.mxu0 %v3420_v23 }
0x1002   :  { %2738 = vmatmul.mubr.msk.bf16.vlgmr.msra.gmra.mxu0 %vm120_vm1, %v1780_v4 }
0x1003   :  { %3092 = vmatpush3.bf16.msra.mxu0 %v4058_v5  ;;  %3093 = vmatprep.mubr.msk.bf16.mxu0 %vm3421_vm0, %v3420_v23 }
0x1004   :  { %3097 = vmatprep.subr.bf16.mxu0 %v3420_v23 }
0x1082   :  { %v1592_v6 = vpop.f32.mrf.mxu0 }
0x1084   :  { %v3027_v7 = vpop.f32.mrf.mxu0 }
0x1086   :  { %v1595_v8 = vpop.f32.mrf.mxu0 }
0x1088   :  { %v3028_v54 = vpop.f32.mrf.mxu0 }
0x109a   :  { %v1638_v26 = vpop.f32.mrf.mxu0 }
0x109b   :  { %v1639_v27 = vadd.f32 %v1638_v26, %v1592_v6 }
0x109c   :  { %v3035_v28 = vpop.f32.mrf.mxu0 }
0x109d   :  { %v1644_v18 = vadd.f32 %v4067_v29, %v1639_v27 }
0x109e   :  { %v1641_v19 = vpop.f32.mrf.mxu0 }
0x109f   :  { %3319 = vtanh.f32 %v1644_v18  ;;  %v2724_v0 = vmul.f32 -1.442695, %v1644_v18 }
0x10a0   :  { %v3036_v10 = vpop.f32.mrf.mxu0 }
0x10a2   :  { %v1772_v20 = vpop.f32.mrf.mxu0 }
0x10a4   :  { %v3043_v35 = vpop.f32.mrf.mxu0 }
0x10a6   :  { %v1775_v45 = vpop.f32.mrf.mxu0 }
0x10a8   :  { %v3044_v47 = vpop.f32.mrf.mxu0 }
0x10ac   :  { %v3320_v46 = vpop.eup %3319 }
0x10ad   :  { %1654 = vrot.lane.b32.xlu0 %v3320_v46, %s3423_s22 }
0x10b2   :  { %v1818_v48 = vpop.f32.mrf.mxu0 }
0x10b3   :  { %v1819_v50 = vadd.f32 %v1818_v48, %v1772_v20 }
0x10b4   :  { %v3055_v51 = vpop.f32.mrf.mxu0 }
0x10b5   :  { %v1824_v55 = vadd.f32 %v3979_v11, %v1819_v50 }
0x10b6   :  { %v1821_v58 = vpop.f32.mrf.mxu0 }
0x10b7   :  { %3321 = vtanh.f32 %v1824_v55  ;;  %v2732_v4 = vmul.f32 -1.442695, %v1824_v55 }
0x10b8   :  { %v3056_v56 = vpop.f32.mrf.mxu0 }
0x10c2   :  { %v2005_v15 = vpop.f32.mrf.mxu0 }
0x10c3   :  { %v2012_v34 = vadd.f32 %v2736_v59, %v2005_v15 }
0x10c4   :  { %v3322_v60 = vpop.eup %3321  ;;  %v2007_v61 = vpop.f32.mrf.mxu0 }
0x10c5   :  { %v2739_v63 = vmul.f32 -1.442695, %v2012_v34  ;;  %1834 = vrot.lane.b32.xlu1 %v3322_v60, %s3419_s13  ;;  %v2013_v24 = vadd.f32 %v2737_v52, %v2007_v61 }
0x10c6   :  { %v2009_v9 = vpop.f32.mrf.mxu0 }
0x10c7   :  { %3323 = vpow2.f32 %v2739_v63 }
0x10c8   :  { %v2010_v62 = vpop.f32.mrf.mxu0  ;;  %3325 = vtanh.f32 %v2013_v24 }
0x10d4   :  { %v3324_v13 = vpop.eup %3323 }
0x10d5   :  { %v2017_v14 = vadd.f32 1.0, %v3324_v13  ;;  %v3326_v16 = vpop.eup %3325 }
0x10d7   :  { %3327 = vrcp.f32 %v2017_v14 }
0x10d8   :  { %3329 = vpow2.f32 %v2724_v0 }
0x10e4   :  { %v3328_v17 = vpop.eup %3327 }
0x10e5   :  { %v2028_v22 = vmul.f32 %v3328_v17, %v3326_v16  ;;  %v3330_v25 = vpop.eup %3329  ;;  %v2027_v59 = vmul.f32 %v3328_v17, %v4003_v12 }
0x10e6   :  { %v1648_v3 = vadd.f32 1.0, %v3330_v25 }
0x10e8   :  { %3331 = vrcp.f32 %v1648_v3 }
0x10e9   :  { %3333 = vpow2.f32 %v2732_v4 }
0x10f5   :  { %v3332_v6 = vpop.eup %3331 }
0x10f6   :  { %v3334_v54 = vpop.eup %3333  ;;  %v1652_v18 = vmul.f32 %v3332_v6, %v3992_v53  ;;  %v2740_v53 = vmul.f32 -1.442695, %v2013_v24 }
0x10f7   :  { %v1828_v26 = vadd.f32 1.0, %v3334_v54  ;;  %v2747_v54 = vld [vmem:[%s4233_s0 + $0x70] sm:$0xff] }
0x10f9   :  { %3335 = vrcp.f32 %v1828_v26 }
0x1106   :  { %v3336_v27 = vpop.eup %3335 }
0x1107   :  { %v1832_v45 = vmul.f32 %v3336_v27, %v3998_v57 }
0x111f   :  { %v1655_v7 = vpop.permute.xlu0 %1654 }
0x1120   :  { %v1657_v8 = vmul.f32 %v3332_v6, %v1655_v7 }
0x1122   :  { %1659 = vrot.lane.b32.xlu0 %v1657_v8, %s3424_s27 }
0x1137   :  { %v1835_v28 = vpop.permute.xlu1 %1834 }
0x1138   :  { %v1837_v19 = vmul.f32 %v3336_v27, %v1835_v28 }
0x113a   :  { %1839 = vrot.lane.b32.xlu1 %v1837_v19, %s3422_s12 }
0x1194   :  { %v1660_v10 = vpop.permute.xlu0 %1659 }
0x1195   :  { %v4082_v20 = vadd.f32 %v1660_v10, %v1652_v18 }
0x1197   :  { %3337 = vtanh.f32 %v4082_v20 }
0x11a4   :  { %v3338_v35 = vpop.eup %3337 }
0x11a5   :  { %1665 = vrot.lane.b32.xlu0 %v3338_v35, %s3422_s12 }
0x11a9   :  { %2030 = vrot.lane.b32.xlu0 %v2028_v22, %s3419_s13 }
0x11ac   :  { %v1840_v47 = vpop.permute.xlu1 %1839 }
0x11ad   :  { %v4088_v46 = vadd.f32 %v1840_v47, %v1832_v45  ;;  %v2748_v45 = vld [vmem:[%s4233_s0 + $0x78] sm:$0xff] }
0x11af   :  { %3339 = vtanh.f32 %v4088_v46 }
0x11b0   :  { %3341 = vpow2.f32 %v2740_v53 }
0x11bc   :  { %v3340_v48 = vpop.eup %3339 }
0x11bd   :  { %1845 = vrot.lane.b32.xlu1 %v3340_v48, %s3419_s13  ;;  %v3342_v50 = vpop.eup %3341 }
0x11be   :  { %v2024_v58 = vadd.f32 1.0, %v3342_v50 }
0x11c0   :  { %3343 = vrcp.f32 %v2024_v58 }
0x11cd   :  { %v3344_v57 = vpop.eup %3343 }
0x1217   :  { %v1666_v51 = vpop.permute.xlu0 %1665 }
0x1218   :  { %v1668_v55 = vmul.f32 %v3332_v6, %v1666_v51 }
0x121a   :  { %v1850_v56 = vpack.c.bf16 %v1668_v55, %v1668_v55 }
0x121b   :  { %v2031_v15 = vpop.permute.xlu0 %2030 }
0x121c   :  { %v4093_v34 = vadd.f32 %v2031_v15, %v2027_v59  ;;  %1852 = vrot.lane.b32.xlu1 %v1850_v56, %s3425_s28 }
0x121e   :  { %3345 = vtanh.f32 %v4093_v34 }
0x122b   :  { %v3346_v60 = vpop.eup %3345 }
0x122c   :  { %v2035_v61 = vmul.f32 %v3346_v60, %v3344_v57 }
0x122e   :  { %v2036_v63 = vpack.c.bf16 %v2035_v61, %v2035_v61 }
0x122f   :  { %v1846_v9 = vpop.permute.xlu1 %1845 }
0x1230   :  { %v1848_v62 = vmul.f32 %v3336_v27, %v1846_v9  ;;  %2078 = vrot.lane.b32.xlu1 %v2036_v63, %s3419_s13 }
0x1232   :  { %v1849_v52 = vpack.c.bf16 %v1848_v62, %v1848_v62 }
0x1234   :  { %1898 = vrot.lane.b32.xlu0 %v1849_v52, %s3422_s12 }
0x128e   :  { %v1853_v12 = vpop.permute.xlu1 %1852 }
0x128f   :  { %3060 = vmatmul.mubr.msk.bf16.vlgmr.msra.gmra.mxu1 %vm347_vm3, %v1853_v12 }
0x1290   :  { %3064 = vmatpush3.bf16.msra.mxu1 %v4013_v49  ;;  %3067 = vmatprep.mubr.msk.bf16.mxu1 %vm3421_vm0, %v3420_v23 }
0x1291   :  { %3065 = vmatprep.subr.bf16.mxu1 %v3420_v23 }
0x1294   :  { %3066 = vmatpush3.bf16.msra.mxu1 %v4022_v2 }
0x1295   :  { %3071 = vmatprep.subr.bf16.mxu1 %v3420_v23 }
0x12a2   :  { %v2079_v13 = vpop.permute.xlu1 %2078 }
0x12a6   :  { %v1899_v24 = vpop.permute.xlu0 %1898 }
0x12a7   :  { %3068 = vmatmul.mubr.msk.bf16.vlgmr.msra.gmra.mxu1 %vm202_vm2, %v1899_v24 }
0x12a8   :  { %3072 = vmatpush3.bf16.msra.mxu1 %v3875_v21  ;;  %3075 = vmatprep.mubr.msk.bf16.mxu1 %vm3421_vm0, %v3420_v23 }
0x12a9   :  { %3073 = vmatprep.subr.bf16.mxu1 %v3420_v23 }
0x12ac   :  { %3074 = vmatpush3.bf16.msra.mxu1 %v3884_v36 }
0x12ad   :  { %3079 = vmatprep.subr.bf16.mxu1 %v3420_v23 }
0x12af   :  { %3076 = vmatmul.mubr.msk.bf16.vlgmr.msra.gmra.mxu1 %vm202_vm2, %v1899_v24 }
0x12b0   :  { %3080 = vmatpush3.bf16.msra.mxu1 %v3892_v37  ;;  %3087 = vmatprep.mubr.msk.bf16.mxu1 %vm3421_vm0, %v3420_v23 }
0x12b1   :  { %3081 = vmatprep.subr.bf16.mxu1 %v3420_v23 }
0x12b4   :  { %3082 = vmatpush3.bf16.msra.mxu1 %v3901_v30 }
0x12b5   :  { %3083 = vmatprep.subr.bf16.mxu1 %v3420_v23 }
0x12b8   :  { %3084 = vmatpush3.bf16.msra.mxu1 %v3908_v31 }
0x12b9   :  { %3085 = vmatprep.subr.bf16.mxu1 %v3420_v23 }
0x12bc   :  { %3086 = vmatpush3.bf16.msra.mxu1 %v3915_v33 }
0x12bd   :  { %2278 = vmatprep.subr.bf16.mxu1 %v3921_v32 }
0x12bf   :  { %3088 = vmatmul.mubr.msk.bf16.vlgmr.msra.gmra.mxu1 %vm120_vm1, %v2079_v13 }
0x12c0   :  { %2279 = vmatpush1.bf16.msra.mxu1 %v3928_v38  ;;  %2302 = vmatprep.mubr.bf16.mxu1 %v3418_v1 }
0x12c1   :  { %2280 = vmatprep.subr.bf16.mxu1 %v3935_v39 }
0x12c4   :  { %2281 = vmatpush1.bf16.msra.mxu1 %v3941_v40 }
0x12c5   :  { %2282 = vmatprep.subr.bf16.mxu1 %v3947_v41 }
0x12c8   :  { %2283 = vmatpush1.bf16.msra.mxu1 %v3953_v42 }
0x12c9   :  { %2284 = vmatprep.subr.bf16.mxu1 %v3959_v43 }
0x12cc   :  { %2285 = vmatpush1.bf16.msra.mxu1 %v3965_v44 }
0x12cd   :  { %3125 = vmatprep.subr.bf16.mxu1 %v3420_v23 }
0x12cf   :  { %2749 = vmatmul.mubr.msk.bf16.vlgmr.msra.gmra.mxu1 %vm120_vm1, %v2079_v13 }
0x12d0   :  { %3126 = vmatpush3.bf16.msra.mxu1 %v4058_v5  ;;  %3127 = vmatprep.mubr.msk.bf16.mxu1 %vm3421_vm0, %v3420_v23 }
0x12d1   :  { %3131 = vmatprep.subr.bf16.mxu1 %v3420_v23 }
0x134f   :  { %v1891_v1 = vpop.f32.mrf.mxu1 }
0x1351   :  { %v3061_v32 = vpop.f32.mrf.mxu1 }
0x1353   :  { %v1894_v38 = vpop.f32.mrf.mxu1 }
0x1355   :  { %v3062_v39 = vpop.f32.mrf.mxu1 }
0x1367   :  { %v1937_v40 = vpop.f32.mrf.mxu1 }
0x1368   :  { %v1938_v41 = vadd.f32 %v1937_v40, %v1891_v1 }
0x1369   :  { %v3069_v42 = vpop.f32.mrf.mxu1 }
0x136a   :  { %v1943_v43 = vadd.f32 %v4067_v29, %v1938_v41 }
0x136b   :  { %v1940_v44 = vpop.f32.mrf.mxu1 }
0x136c   :  { %3347 = vtanh.f32 %v1943_v43  ;;  %v2735_v58 = vmul.f32 -1.442695, %v1943_v43 }
0x136d   :  { %v3070_v14 = vpop.f32.mrf.mxu1 }
0x136f   :  { %v2071_v16 = vpop.f32.mrf.mxu1 }
0x1371   :  { %v3077_v17 = vpop.f32.mrf.mxu1 }
0x1373   :  { %v2074_v5 = vpop.f32.mrf.mxu1 }
0x1375   :  { %v3078_v22 = vpop.f32.mrf.mxu1 }
0x1379   :  { %v3348_v0 = vpop.eup %3347 }
0x137a   :  { %1953 = vrot.lane.b32.xlu0 %v3348_v0, %s3423_s22 }
0x137f   :  { %v2117_v25 = vpop.f32.mrf.mxu1 }
0x1380   :  { %v2118_v3 = vadd.f32 %v2117_v25, %v2071_v16 }
0x1381   :  { %v3089_v4 = vpop.f32.mrf.mxu1 }
0x1382   :  { %v2123_v6 = vadd.f32 %v3979_v11, %v2118_v3 }
0x1383   :  { %v2120_v7 = vpop.f32.mrf.mxu1 }
0x1384   :  { %3349 = vtanh.f32 %v2123_v6  ;;  %v2743_v15 = vmul.f32 -1.442695, %v2123_v6 }
0x1385   :  { %v3090_v8 = vpop.f32.mrf.mxu1 }
0x138f   :  { %v2304_v26 = vpop.f32.mrf.mxu1 }
0x1390   :  { %v2311_v27 = vadd.f32 %v2747_v54, %v2304_v26 }
0x1391   :  { %v3350_v28 = vpop.eup %3349  ;;  %v2306_v19 = vpop.f32.mrf.mxu1 }
0x1392   :  { %v2750_v18 = vmul.f32 -1.442695, %v2311_v27  ;;  %2133 = vrot.lane.b32.xlu1 %v3350_v28, %s3419_s13  ;;  %v2312_v47 = vadd.f32 %v2748_v45, %v2306_v19 }
0x1393   :  { %v2308_v10 = vpop.f32.mrf.mxu1 }
0x1394   :  { %3351 = vpow2.f32 %v2750_v18 }
0x1395   :  { %v2309_v35 = vpop.f32.mrf.mxu1  ;;  %3353 = vtanh.f32 %v2312_v47 }
0x13a1   :  { %v3352_v48 = vpop.eup %3351 }
0x13a2   :  { %v2316_v53 = vadd.f32 1.0, %v3352_v48  ;;  %v3354_v50 = vpop.eup %3353 }
0x13a4   :  { %3355 = vrcp.f32 %v2316_v53 }
0x13a5   :  { %3357 = vpow2.f32 %v2735_v58 }
0x13b1   :  { %v3356_v51 = vpop.eup %3355 }
0x13b2   :  { %v2327_v55 = vmul.f32 %v3356_v51, %v3354_v50  ;;  %v3358_v56 = vpop.eup %3357  ;;  %v2326_v17 = vmul.f32 %v3356_v51, %v4093_v34 }
0x13b3   :  { %v1947_v59 = vadd.f32 1.0, %v3358_v56 }
0x13b5   :  { %3359 = vrcp.f32 %v1947_v59 }
0x13b6   :  { %3361 = vpow2.f32 %v2743_v15 }
0x13c2   :  { %v3360_v57 = vpop.eup %3359 }
0x13c3   :  { %v3362_v63 = vpop.eup %3361  ;;  %v1951_v24 = vmul.f32 %v3360_v57, %v4082_v20  ;;  %v2751_v20 = vmul.f32 -1.442695, %v2312_v47 }
0x13c4   :  { %v2127_v9 = vadd.f32 1.0, %v3362_v63 }
0x13c6   :  { %3363 = vrcp.f32 %v2127_v9 }
0x13d3   :  { %v3364_v62 = vpop.eup %3363 }
0x13d4   :  { %v2131_v38 = vmul.f32 %v3364_v62, %v4088_v46 }
0x13ec   :  { %v1954_v60 = vpop.permute.xlu0 %1953 }
0x13ed   :  { %v1956_v61 = vmul.f32 %v3360_v57, %v1954_v60 }
0x13ef   :  { %1958 = vrot.lane.b32.xlu0 %v1956_v61, %s3424_s27 }
0x1404   :  { %v2134_v52 = vpop.permute.xlu1 %2133 }
0x1405   :  { %v2136_v12 = vmul.f32 %v3364_v62, %v2134_v52 }
0x1407   :  { %2138 = vrot.lane.b32.xlu1 %v2136_v12, %s3422_s12 }
0x1461   :  { %v1959_v13 = vpop.permute.xlu0 %1958 }
0x1462   :  { %v4152_v1 = vadd.f32 %v1959_v13, %v1951_v24 }
0x1464   :  { %3365 = vtanh.f32 %v4152_v1 }
0x1471   :  { %v3366_v32 = vpop.eup %3365 }
0x1472   :  { %1964 = vrot.lane.b32.xlu0 %v3366_v32, %s3422_s12 }
0x1476   :  { %2329 = vrot.lane.b32.xlu0 %v2327_v55, %s3419_s13 }
0x1479   :  { %v2139_v39 = vpop.permute.xlu1 %2138 }
0x147a   :  { %v4158_v40 = vadd.f32 %v2139_v39, %v2131_v38 }
0x147c   :  { %3367 = vtanh.f32 %v4158_v40 }
0x147d   :  { %3369 = vpow2.f32 %v2751_v20 }
0x1489   :  { %v3368_v41 = vpop.eup %3367 }
0x148a   :  { %2144 = vrot.lane.b32.xlu1 %v3368_v41, %s3419_s13  ;;  %v3370_v42 = vpop.eup %3369 }
0x148b   :  { %v2323_v14 = vadd.f32 1.0, %v3370_v42 }
0x148d   :  { %3371 = vrcp.f32 %v2323_v14 }
0x149a   :  { %v3372_v46 = vpop.eup %3371 }
0x14e4   :  { %v1965_v43 = vpop.permute.xlu0 %1964 }
0x14e5   :  { %v1967_v44 = vmul.f32 %v3360_v57, %v1965_v43 }
0x14e7   :  { %v2149_v16 = vpack.c.bf16 %v1967_v44, %v1967_v44 }
0x14e8   :  { %v2330_v5 = vpop.permute.xlu0 %2329 }
0x14e9   :  { %v2332_v22 = vadd.f32 %v2330_v5, %v2326_v17  ;;  %2151 = vrot.lane.b32.xlu1 %v2149_v16, %s3425_s28 }
0x14eb   :  { %3373 = vtanh.f32 %v2332_v22 }
0x14f8   :  { %v3374_v0 = vpop.eup %3373 }
0x14f9   :  { %v2334_v25 = vmul.f32 %v3374_v0, %v3372_v46 }
0x14fb   :  { %v2335_v3 = vpack.c.bf16 %v2334_v25, %v2334_v25 }
0x14fc   :  { %v2145_v4 = vpop.permute.xlu1 %2144 }
0x14fd   :  { %v2147_v6 = vmul.f32 %v3364_v62, %v2145_v4  ;;  %2377 = vrot.lane.b32.xlu1 %v2335_v3, %s3419_s13 }
0x14ff   :  { %v2148_v7 = vpack.c.bf16 %v2147_v6, %v2147_v6 }
0x1501   :  { %2197 = vrot.lane.b32.xlu0 %v2148_v7, %s3422_s12 }
0x155b   :  { %v2152_v8 = vpop.permute.xlu1 %2151 }
0x155c   :  { %3094 = vmatmul.mubr.msk.bf16.vlgmr.msra.gmra.mxu0 %vm347_vm3, %v2152_v8 }
0x155d   :  { %3098 = vmatpush3.bf16.msra.mxu0 %v4013_v49  ;;  %3101 = vmatprep.mubr.msk.bf16.mxu0 %vm3421_vm0, %v3420_v23 }
0x155e   :  { %3099 = vmatprep.subr.bf16.mxu0 %v3420_v23 }
0x1561   :  { %3100 = vmatpush3.bf16.msra.mxu0 %v4022_v2 }
0x1562   :  { %3105 = vmatprep.subr.bf16.mxu0 %v3420_v23 }
0x1573   :  { %v2198_v34 = vpop.permute.xlu0 %2197 }
0x1574   :  { %3102 = vmatmul.mubr.msk.bf16.vlgmr.msra.gmra.mxu0 %vm202_vm2, %v2198_v34 }
0x1575   :  { %3106 = vmatpush3.bf16.msra.mxu0 %v3875_v21  ;;  %3109 = vmatprep.mubr.msk.bf16.mxu0 %vm3421_vm0, %v3420_v23  ;;  %v2378_v21 = vpop.permute.xlu1 %2377 }
0x1576   :  { %3107 = vmatprep.subr.bf16.mxu0 %v3420_v23 }
0x1579   :  { %3108 = vmatpush3.bf16.msra.mxu0 %v3884_v36 }
0x157a   :  { %3113 = vmatprep.subr.bf16.mxu0 %v3420_v23 }
0x157c   :  { %3110 = vmatmul.mubr.msk.bf16.vlgmr.msra.gmra.mxu0 %vm202_vm2, %v2198_v34 }
0x157d   :  { %3114 = vmatpush3.bf16.msra.mxu0 %v3892_v37  ;;  %3121 = vmatprep.mubr.msk.bf16.mxu0 %vm3421_vm0, %v3420_v23 }
0x157e   :  { %3115 = vmatprep.subr.bf16.mxu0 %v3420_v23 }
0x1581   :  { %3116 = vmatpush3.bf16.msra.mxu0 %v3901_v30 }
0x1582   :  { %3117 = vmatprep.subr.bf16.mxu0 %v3420_v23 }
0x1585   :  { %3118 = vmatpush3.bf16.msra.mxu0 %v3908_v31 }
0x1586   :  { %3119 = vmatprep.subr.bf16.mxu0 %v3420_v23 }
0x1589   :  { %3120 = vmatpush3.bf16.msra.mxu0 %v3915_v33 }
0x158a   :  { %3139 = vmatprep.subr.mxu0 %v3420_v23 }
0x158c   :  { %3122 = vmatmul.mubr.msk.bf16.vlgmr.msra.gmra.mxu0 %vm120_vm1, %v2378_v21 }
0x158d   :  { %3143 = vmatprep.mubr.msk.f32.mxu0 %vm3421_vm0, %v3420_v23 }
0x161c   :  { %v2190_v36 = vpop.f32.mrf.mxu0 }
0x161e   :  { %v3095_v37 = vpop.f32.mrf.mxu0 }
0x1620   :  { %v2193_v54 = vpop.f32.mrf.mxu0 }
0x1622   :  { %v3096_v30 = vpop.f32.mrf.mxu0 }
0x1634   :  { %v2236_v26 = vpop.f32.mrf.mxu0 }
0x1635   :  { %v2237_v27 = vadd.f32 %v2236_v26, %v2190_v36 }
0x1636   :  { %v3103_v28 = vpop.f32.mrf.mxu0 }
0x1637   :  { %v2242_v31 = vadd.f32 %v4067_v29, %v2237_v27 }
0x1638   :  { %v2239_v19 = vpop.f32.mrf.mxu0 }
0x1639   :  { %3375 = vtanh.f32 %v2242_v31  ;;  %v2746_v59 = vmul.f32 -1.442695, %v2242_v31  ;;  %v2566_v19 = vld [vmem:[%s4240_s8] sm:$0xff] }
0x163a   :  { %v3104_v33 = vpop.f32.mrf.mxu0 }
0x163c   :  { %v2370_v18 = vpop.f32.mrf.mxu0 }
0x163e   :  { %v3111_v10 = vpop.f32.mrf.mxu0 }
0x1640   :  { %v2373_v35 = vpop.f32.mrf.mxu0 }
0x1642   :  { %v3112_v45 = vpop.f32.mrf.mxu0 }
0x1646   :  { %v3376_v47 = vpop.eup %3375 }
0x1647   :  { %2252 = vrot.lane.b32.xlu0 %v3376_v47, %s3423_s22 }
0x164c   :  { %v2416_v48 = vpop.f32.mrf.mxu0 }
0x164d   :  { %v2417_v53 = vadd.f32 %v2416_v48, %v2370_v18  ;;  %v15_v18 = vstv %s4241_s9 }
0x164e   :  { %v3123_v50 = vpop.f32.mrf.mxu0  ;;  %16 = vst [vmem:[#allocation2] sm:$0x1] %v15_v18 }
0x164f   :  { %v2422_v51 = vadd.f32 %v3979_v11, %v2417_v53 }
0x1650   :  { %v2419_v55 = vpop.f32.mrf.mxu0 }
0x1651   :  { %3377 = vtanh.f32 %v2422_v51  ;;  %v2754_v60 = vmul.f32 -1.442695, %v2422_v51 }
0x1652   :  { %v3124_v58 = vpop.f32.mrf.mxu0  ;;  %3379 = vpow2.f32 %v2746_v59 }
0x1655   :  { %v2758_v47 = vld [vmem:[#allocation2] ss:$0 sm:$0xff] }
0x165e   :  { %v3378_v56 = vpop.eup %3377 }
0x165f   :  { %2432 = vrot.lane.b32.xlu1 %v3378_v56, %s3419_s13  ;;  %v3380_v15 = vpop.eup %3379 }
0x1660   :  { %v2246_v57 = vadd.f32 1.0, %v3380_v15 }
0x1662   :  { %3381 = vrcp.f32 %v2246_v57 }
0x1663   :  { %3383 = vpow2.f32 %v2754_v60 }
0x166f   :  { %v3382_v61 = vpop.eup %3381 }
0x1670   :  { %v3384_v62 = vpop.eup %3383  ;;  %v2250_v13 = vmul.f32 %v3382_v61, %v4152_v1 }
0x1671   :  { %v2426_v11 = vadd.f32 1.0, %v3384_v62 }
0x1673   :  { %3385 = vrcp.f32 %v2426_v11 }
0x1680   :  { %v3386_v52 = vpop.eup %3385 }
0x1681   :  { %v2430_v41 = vmul.f32 %v3386_v52, %v4158_v40 }
0x16b9   :  { %v2253_v63 = vpop.permute.xlu0 %2252 }
0x16ba   :  { %v2255_v9 = vmul.f32 %v3382_v61, %v2253_v63 }
0x16bc   :  { %2257 = vrot.lane.b32.xlu0 %v2255_v9, %s3424_s27 }
0x16d1   :  { %v2433_v12 = vpop.permute.xlu1 %2432 }
0x16d2   :  { %v2435_v24 = vmul.f32 %v3386_v52, %v2433_v12 }
0x16d4   :  { %2437 = vrot.lane.b32.xlu1 %v2435_v24, %s3422_s12 }
0x172e   :  { %v2258_v32 = vpop.permute.xlu0 %2257 }
0x172f   :  { %v2260_v38 = vadd.f32 %v2258_v32, %v2250_v13 }
0x1731   :  { %3387 = vtanh.f32 %v2260_v38 }
0x173e   :  { %v3388_v39 = vpop.eup %3387 }
0x173f   :  { %2263 = vrot.lane.b32.xlu0 %v3388_v39, %s3422_s12 }
0x1746   :  { %v2438_v20 = vpop.permute.xlu1 %2437 }
0x1747   :  { %v2440_v42 = vadd.f32 %v2438_v20, %v2430_v41 }
0x1749   :  { %3389 = vtanh.f32 %v2440_v42 }
0x1756   :  { %v3390_v43 = vpop.eup %3389 }
0x1757   :  { %2443 = vrot.lane.b32.xlu1 %v3390_v43, %s3419_s13 }
0x17b1   :  { %v2264_v44 = vpop.permute.xlu0 %2263 }
0x17b2   :  { %v2266_v14 = vmul.f32 %v3382_v61, %v2264_v44 }
0x17b4   :  { %v2448_v16 = vpack.c.bf16 %v2266_v14, %v2266_v14 }
0x17b6   :  { %2450 = vrot.lane.b32.xlu0 %v2448_v16, %s3425_s28 }
0x17c9   :  { %v2444_v1 = vpop.permute.xlu1 %2443 }
0x17ca   :  { %v2446_v17 = vmul.f32 %v3386_v52, %v2444_v1 }
0x17cc   :  { %v2447_v5 = vpack.c.bf16 %v2446_v17, %v2446_v17 }
0x17ce   :  { %2496 = vrot.lane.b32.xlu1 %v2447_v5, %s3422_s12 }
0x1828   :  { %v2451_v22 = vpop.permute.xlu0 %2450 }
0x1829   :  { %3128 = vmatmul.mubr.msk.bf16.vlgmr.msra.gmra.mxu1 %vm347_vm3, %v2451_v22 }
0x182a   :  { %3132 = vmatpush3.bf16.msra.mxu1 %v4013_v49  ;;  %3135 = vmatprep.mubr.msk.bf16.mxu1 %vm3421_vm0, %v3420_v23 }
0x182b   :  { %3133 = vmatprep.subr.bf16.mxu1 %v3420_v23 }
0x182e   :  { %3134 = vmatpush3.bf16.msra.mxu1 %v4022_v2 }
0x1840   :  { %v2497_v40 = vpop.permute.xlu1 %2496 }
0x1841   :  { %3136 = vmatmul.mubr.msk.bf16.vlgmr.msra.gmra.mxu1 %vm202_vm2, %v2497_v40 }
0x18e9   :  { %v2489_v46 = vpop.f32.mrf.mxu1 }
0x18eb   :  { %v3129_v0 = vpop.f32.mrf.mxu1 }
0x18ed   :  { %v2492_v25 = vpop.f32.mrf.mxu1 }
0x18ef   :  { %v3130_v3 = vpop.f32.mrf.mxu1 }
0x1901   :  { %v2535_v4 = vpop.f32.mrf.mxu1 }
0x1902   :  { %v2536_v6 = vadd.f32 %v2535_v4, %v2489_v46 }
0x1903   :  { %v3137_v7 = vpop.f32.mrf.mxu1 }
0x1904   :  { %v2541_v8 = vadd.f32 %v4067_v29, %v2536_v6  ;;  %v2567_v29 = vld [vmem:[%s4240_s8 + $0x8] sm:$0xff] }
0x1905   :  { %v2538_v49 = vpop.f32.mrf.mxu1  ;;  %3140 = vmatpush3.msra.mxu0 %v2567_v29 }
0x1906   :  { %3391 = vtanh.f32 %v2541_v8  ;;  %v2757_v36 = vmul.f32 -1.442695, %v2541_v8  ;;  %3141 = vmatprep.subr.mxu0 %v3420_v23 }
0x1907   :  { %v3138_v34 = vpop.f32.mrf.mxu1  ;;  %3142 = vmatpush3.msra.mxu0 %v2566_v19 }
0x1908   :  { %3393 = vpow2.f32 %v2757_v36 }
0x1913   :  { %v3392_v21 = vpop.eup %3391 }
0x1914   :  { %2551 = vrot.lane.b32.xlu0 %v3392_v21, %s3423_s22 }
0x1915   :  { %v3394_v2 = vpop.eup %3393 }
0x1916   :  { %v2545_v37 = vadd.f32 1.0, %v3394_v2 }
0x1918   :  { %3395 = vrcp.f32 %v2545_v37 }
0x1925   :  { %v3396_v54 = vpop.eup %3395 }
0x1926   :  { %v2549_v27 = vmul.f32 %v3396_v54, %v2260_v38 }
0x1986   :  { %v2552_v30 = vpop.permute.xlu0 %2551 }
0x1987   :  { %v2554_v26 = vmul.f32 %v3396_v54, %v2552_v30 }
0x1989   :  { %2556 = vrot.lane.b32.xlu1 %v2554_v26, %s3424_s27 }
0x19fb   :  { %v2557_v28 = vpop.permute.xlu1 %2556 }
0x19fc   :  { %v2559_v31 = vadd.f32 %v2557_v28, %v2549_v27 }
0x19fe   :  { %3397 = vtanh.f32 %v2559_v31 }
0x1a0b   :  { %v3398_v33 = vpop.eup %3397 }
0x1a0c   :  { %2562 = vrot.lane.b32.xlu0 %v3398_v33, %s3422_s12 }
0x1a7e   :  { %v2563_v10 = vpop.permute.xlu0 %2562 }
0x1a7f   :  { %v2565_v35 = vmul.f32 %v3396_v54, %v2563_v10 }
0x1a81   :  { %2576 = vrot.lane.b32.xlu1 %v2565_v35, %s3425_s28 }
0x1af3   :  { %v2577_v45 = vpop.permute.xlu1 %2576 }
0x1af4   :  { %3144 = vmatmul.mubr.msk.f32.vlgmr.msra.gmra.mxu0 %vm347_vm3, %v2577_v45 }
0x1bb4   :  { %v2646_v48 = vpop.f32.mrf.mxu0 }
0x1bb5   :  { %v2647_v23 = vadd.f32 %v2758_v47, %v2646_v48 }
0x1bb6   :  { %v3145_v53 = vpop.f32.mrf.mxu0 }
0x1bb7   :  { %2651 = vst.msk [vmem:[%s4242_s10] sm:$0xff] %vm2650_vm4, %v2647_v23 }

</bundles_post_ra>
